<compile_context>
chip_gen: v5e
topology: v5e:2x2
jax: 0.10.0
libtpu: 0.0.40
codegen_flags: <defaults>
</compile_context>

<pallas_src>
import jax
import jax.numpy as jnp
from jax.experimental import pallas as pl
from jax.experimental.pallas import tpu as pltpu


def _round_up(n, m):
    return ((n + m - 1) // m) * m


def _cvae_kernel(
    # batch-tiled inputs
    x_ref, ce_ref,
    # resident weights / biases
    w1x_ref, w1c_ref, b1_ref,
    w2_ref, b2_ref,
    wmulv_ref, bmulv_ref,
    w4z_ref, w4c_ref, b4_ref,
    w5_ref, b5_ref,
    w6_ref, b6_ref,
    # batch-tiled outputs
    out_ref, mlvs_ref,
):
    f32 = jnp.float32
    bf16 = jnp.bfloat16
    c_dim = w1c_ref.shape[0]
    z_dim = w4z_ref.shape[0]

    # Cast to bf16 inside the kernel (free on the VPU; no extra HBM pass).
    x = x_ref[...].astype(bf16)                    # [TM, 784]
    ce = ce_ref[...]                               # [TM, c_dim + z_dim]  f32
    c = ce[:, :c_dim].astype(bf16)                 # [TM, c_dim]
    eps = ce[:, c_dim:c_dim + z_dim]               # [TM, z_dim]  stays f32

    # ---------------- encoder ----------------
    # fc1(cat([x, c])) == x @ W1x + c @ W1c + b1
    h1 = (jnp.dot(x, w1x_ref[...], preferred_element_type=f32)
          + jnp.dot(c, w1c_ref[...], preferred_element_type=f32)
          + b1_ref[...])
    h1 = jnp.maximum(h1, 0.0).astype(bf16)

    h2 = jnp.dot(h1, w2_ref[...], preferred_element_type=f32) + b2_ref[...]
    h2 = jnp.maximum(h2, 0.0).astype(bf16)

    # Fused mu / log_var head: one [h2, 2*z] matmul, split in-register.
    mulv = jnp.dot(h2, wmulv_ref[...], preferred_element_type=f32) + bmulv_ref[...]
    mu = mulv[:, :z_dim]
    log_var = mulv[:, z_dim:]

    # ---------------- sampling (reparameterization) ----------------
    std = jnp.exp(0.5 * log_var)
    sample = eps * std + mu                        # all f32 (matches randn_like path)

    # ---------------- decoder ----------------
    # fc4(cat([z, c])) == z @ W4z + c @ W4c + b4
    d1 = (jnp.dot(sample.astype(bf16), w4z_ref[...], preferred_element_type=f32)
          + jnp.dot(c, w4c_ref[...], preferred_element_type=f32)
          + b4_ref[...])
    d1 = jnp.maximum(d1, 0.0).astype(bf16)

    d2 = jnp.dot(d1, w5_ref[...], preferred_element_type=f32) + b5_ref[...]
    d2 = jnp.maximum(d2, 0.0).astype(bf16)

    logits = jnp.dot(d2, w6_ref[...], preferred_element_type=f32) + b6_ref[...]
    # sigmoid: exp (EUP) + approx reciprocal (EUP); store bf16 to halve the
    # dominant HBM writeback.  (bf16 EUP would be slightly faster on v6e/v7x
    # but f32 is kept for v5e compatibility.)
    out_ref[...] = pl.reciprocal(1.0 + jnp.exp(-logits), approx=True).astype(out_ref.dtype)

    # Lane-dense packed [mu | log_var | sample] output; two direct sliced
    # stores (no in-kernel concat / relayout).  Lanes >= 3*z_dim are padding,
    # never read back by the wrapper.
    mlvs_ref[:, :2 * z_dim] = mulv
    mlvs_ref[:, 2 * z_dim:3 * z_dim] = sample


def cvae_mlp_forward(x, c, eps, params, *, tm=512):
    """x: anything reshapable to [B, 784]; c: [B, c_dim]; eps: [B, z_dim].

    `params` must come from `prepare_params` (bf16 weights stored [in, out],
    f32 biases stored [1, out], fused mu/log_var head, fc1/fc4 split by input).
    Returns (outputs[bf16], mu[f32], log_var[f32], sample[f32]).
    """
    f32 = jnp.float32
    x = x.reshape(-1, 784)                         # mirrors x.view(-1, 784)
    B = x.shape[0]
    c_dim = c.shape[1]
    z_dim = eps.shape[1]
    x_dim = params["w6"].shape[1]
    h1_dim = params["w1x"].shape[1]
    h2_dim = params["w2"].shape[1]

    # One tiny merged side-input stream [c | eps] (24 lanes) instead of two.
    ce = jnp.concatenate([c.astype(f32), eps.astype(f32)], axis=1)

    # Row-tile selection: as large as useful, but keep the grid length >= 2 so
    # the "parallel" axis can actually split across v7x's two TensorCores.
    tm = max(8, min(tm, _round_up(B, 8)))
    if B > 8:
        tm = min(tm, _round_up((B + 1) // 2, 8))
    tm = _round_up(tm, 8)
    Bp = _round_up(B, tm)
    if Bp != B:                                    # ragged tail only
        pad = ((0, Bp - B), (0, 0))
        x = jnp.pad(x, pad)
        ce = jnp.pad(ce, pad)
    grid = (Bp // tm,)

    mlvs_pad = max(128, _round_up(3 * z_dim, 128))  # lane-dense packed output

    def rows(feat):
        return pl.BlockSpec((tm, feat), lambda i: (i, 0))

    def resident(arr):
        # Full-array block, constant index -> stays resident in VMEM across
        # grid steps.  (Could also be pipeline_mode=pl.Buffered(1); left at
        # the default for maximum lowering compatibility.)
        return pl.BlockSpec(arr.shape, lambda i: (0, 0))

    weight_keys = ("w1x", "w1c", "b1", "w2", "b2", "wmulv", "bmulv",
                   "w4z", "w4c", "b4", "w5", "b5", "w6", "b6")
    weights = [params[k] for k in weight_keys]

    in_specs = [rows(x.shape[1]), rows(ce.shape[1])]
    in_specs += [resident(w) for w in weights]

    out_specs = [rows(x_dim), rows(mlvs_pad)]
    out_shapes = (
        jax.ShapeDtypeStruct((Bp, x_dim), jnp.bfloat16),    # sigmoid outputs
        jax.ShapeDtypeStruct((Bp, mlvs_pad), jnp.float32),  # [mu|log_var|sample|pad]
    )

    # Advisory cost hint so XLA schedules surrounding ops around this call.
    flops_per_row = 2 * ((x_dim + c_dim) * h1_dim + h1_dim * h2_dim
                         + h2_dim * 2 * z_dim + (z_dim + c_dim) * h2_dim
                         + h2_dim * h1_dim + h1_dim * x_dim)
    weight_bytes = sum(int(w.size) * w.dtype.itemsize for w in weights)
    bytes_accessed = int(
        Bp * (x_dim * x.dtype.itemsize + ce.shape[1] * 4 + x_dim * 2 + mlvs_pad * 4)
        + weight_bytes)
    cost = pl.CostEstimate(flops=int(Bp * flops_per_row),
                           transcendentals=int(Bp * (x_dim + z_dim)),
                           bytes_accessed=bytes_accessed)

    out, mlvs = pl.pallas_call(
        _cvae_kernel,
        out_shape=out_shapes,
        grid_spec=pltpu.PrefetchScalarGridSpec(
            num_scalar_prefetch=0,
            grid=grid,
            in_specs=in_specs,
            out_specs=out_specs,
        ),
        compiler_params=pltpu.CompilerParams(
            dimension_semantics=("parallel",),     # v7x 2-TC shard; no-op v5e/v6e
            vmem_limit_bytes=32 * 1024 * 1024,     # > v5e's 16 MiB default, << v7x's 64 MiB
        ),
        cost_estimate=cost,
    )(x, ce, *weights)

    outputs = out[:B]                              # bf16 (value already bf16-limited)
    mu = mlvs[:B, :z_dim]
    log_var = mlvs[:B, z_dim:2 * z_dim]
    sample = mlvs[:B, 2 * z_dim:3 * z_dim]
    return outputs, mu, log_var, sample


# ----------------------------------------------------------------------------
# Parameter construction (synthetic, deterministic) + pure-JAX reference
# ----------------------------------------------------------------------------

def init_params(key, x_dim, h_dim1, h_dim2, z_dim, c_dim):
    """PyTorch-layer-shaped params; weights stored [in, out], f32."""
    def linear(key, fan_in, fan_out):
        kw, kb = jax.random.split(key)
        bound = 1.0 / jnp.sqrt(fan_in)
        w = jax.random.uniform(kw, (fan_in, fan_out), jnp.float32, -bound, bound)
        b = jax.random.uniform(kb, (1, fan_out), jnp.float32, -bound, bound)
        return w, b

    keys = jax.random.split(key, 7)
    return {
        "fc1": linear(keys[0], x_dim + c_dim, h_dim1),
        "fc2": linear(keys[1], h_dim1, h_dim2),
        "fc_mu": linear(keys[2], h_dim2, z_dim),
        "fc_log_var": linear(keys[3], h_dim2, z_dim),
        "fc4": linear(keys[4], z_dim + c_dim, h_dim2),
        "fc5": linear(keys[5], h_dim2, h_dim1),
        "fc6": linear(keys[6], h_dim1, x_dim),
    }


def prepare_params(raw, *, x_dim, z_dim):
    """Split fc1/fc4 by input, fuse mu/log_var heads, cast weights to bf16."""
    bf16, f32 = jnp.bfloat16, jnp.float32
    w1, b1 = raw["fc1"]
    w2, b2 = raw["fc2"]
    wmu, bmu = raw["fc_mu"]
    wlv, blv = raw["fc_log_var"]
    w4, b4 = raw["fc4"]
    w5, b5 = raw["fc5"]
    w6, b6 = raw["fc6"]
    return {
        "w1x": w1[:x_dim].astype(bf16), "w1c": w1[x_dim:].astype(bf16),
        "b1": b1.astype(f32),
        "w2": w2.astype(bf16), "b2": b2.astype(f32),
        "wmulv": jnp.concatenate([wmu, wlv], axis=1).astype(bf16),
        "bmulv": jnp.concatenate([bmu, blv], axis=1).astype(f32),
        "w4z": w4[:z_dim].astype(bf16), "w4c": w4[z_dim:].astype(bf16),
        "b4": b4.astype(f32),
        "w5": w5.astype(bf16), "b5": b5.astype(f32),
        "w6": w6.astype(bf16), "b6": b6.astype(f32),
    }


def reference_forward(x, c, eps, params):
    """Pure-JAX reference using the same bf16 operands / f32 accumulation."""
    bf16, f32 = jnp.bfloat16, jnp.float32
    x = x.reshape(-1, 784).astype(bf16)
    cb = c.astype(bf16)
    z_dim = eps.shape[1]

    def dot(a, w):
        return jnp.dot(a, w, preferred_element_type=f32)

    h1 = jax.nn.relu(dot(x, params["w1x"]) + dot(cb, params["w1c"])
                     + params["b1"]).astype(bf16)
    h2 = jax.nn.relu(dot(h1, params["w2"]) + params["b2"]).astype(bf16)
    mulv = dot(h2, params["wmulv"]) + params["bmulv"]
    mu, log_var = mulv[:, :z_dim], mulv[:, z_dim:]
    sample = eps * jnp.exp(0.5 * log_var) + mu
    d1 = jax.nn.relu(dot(sample.astype(bf16), params["w4z"])
                     + dot(cb, params["w4c"]) + params["b4"]).astype(bf16)
    d2 = jax.nn.relu(dot(d1, params["w5"]) + params["b5"]).astype(bf16)
    out = jax.nn.sigmoid(dot(d2, params["w6"]) + params["b6"]).astype(bf16)
    return out, mu, log_var, sample


if __name__ == "__main__":
    # x_dim is forced to 784 by `x.view(-1, 784)` in the PyTorch forward.
    x_dim, h_dim1, h_dim2, z_dim, c_dim = 784, 64, 32, 8, 16
    batch = 256  # small; exercises a 2-step batch grid (TM capped to 128)

    key = jax.random.PRNGKey(0)
    k_params, k_x, k_c, k_eps = jax.random.split(key, 4)

    raw_params = init_params(k_params, x_dim, h_dim1, h_dim2, z_dim, c_dim)
    params = prepare_params(raw_params, x_dim=x_dim, z_dim=z_dim)

    # MNIST-like NCHW image input; forward flattens it to [B, 784].
    x = jax.random.normal(k_x, (batch, 1, 28, 28), jnp.float32)
    c = jax.random.normal(k_c, (batch, c_dim), jnp.float32)   # condition vector
    # TODO(synk): torch.randn_like draws eps inside the module; here it is
    # drawn deterministically outside the kernel and passed in.
    eps = jax.random.normal(k_eps, (batch, z_dim), jnp.float32)

    outputs, mu, log_var, sample = jax.block_until_ready(
        cvae_mlp_forward(x, c, eps, params)
    )

    ref = reference_forward(x, c, eps, params)
    names = ("outputs", "mu", "log_var", "sample")
    for name, got, want in zip(names, (outputs, mu, log_var, sample), ref):
        assert got.shape == want.shape, (name, got.shape, want.shape)
        assert got.dtype == want.dtype, (name, got.dtype, want.dtype)
        assert jnp.allclose(got.astype(jnp.float32), want.astype(jnp.float32),
                            atol=2e-2, rtol=2e-2), name

    print("KERNEL_OK")
</pallas_src>

<mosaic_0001>
module attributes {stable_mosaic.version = 11 : i64} {
  func.func @_cvae_kernel(%arg0: i32, %arg1: memref<128x784xf32, #tpu.memory_space<vmem>>, %arg2: memref<128x24xf32, #tpu.memory_space<vmem>>, %arg3: memref<784x64xbf16, #tpu.memory_space<vmem>>, %arg4: memref<16x64xbf16, #tpu.memory_space<vmem>>, %arg5: memref<1x64xf32, #tpu.memory_space<vmem>>, %arg6: memref<64x32xbf16, #tpu.memory_space<vmem>>, %arg7: memref<1x32xf32, #tpu.memory_space<vmem>>, %arg8: memref<32x16xbf16, #tpu.memory_space<vmem>>, %arg9: memref<1x16xf32, #tpu.memory_space<vmem>>, %arg10: memref<8x32xbf16, #tpu.memory_space<vmem>>, %arg11: memref<16x32xbf16, #tpu.memory_space<vmem>>, %arg12: memref<1x32xf32, #tpu.memory_space<vmem>>, %arg13: memref<32x64xbf16, #tpu.memory_space<vmem>>, %arg14: memref<1x64xf32, #tpu.memory_space<vmem>>, %arg15: memref<64x784xbf16, #tpu.memory_space<vmem>>, %arg16: memref<1x784xf32, #tpu.memory_space<vmem>>, %arg17: memref<128x784xbf16, #tpu.memory_space<vmem>>, %arg18: memref<128x128xf32, #tpu.memory_space<vmem>>) attributes {dimension_semantics = [#tpu.dimension_semantics<parallel>], iteration_bounds = array<i64: 2>, scalar_prefetch = 0 : i64, scratch_operands = 0 : i64, tpu.core_type = #tpu.core_type<tc>, window_params = [{transform_indices = @transform_0, window_bounds = array<i64: 128, 784>}, {transform_indices = @transform_1, window_bounds = array<i64: 128, 24>}, {pipeline_mode = #tpu.pipeline_mode<synchronous>, transform_indices = @transform_2, window_bounds = array<i64: 784, 64>}, {pipeline_mode = #tpu.pipeline_mode<synchronous>, transform_indices = @transform_3, window_bounds = array<i64: 16, 64>}, {pipeline_mode = #tpu.pipeline_mode<synchronous>, transform_indices = @transform_4, window_bounds = array<i64: 1, 64>}, {pipeline_mode = #tpu.pipeline_mode<synchronous>, transform_indices = @transform_5, window_bounds = array<i64: 64, 32>}, {pipeline_mode = #tpu.pipeline_mode<synchronous>, transform_indices = @transform_6, window_bounds = array<i64: 1, 32>}, {pipeline_mode = #tpu.pipeline_mode<synchronous>, transform_indices = @transform_7, window_bounds = array<i64: 32, 16>}, {pipeline_mode = #tpu.pipeline_mode<synchronous>, transform_indices = @transform_8, window_bounds = array<i64: 1, 16>}, {pipeline_mode = #tpu.pipeline_mode<synchronous>, transform_indices = @transform_9, window_bounds = array<i64: 8, 32>}, {pipeline_mode = #tpu.pipeline_mode<synchronous>, transform_indices = @transform_10, window_bounds = array<i64: 16, 32>}, {pipeline_mode = #tpu.pipeline_mode<synchronous>, transform_indices = @transform_11, window_bounds = array<i64: 1, 32>}, {pipeline_mode = #tpu.pipeline_mode<synchronous>, transform_indices = @transform_12, window_bounds = array<i64: 32, 64>}, {pipeline_mode = #tpu.pipeline_mode<synchronous>, transform_indices = @transform_13, window_bounds = array<i64: 1, 64>}, {pipeline_mode = #tpu.pipeline_mode<synchronous>, transform_indices = @transform_14, window_bounds = array<i64: 64, 784>}, {pipeline_mode = #tpu.pipeline_mode<synchronous>, transform_indices = @transform_15, window_bounds = array<i64: 1, 784>}, {transform_indices = @transform_16, window_bounds = array<i64: 128, 784>}, {transform_indices = @transform_17, window_bounds = array<i64: 128, 128>}]} {
    %c0 = arith.constant 0 : index
    %c0_0 = arith.constant 0 : index
    %0 = vector.load %arg1[%c0, %c0_0] : memref<128x784xf32, #tpu.memory_space<vmem>>, vector<128x784xf32>
    %1 = arith.truncf %0 : vector<128x784xf32> to vector<128x784xbf16>
    %c0_1 = arith.constant 0 : index
    %c0_2 = arith.constant 0 : index
    %2 = vector.load %arg2[%c0_1, %c0_2] : memref<128x24xf32, #tpu.memory_space<vmem>>, vector<128x24xf32>
    %3 = vector.extract_strided_slice %2 {offsets = [0, 0], sizes = [128, 16], strides = [1, 1]} : vector<128x24xf32> to vector<128x16xf32>
    %4 = arith.truncf %3 : vector<128x16xf32> to vector<128x16xbf16>
    %5 = vector.extract_strided_slice %2 {offsets = [0, 16], sizes = [128, 8], strides = [1, 1]} : vector<128x24xf32> to vector<128x8xf32>
    %c0_3 = arith.constant 0 : index
    %c0_4 = arith.constant 0 : index
    %6 = vector.load %arg3[%c0_3, %c0_4] : memref<784x64xbf16, #tpu.memory_space<vmem>>, vector<784x64xbf16>
    %cst = arith.constant dense<0.000000e+00> : vector<128x64xf32>
    %7 = tpu.matmul %1, %6, %cst {dimension_numbers = #tpu.dot_dimension_numbers<[1], [0], [0], [1], [0, 0, 1, 1], [], []>} : vector<128x784xbf16>, vector<784x64xbf16>, vector<128x64xf32> -> vector<128x64xf32>
    %c0_5 = arith.constant 0 : index
    %c0_6 = arith.constant 0 : index
    %8 = vector.load %arg4[%c0_5, %c0_6] : memref<16x64xbf16, #tpu.memory_space<vmem>>, vector<16x64xbf16>
    %cst_7 = arith.constant dense<0.000000e+00> : vector<128x64xf32>
    %9 = tpu.matmul %4, %8, %cst_7 {dimension_numbers = #tpu.dot_dimension_numbers<[1], [0], [0], [1], [0, 0, 1, 1], [], []>} : vector<128x16xbf16>, vector<16x64xbf16>, vector<128x64xf32> -> vector<128x64xf32>
    %10 = arith.addf %7, %9 : vector<128x64xf32>
    %c0_8 = arith.constant 0 : index
    %c0_9 = arith.constant 0 : index
    %11 = vector.load %arg5[%c0_8, %c0_9] : memref<1x64xf32, #tpu.memory_space<vmem>>, vector<1x64xf32>
    %12 = vector.broadcast %11 : vector<1x64xf32> to vector<128x64xf32>
    %13 = arith.addf %10, %12 : vector<128x64xf32>
    %cst_10 = arith.constant 0.000000e+00 : f32
    %14 = vector.broadcast %cst_10 : f32 to vector<128x64xf32>
    %15 = arith.maximumf %13, %14 : vector<128x64xf32>
    %16 = arith.truncf %15 : vector<128x64xf32> to vector<128x64xbf16>
    %c0_11 = arith.constant 0 : index
    %c0_12 = arith.constant 0 : index
    %17 = vector.load %arg6[%c0_11, %c0_12] : memref<64x32xbf16, #tpu.memory_space<vmem>>, vector<64x32xbf16>
    %cst_13 = arith.constant dense<0.000000e+00> : vector<128x32xf32>
    %18 = tpu.matmul %16, %17, %cst_13 {dimension_numbers = #tpu.dot_dimension_numbers<[1], [0], [0], [1], [0, 0, 1, 1], [], []>} : vector<128x64xbf16>, vector<64x32xbf16>, vector<128x32xf32> -> vector<128x32xf32>
    %c0_14 = arith.constant 0 : index
    %c0_15 = arith.constant 0 : index
    %19 = vector.load %arg7[%c0_14, %c0_15] : memref<1x32xf32, #tpu.memory_space<vmem>>, vector<1x32xf32>
    %20 = vector.broadcast %19 : vector<1x32xf32> to vector<128x32xf32>
    %21 = arith.addf %18, %20 : vector<128x32xf32>
    %cst_16 = arith.constant 0.000000e+00 : f32
    %22 = vector.broadcast %cst_16 : f32 to vector<128x32xf32>
    %23 = arith.maximumf %21, %22 : vector<128x32xf32>
    %24 = arith.truncf %23 : vector<128x32xf32> to vector<128x32xbf16>
    %c0_17 = arith.constant 0 : index
    %c0_18 = arith.constant 0 : index
    %25 = vector.load %arg8[%c0_17, %c0_18] : memref<32x16xbf16, #tpu.memory_space<vmem>>, vector<32x16xbf16>
    %cst_19 = arith.constant dense<0.000000e+00> : vector<128x16xf32>
    %26 = tpu.matmul %24, %25, %cst_19 {dimension_numbers = #tpu.dot_dimension_numbers<[1], [0], [0], [1], [0, 0, 1, 1], [], []>} : vector<128x32xbf16>, vector<32x16xbf16>, vector<128x16xf32> -> vector<128x16xf32>
    %c0_20 = arith.constant 0 : index
    %c0_21 = arith.constant 0 : index
    %27 = vector.load %arg9[%c0_20, %c0_21] : memref<1x16xf32, #tpu.memory_space<vmem>>, vector<1x16xf32>
    %28 = vector.broadcast %27 : vector<1x16xf32> to vector<128x16xf32>
    %29 = arith.addf %26, %28 : vector<128x16xf32>
    %30 = vector.extract_strided_slice %29 {offsets = [0, 0], sizes = [128, 8], strides = [1, 1]} : vector<128x16xf32> to vector<128x8xf32>
    %31 = vector.extract_strided_slice %29 {offsets = [0, 8], sizes = [128, 8], strides = [1, 1]} : vector<128x16xf32> to vector<128x8xf32>
    %cst_22 = arith.constant 5.000000e-01 : f32
    %32 = vector.broadcast %cst_22 : f32 to vector<128x8xf32>
    %33 = arith.mulf %32, %31 : vector<128x8xf32>
    %34 = math.exp %33 : vector<128x8xf32>
    %35 = arith.mulf %5, %34 : vector<128x8xf32>
    %36 = arith.addf %35, %30 : vector<128x8xf32>
    %37 = arith.truncf %36 : vector<128x8xf32> to vector<128x8xbf16>
    %c0_23 = arith.constant 0 : index
    %c0_24 = arith.constant 0 : index
    %38 = vector.load %arg10[%c0_23, %c0_24] : memref<8x32xbf16, #tpu.memory_space<vmem>>, vector<8x32xbf16>
    %cst_25 = arith.constant dense<0.000000e+00> : vector<128x32xf32>
    %39 = tpu.matmul %37, %38, %cst_25 {dimension_numbers = #tpu.dot_dimension_numbers<[1], [0], [0], [1], [0, 0, 1, 1], [], []>} : vector<128x8xbf16>, vector<8x32xbf16>, vector<128x32xf32> -> vector<128x32xf32>
    %c0_26 = arith.constant 0 : index
    %c0_27 = arith.constant 0 : index
    %40 = vector.load %arg11[%c0_26, %c0_27] : memref<16x32xbf16, #tpu.memory_space<vmem>>, vector<16x32xbf16>
    %cst_28 = arith.constant dense<0.000000e+00> : vector<128x32xf32>
    %41 = tpu.matmul %4, %40, %cst_28 {dimension_numbers = #tpu.dot_dimension_numbers<[1], [0], [0], [1], [0, 0, 1, 1], [], []>} : vector<128x16xbf16>, vector<16x32xbf16>, vector<128x32xf32> -> vector<128x32xf32>
    %42 = arith.addf %39, %41 : vector<128x32xf32>
    %c0_29 = arith.constant 0 : index
    %c0_30 = arith.constant 0 : index
    %43 = vector.load %arg12[%c0_29, %c0_30] : memref<1x32xf32, #tpu.memory_space<vmem>>, vector<1x32xf32>
    %44 = vector.broadcast %43 : vector<1x32xf32> to vector<128x32xf32>
    %45 = arith.addf %42, %44 : vector<128x32xf32>
    %cst_31 = arith.constant 0.000000e+00 : f32
    %46 = vector.broadcast %cst_31 : f32 to vector<128x32xf32>
    %47 = arith.maximumf %45, %46 : vector<128x32xf32>
    %48 = arith.truncf %47 : vector<128x32xf32> to vector<128x32xbf16>
    %c0_32 = arith.constant 0 : index
    %c0_33 = arith.constant 0 : index
    %49 = vector.load %arg13[%c0_32, %c0_33] : memref<32x64xbf16, #tpu.memory_space<vmem>>, vector<32x64xbf16>
    %cst_34 = arith.constant dense<0.000000e+00> : vector<128x64xf32>
    %50 = tpu.matmul %48, %49, %cst_34 {dimension_numbers = #tpu.dot_dimension_numbers<[1], [0], [0], [1], [0, 0, 1, 1], [], []>} : vector<128x32xbf16>, vector<32x64xbf16>, vector<128x64xf32> -> vector<128x64xf32>
    %c0_35 = arith.constant 0 : index
    %c0_36 = arith.constant 0 : index
    %51 = vector.load %arg14[%c0_35, %c0_36] : memref<1x64xf32, #tpu.memory_space<vmem>>, vector<1x64xf32>
    %52 = vector.broadcast %51 : vector<1x64xf32> to vector<128x64xf32>
    %53 = arith.addf %50, %52 : vector<128x64xf32>
    %cst_37 = arith.constant 0.000000e+00 : f32
    %54 = vector.broadcast %cst_37 : f32 to vector<128x64xf32>
    %55 = arith.maximumf %53, %54 : vector<128x64xf32>
    %56 = arith.truncf %55 : vector<128x64xf32> to vector<128x64xbf16>
    %c0_38 = arith.constant 0 : index
    %c0_39 = arith.constant 0 : index
    %57 = vector.load %arg15[%c0_38, %c0_39] : memref<64x784xbf16, #tpu.memory_space<vmem>>, vector<64x784xbf16>
    %cst_40 = arith.constant dense<0.000000e+00> : vector<128x784xf32>
    %58 = tpu.matmul %56, %57, %cst_40 {dimension_numbers = #tpu.dot_dimension_numbers<[1], [0], [0], [1], [0, 0, 1, 1], [], []>} : vector<128x64xbf16>, vector<64x784xbf16>, vector<128x784xf32> -> vector<128x784xf32>
    %c0_41 = arith.constant 0 : index
    %c0_42 = arith.constant 0 : index
    %59 = vector.load %arg16[%c0_41, %c0_42] : memref<1x784xf32, #tpu.memory_space<vmem>>, vector<1x784xf32>
    %60 = vector.broadcast %59 : vector<1x784xf32> to vector<128x784xf32>
    %61 = arith.addf %58, %60 : vector<128x784xf32>
    %cst_43 = arith.constant 0.000000e+00 : f32
    %62 = vector.broadcast %cst_43 : f32 to vector<128x784xf32>
    %63 = arith.subf %62, %61 : vector<128x784xf32>
    %64 = math.exp %63 : vector<128x784xf32>
    %cst_44 = arith.constant 1.000000e+00 : f32
    %65 = vector.broadcast %cst_44 : f32 to vector<128x784xf32>
    %66 = arith.addf %65, %64 : vector<128x784xf32>
    %67 = tpu.reciprocal %66 {approx = true} : vector<128x784xf32> -> vector<128x784xf32>
    %68 = arith.truncf %67 : vector<128x784xf32> to vector<128x784xbf16>
    %c0_45 = arith.constant 0 : index
    %c0_46 = arith.constant 0 : index
    %69 = vector.load %arg17[%c0_45, %c0_46] : memref<128x784xbf16, #tpu.memory_space<vmem>>, vector<128x784xbf16>
    tpu.vector_store %arg17[%c0_45, %c0_46], %68 {strides = array<i32>} : memref<128x784xbf16, #tpu.memory_space<vmem>>, vector<128x784xbf16>,
    %c0_47 = arith.constant 0 : index
    %c0_48 = arith.constant 0 : index
    %70 = vector.load %arg18[%c0_47, %c0_48] : memref<128x128xf32, #tpu.memory_space<vmem>>, vector<128x16xf32>
    tpu.vector_store %arg18[%c0_47, %c0_48], %29 {strides = array<i32>} : memref<128x128xf32, #tpu.memory_space<vmem>>, vector<128x16xf32>,
    %c0_49 = arith.constant 0 : index
    %c16 = arith.constant 16 : index
    %71 = vector.load %arg18[%c0_49, %c16] : memref<128x128xf32, #tpu.memory_space<vmem>>, vector<128x8xf32>
    tpu.vector_store %arg18[%c0_49, %c16], %36 {strides = array<i32>} : memref<128x128xf32, #tpu.memory_space<vmem>>, vector<128x8xf32>,
    return
  }
  func.func @transform_0(%arg0: i32) -> (i32, i32) {
    %c0_i32 = arith.constant 0 : i32
    %c0_i32_0 = arith.constant 0 : i32
    return %arg0, %c0_i32 : i32, i32
  }
  func.func @transform_1(%arg0: i32) -> (i32, i32) {
    %c0_i32 = arith.constant 0 : i32
    %c0_i32_0 = arith.constant 0 : i32
    return %arg0, %c0_i32 : i32, i32
  }
  func.func @transform_2(%arg0: i32) -> (i32, i32) {
    %c0_i32 = arith.constant 0 : i32
    %c0_i32_0 = arith.constant 0 : i32
    %c0_i32_1 = arith.constant 0 : i32
    return %c0_i32, %c0_i32_0 : i32, i32
  }
  func.func @transform_3(%arg0: i32) -> (i32, i32) {
    %c0_i32 = arith.constant 0 : i32
    %c0_i32_0 = arith.constant 0 : i32
    %c0_i32_1 = arith.constant 0 : i32
    return %c0_i32, %c0_i32_0 : i32, i32
  }
  func.func @transform_4(%arg0: i32) -> (i32, i32) {
    %c0_i32 = arith.constant 0 : i32
    %c0_i32_0 = arith.constant 0 : i32
    %c0_i32_1 = arith.constant 0 : i32
    return %c0_i32, %c0_i32_0 : i32, i32
  }
  func.func @transform_5(%arg0: i32) -> (i32, i32) {
    %c0_i32 = arith.constant 0 : i32
    %c0_i32_0 = arith.constant 0 : i32
    %c0_i32_1 = arith.constant 0 : i32
    return %c0_i32, %c0_i32_0 : i32, i32
  }
  func.func @transform_6(%arg0: i32) -> (i32, i32) {
    %c0_i32 = arith.constant 0 : i32
    %c0_i32_0 = arith.constant 0 : i32
    %c0_i32_1 = arith.constant 0 : i32
    return %c0_i32, %c0_i32_0 : i32, i32
  }
  func.func @transform_7(%arg0: i32) -> (i32, i32) {
    %c0_i32 = arith.constant 0 : i32
    %c0_i32_0 = arith.constant 0 : i32
    %c0_i32_1 = arith.constant 0 : i32
    return %c0_i32, %c0_i32_0 : i32, i32
  }
  func.func @transform_8(%arg0: i32) -> (i32, i32) {
    %c0_i32 = arith.constant 0 : i32
    %c0_i32_0 = arith.constant 0 : i32
    %c0_i32_1 = arith.constant 0 : i32
    return %c0_i32, %c0_i32_0 : i32, i32
  }
  func.func @transform_9(%arg0: i32) -> (i32, i32) {
    %c0_i32 = arith.constant 0 : i32
    %c0_i32_0 = arith.constant 0 : i32
    %c0_i32_1 = arith.constant 0 : i32
    return %c0_i32, %c0_i32_0 : i32, i32
  }
  func.func @transform_10(%arg0: i32) -> (i32, i32) {
    %c0_i32 = arith.constant 0 : i32
    %c0_i32_0 = arith.constant 0 : i32
    %c0_i32_1 = arith.constant 0 : i32
    return %c0_i32, %c0_i32_0 : i32, i32
  }
  func.func @transform_11(%arg0: i32) -> (i32, i32) {
    %c0_i32 = arith.constant 0 : i32
    %c0_i32_0 = arith.constant 0 : i32
    %c0_i32_1 = arith.constant 0 : i32
    return %c0_i32, %c0_i32_0 : i32, i32
  }
  func.func @transform_12(%arg0: i32) -> (i32, i32) {
    %c0_i32 = arith.constant 0 : i32
    %c0_i32_0 = arith.constant 0 : i32
    %c0_i32_1 = arith.constant 0 : i32
    return %c0_i32, %c0_i32_0 : i32, i32
  }
  func.func @transform_13(%arg0: i32) -> (i32, i32) {
    %c0_i32 = arith.constant 0 : i32
    %c0_i32_0 = arith.constant 0 : i32
    %c0_i32_1 = arith.constant 0 : i32
    return %c0_i32, %c0_i32_0 : i32, i32
  }
  func.func @transform_14(%arg0: i32) -> (i32, i32) {
    %c0_i32 = arith.constant 0 : i32
    %c0_i32_0 = arith.constant 0 : i32
    %c0_i32_1 = arith.constant 0 : i32
    return %c0_i32, %c0_i32_0 : i32, i32
  }
  func.func @transform_15(%arg0: i32) -> (i32, i32) {
    %c0_i32 = arith.constant 0 : i32
    %c0_i32_0 = arith.constant 0 : i32
    %c0_i32_1 = arith.constant 0 : i32
    return %c0_i32, %c0_i32_0 : i32, i32
  }
  func.func @transform_16(%arg0: i32) -> (i32, i32) {
    %c0_i32 = arith.constant 0 : i32
    %c0_i32_0 = arith.constant 0 : i32
    return %arg0, %c0_i32 : i32, i32
  }
  func.func @transform_17(%arg0: i32) -> (i32, i32) {
    %c0_i32 = arith.constant 0 : i32
    %c0_i32_0 = arith.constant 0 : i32
    return %arg0, %c0_i32 : i32, i32
  }
}

</mosaic_0001>

<bundles_post_ra>
// kernel: tpu_custom_call.1
= control target key start
LH: loop header
LB: loop body
LE: loop exit
PB: predicated region body
PF: predicated region fallthrough
CT: control target
= control target key end

     0   :  { %s6474_s0 = inlined_call_operand.vmem [shape: f32[256,784], index: 0, kind: input, shape index: {}]   ;;  %s6475_s1 = inlined_call_operand.vmem [shape: f32[256,24], index: 1, kind: input, shape index: {}]   ;;  %s6476_s2 = inlined_call_operand.vmem [shape: bf16[784,64], index: 2, kind: input, shape index: {}]   ;;  %s6477_s3 = inlined_call_operand.vmem [shape: bf16[16,64], index: 3, kind: input, shape index: {}]   ;;  %s6478_s4 = inlined_call_operand.vmem [shape: f32[1,64], index: 4, kind: input, shape index: {}]   ;;  %s6479_s5 = inlined_call_operand.vmem [shape: bf16[64,32], index: 5, kind: input, shape index: {}]   ;;  %s6480_s6 = inlined_call_operand.vmem [shape: f32[1,32], index: 6, kind: input, shape index: {}]   ;;  %s6481_s7 = inlined_call_operand.vmem [shape: bf16[32,16], index: 7, kind: input, shape index: {}]   ;;  %s6482_s8 = inlined_call_operand.vmem [shape: f32[1,16], index: 8, kind: input, shape index: {}]   ;;  %s6483_s9 = inlined_call_operand.vmem [shape: bf16[8,32], index: 9, kind: input, shape index: {}]   ;;  %s6484_s10 = inlined_call_operand.vmem [shape: bf16[16,32], index: 10, kind: input, shape index: {}]   ;;  %s6485_s11 = inlined_call_operand.vmem [shape: f32[1,32], index: 11, kind: input, shape index: {}]   ;;  %s6486_s12 = inlined_call_operand.vmem [shape: bf16[32,64], index: 12, kind: input, shape index: {}]   ;;  %s6487_s13 = inlined_call_operand.vmem [shape: f32[1,64], index: 13, kind: input, shape index: {}]   ;;  %s6488_s14 = inlined_call_operand.vmem [shape: bf16[64,784], index: 14, kind: input, shape index: {}]   ;;  %s6489_s15 = inlined_call_operand.vmem [shape: f32[1,784], index: 15, kind: input, shape index: {}]   ;;  %s6490_s16 = inlined_call_operand.vmem [shape: bf16[256,784], index: 16, kind: output, shape index: {0}]   ;;  %s6491_s17 = inlined_call_operand.hbm [shape: f32[256,128], index: 17, kind: output, shape index: {1}]  }
   0x1   :  { %6500 = sst [smem:[#allocation11_spill]] %s6474_s0 }
   0x2   :  { %6501 = sst [smem:[#allocation12_spill]] %s6475_s1 }
   0x3   :  { %6502 = sst [smem:[#allocation13_spill]] %s6477_s3 }
   0x4   :  { %23 = vsyncpa [#allocation3], 0 }
   0x5   :  { %25 = vsyncpa [#allocation3 + $0x1], 0  ;;  %s5110_s24 = smov 0   ;;  %s5112_s25 = smov 0  }
   0x6   :  { %s5114_s26 = smov 0   ;;  %s5116_s27 = smov 0  }
   0x7 LB: > { %6503 = sst [smem:[#allocation5_spill]] %s5002_s24  ;;  %s5131_s28 = sadd.s32 4294967295, %s5014_s27   ;;  %s5014_s27 = sphi %s5116_s27, %s6519_s27   ;;  %s5010_s26 = sphi %s5114_s26, %s6521_s26   ;;  %s5006_s25 = sphi %s5112_s25, %s6523_s25   ;;  %s5002_s24 = sphi %s5110_s24, %s6522_s24  }
   0x8   : > { %6504 = sst [smem:[#allocation6_spill]] %s5010_s26  ;;  %s3841_s29 = sadd.s32 4294967294, %s5014_s27  }
   0x9   : > { %6505 = sst [smem:[#allocation7_spill]] %s5014_s27  ;;  %s5135_s0 = sadd.s32 1, %s5014_s27  }
   0xa   : > { %6506 = sst [smem:[#allocation8_spill]] %s5135_s0  ;;  %s410_s30 = sadd.s32 1, %s5010_s26 }
   0xb   : > { %s407_s18 = ssub.s32 %s5014_s27, %s5135_s0  ;;  %p420_p0 = scmp.ne.s32.totalorder %s5010_s26, %s5006_s25 }
   0xc   : > { %p408_p1 = scmp.eq.s32.totalorder %s407_s18, 0  ;;  %p421_p2 = scmp.eq.s32.totalorder %s5131_s28, 1 }
   0xd   : > { %p426_p3 = scmp.ne.s32.totalorder %s5006_s25, %s5002_s24  ;;  %p427_p4 = scmp.eq.s32.totalorder %s3841_s29, 1 }
   0xe   : > { %s5146_s19 = scalar_select %p408_p1, %s5010_s26, %s410_s30  }
   0xf   : > { %p5148_p5 = por %p421_p2, %p420_p0  ;;  %p5152_p6 = por %p427_p4, %p426_p3 }
  0x10   : > { %6507 = sst [smem:[#allocation9_spill]] %s5146_s19  ;;  %p3844_p7 = scmp.ge.s32.totalorder %s5014_s27, 1 }
  0x11   : > { %s6509_s20 = scalar_select %p5152_p6, 1, 0 }
  0x12   : > { %p506_p8 = scmp.lt.s32.totalorder %s5014_s27, 3 }
  0x13   : > { %6510 = sst [smem:[#allocation10_spill]] %s6509_s20 }
  0x14   : > { %p507_p9 = pnand %p3844_p7, %p506_p8 }
  0x15   : > { %s3846_s19 = sshll.u32 (!%p507_p9), %s5131_s28, 4  ;;  %s6511_s3 = sld [smem:[#allocation13_spill]] (!%p507_p9) }
  0x16   : > { %510 = sbr.rel (%p507_p9) target bundleno = 1715 (0x6b3), region = 84  ;;  %p571_p10 = scmp.lt.s32.totalorder (!%p507_p9), %s3846_s19, 31 }
  0x17   : > { %s6512_s20 = sld [smem:[#allocation12_spill]] (!%p507_p9)  ;;  %s6499_s29 = sand.u32 (!%p507_p9), 1, %s5006_s25  }
  0x18   : > { %s6513_s24 = sld [smem:[#allocation11_spill]] (!%p507_p9)  ;;  %s5018_s21 = smov (!%p507_p9), 112  }
  0x19   : > { %s4972_s23 = scalar_lea.hbm (!%p507_p9), %s6491_s17, 256 }
  0x1b   : > { %v4324_v0 = vld [vmem:[%s6476_s2 + $0x38] sm:$0xff]  ;;  %v4366_v3 = vld [vmem:[%s6511_s3] sm:$0xff]  ;;  %v4323_v4 = vld [vmem:[%s6476_s2 + $0x30] sm:$0xff]  ;;  %s6525_s19 = smov (!%p571_p10, %s3846_s19), 31  ;;  %vm890_vm0 = vcmask 130048   ;;  %vm1705_vm1 = vcmask 523264  }
  0x1c   : > { %v4332_v1 = vld [vmem:[%s6476_s2 + $0x78] sm:$0xff]  ;;  %1282 = vmatpush.bf16.msra.mxu1 %v4324_v0  ;;  %v4331_v5 = vld [vmem:[%s6476_s2 + $0x70] sm:$0xff]  ;;  %922 = vmatpush.bf16.msra.mxu0 %v4366_v3  ;;  %s3849_s26 = sshll.u32 %s6525_s19, 3  ;;  %v4322_v7 = vld [vmem:[%s6476_s2 + $0x28] sm:$0xff]  ;;  %s4405_s27 = smul.u32 56, %s6525_s19  ;;  %vm1823_vm2 = vcmask 261120  }
  0x1d   : > { %v4340_v2 = vld [vmem:[%s6476_s2 + $0xb8] sm:$0xff]  ;;  %1331 = vmatpush.bf16.msra.mxu2 %v4332_v1  ;;  %v4339_v6 = vld [vmem:[%s6476_s2 + $0xb0] sm:$0xff]  ;;  %s5186_s18 = scalar_lea.vmem %s6512_s20, %s3849_s26  ;;  %v4330_v8 = vld [vmem:[%s6476_s2 + $0x68] sm:$0xff]  ;;  %s3845_s26 = sshll.u32 %s6499_s29, 7  ;;  %vm3698_vm3 = vcmask 195712   ;;  %vm2220_vm4 = vcmask 1043456  }
  0x1e   : > { %1380 = vmatpush.bf16.msra.mxu3 %v4340_v2  ;;  %v760_v9 = vld [vmem:[%s5186_s18] sm:$0xff]  ;;  %v761_v10 = vld [vmem:[%s5186_s18 + $0x8] sm:$0xff]  ;;  %v4348_v16 = vld [vmem:[%s6476_s2 + $0xf8] sm:$0xff]  ;;  %s5247_s22 = scalar_lea.vmem %s6513_s24, %s4405_s27  ;;  %s5642_s30 = scalar_lea.vmem [#allocation2], %s3845_s26  ;;  %vm2195_vm5 = vcmask 64512  }
  0x1f   : > { %v4338_v11 = vld [vmem:[%s6476_s2 + $0xa8] sm:$0xff]  ;;  %v5199_v12 = vpack.c.bf16 %v761_v10, %v760_v9  ;;  %v4321_v13 = vld [vmem:[%s6476_s2 + $0x20] sm:$0xff]  ;;  %v4320_v17 = vld [vmem:[%s6476_s2 + $0x18] sm:$0xff]  ;;  %s5016_s20 = smov 16   ;;  %s6498_s27 = smov 8  }
  0x20   : > { %1283 = vmatpush.bf16.msra.mxu1 %v4323_v4  ;;  %v4329_v14 = vld [vmem:[%s6476_s2 + $0x60] sm:$0xff]  ;;  %1429 = vmatpush.bf16.msrb.mxu0 %v4348_v16  ;;  %v4328_v18 = vld [vmem:[%s6476_s2 + $0x58] sm:$0xff]  ;;  %v4319_v20 = vld [vmem:[%s6476_s2 + $0x10] sm:$0xff]  ;;  %s4406_s3 = smul.u32 28, %s6525_s19  ;;  %s4404_s19 = sshll.u32 %s5131_s28, 7 }
  0x21   : > { %1332 = vmatpush.bf16.msra.mxu2 %v4331_v5  ;;  %3856 = vmatmul.msk.bf16.vlgmr.msra.gmra.mxu0 %vm890_vm0, %v5199_v12  ;;  %v4337_v15 = vld [vmem:[%s6476_s2 + $0xa0] sm:$0xff]  ;;  %v4336_v19 = vld [vmem:[%s6476_s2 + $0x98] sm:$0xff]  ;;  %v4327_v21 = vld [vmem:[%s6476_s2 + $0x50] sm:$0xff]  ;;  %s3737_s0 = scalar_lea.hbm %s6491_s17, %s4404_s19  ;;  %s6514_s28 = sand.u32 1, %s5006_s25  }
  0x22   : > { %1381 = vmatpush.bf16.msra.mxu3 %v4339_v6  ;;  %v4347_v22 = vld [vmem:[%s6476_s2 + $0xf0] sm:$0xff]  ;;  %v763_v25 = vld [vmem:[%s5186_s18 + $0x18] sm:$0xff]  ;;  %v4318_v27 = vld [vmem:[%s6476_s2 + $0x8] sm:$0xff] }
  0x23   : > { %v4335_v23 = vld [vmem:[%s6476_s2 + $0x90] sm:$0xff]  ;;  %v4326_v28 = vld [vmem:[%s6476_s2 + $0x48] sm:$0xff]  ;;  %v4317_v30 = vld [vmem:[%s6476_s2] sm:$0xff] }
  0x24   : > { %1284 = vmatpush.bf16.msra.mxu1 %v4322_v7  ;;  %v762_v24 = vld [vmem:[%s5186_s18 + $0x10] sm:$0xff]  ;;  %1430 = vmatpush.bf16.msrb.mxu0 %v4347_v22  ;;  %v4334_v29 = vld [vmem:[%s6476_s2 + $0x88] sm:$0xff]  ;;  %v4325_v31 = vld [vmem:[%s6476_s2 + $0x40] sm:$0xff] }
  0x25   : > { %1333 = vmatpush.bf16.msra.mxu2 %v4330_v8  ;;  %v5239_v26 = vpack.c.bf16 %v763_v25, %v762_v24  ;;  %v4333_v32 = vld [vmem:[%s6476_s2 + $0x80] sm:$0xff]  ;;  %v599_v34 = vld [vmem:[%s5247_s22 + $0x38] sm:$0xff]  ;;  %v593_v35 = vld [vmem:[%s5247_s22 + $0x8] sm:$0xff] }
  0x26   : > { %1382 = vmatpush.bf16.msra.mxu3 %v4338_v11  ;;  %v592_v33 = vld [vmem:[%s5247_s22] sm:$0xff]  ;;  %v594_v37 = vld [vmem:[%s5247_s22 + $0x10] sm:$0xff]  ;;  %v601_v38 = vld [vmem:[%s5247_s22 + $0x48] sm:$0xff] }
  0x27   : > { %v600_v36 = vld [vmem:[%s5247_s22 + $0x40] sm:$0xff]  ;;  %v4364_v39 = vld [vmem:[%s6476_s2 + $0x178] sm:$0xff]  ;;  %v704_v41 = vpack.c.bf16 %v599_v34, %v592_v33  ;;  %v706_v43 = vpack.c.bf16 %v601_v38, %v594_v37  ;;  %v4363_v45 = vld [vmem:[%s6476_s2 + $0x170] sm:$0xff] }
  0x28   : > { %1285 = vmatpush.bf16.msra.mxu1 %v4321_v13  ;;  %v4365_v40 = vld [vmem:[%s6476_s2 + $0x180] sm:$0xff]  ;;  %v705_v42 = vpack.c.bf16 %v600_v36, %v593_v35  ;;  %v4356_v44 = vld [vmem:[%s6476_s2 + $0x138] sm:$0xff]  ;;  %v4346_v46 = vld [vmem:[%s6476_s2 + $0xe8] sm:$0xff] }
  0x29   : > { %1334 = vmatpush.bf16.msra.mxu2 %v4329_v14  ;;  %v764_v47 = vld [vmem:[%s5186_s18 + $0x20] sm:$0xff]  ;;  %v765_v48 = vld [vmem:[%s5186_s18 + $0x28] sm:$0xff]  ;;  %v4355_v49 = vld [vmem:[%s6476_s2 + $0x130] sm:$0xff]  ;;  %1431 = vmatpush.bf16.msrb.mxu0 %v4346_v46 }
  0x2a   : > { %1383 = vmatpush.bf16.msra.mxu3 %v4337_v15  ;;  %v4362_v50 = vld [vmem:[%s6476_s2 + $0x168] sm:$0xff]  ;;  %v5295_v51 = vpack.c.bf16 %v765_v48, %v764_v47  ;;  %v606_v53 = vld [vmem:[%s5247_s22 + $0x70] sm:$0xff]  ;;  %v607_v55 = vld [vmem:[%s5247_s22 + $0x78] sm:$0xff] }
  0x2b   : > { %v4354_v52 = vld [vmem:[%s6476_s2 + $0x128] sm:$0xff]  ;;  %v614_v56 = vld [vmem:[%s5247_s22 + $0xb0] sm:$0xff]  ;;  %v608_v57 = vld [vmem:[%s5247_s22 + $0x80] sm:$0xff] }
  0x2c   : > { %1286 = vmatpush.bf16.msra.mxu1 %v4320_v17  ;;  %v613_v54 = vld [vmem:[%s5247_s22 + $0xa8] sm:$0xff]  ;;  %v615_v58 = vld [vmem:[%s5247_s22 + $0xb8] sm:$0xff]  ;;  %v712_v60 = vpack.c.bf16 %v614_v56, %v607_v55  ;;  %v4361_v62 = vld [vmem:[%s6476_s2 + $0x160] sm:$0xff] }
  0x2d   : > { %1335 = vmatpush.bf16.msra.mxu2 %v4328_v18  ;;  %v711_v59 = vpack.c.bf16 %v613_v54, %v606_v53  ;;  %v713_v61 = vpack.c.bf16 %v615_v58, %v608_v57  ;;  %v4345_v63 = vld [vmem:[%s6476_s2 + $0xe0] sm:$0xff]  ;;  %v766_v1 = vld [vmem:[%s5186_s18 + $0x30] sm:$0xff]  ;;  %v767_v2 = vld [vmem:[%s5186_s18 + $0x38] sm:$0xff] }
  0x2e   : > { %1384 = vmatpush.bf16.msra.mxu3 %v4336_v19  ;;  %v4353_v0 = vld [vmem:[%s6476_s2 + $0x120] sm:$0xff]  ;;  %1432 = vmatpush.bf16.msrb.mxu0 %v4345_v63  ;;  %v5319_v3 = vpack.c.bf16 %v767_v2, %v766_v1  ;;  %v627_v5 = vld [vmem:[%s5247_s22 + $0x118] sm:$0xff]  ;;  %v621_v6 = vld [vmem:[%s5247_s22 + $0xe8] sm:$0xff] }
  0x2f   : > { %v620_v4 = vld [vmem:[%s5247_s22 + $0xe0] sm:$0xff]  ;;  %v622_v8 = vld [vmem:[%s5247_s22 + $0xf0] sm:$0xff]  ;;  %v629_v9 = vld [vmem:[%s5247_s22 + $0x128] sm:$0xff] }
  0x30   : > { %1287 = vmatpush.bf16.msra.mxu1 %v4319_v20  ;;  %v628_v7 = vld [vmem:[%s5247_s22 + $0x120] sm:$0xff]  ;;  %v718_v10 = vpack.c.bf16 %v627_v5, %v620_v4  ;;  %v720_v13 = vpack.c.bf16 %v629_v9, %v622_v8  ;;  %v4360_v14 = vld [vmem:[%s6476_s2 + $0x158] sm:$0xff]  ;;  %v769_v18 = vld [vmem:[%s5186_s18 + $0x48] sm:$0xff] }
  0x31   : > { %1336 = vmatpush.bf16.msra.mxu2 %v4327_v21  ;;  %3857 = vmatmul.msk.bf16.gmra.mxu0 %vm890_vm0, %v5239_v26  ;;  %v719_v11 = vpack.c.bf16 %v628_v7, %v621_v6  ;;  %v4344_v15 = vld [vmem:[%s6476_s2 + $0xd8] sm:$0xff]  ;;  %v768_v17 = vld [vmem:[%s5186_s18 + $0x40] sm:$0xff]  ;;  %v634_v20 = vld [vmem:[%s5247_s22 + $0x150] sm:$0xff] }
  0x32   : > { %1385 = vmatpush.bf16.msra.mxu3 %v4335_v23  ;;  %v4352_v16 = vld [vmem:[%s6476_s2 + $0x118] sm:$0xff]  ;;  %1433 = vmatpush.bf16.msrb.mxu0 %v4344_v15  ;;  %v5340_v19 = vpack.c.bf16 %v769_v18, %v768_v17  ;;  %v641_v21 = vld [vmem:[%s5247_s22 + $0x188] sm:$0xff]  ;;  %v642_v23 = vld [vmem:[%s5247_s22 + $0x190] sm:$0xff] }
  0x33   : > { %v635_v22 = vld [vmem:[%s5247_s22 + $0x158] sm:$0xff]  ;;  %v636_v24 = vld [vmem:[%s5247_s22 + $0x160] sm:$0xff]  ;;  %v770_v33 = vld [vmem:[%s5186_s18 + $0x50] sm:$0xff] }
  0x34   : > { %1288 = vmatpush.bf16.msra.mxu1 %v4318_v27  ;;  %v643_v25 = vld [vmem:[%s5247_s22 + $0x198] sm:$0xff]  ;;  %v725_v27 = vpack.c.bf16 %v641_v21, %v634_v20  ;;  %v648_v36 = vld [vmem:[%s5247_s22 + $0x1c0] sm:$0xff]  ;;  %v649_v38 = vld [vmem:[%s5247_s22 + $0x1c8] sm:$0xff] }
  0x35   : > { %1337 = vmatpush.bf16.msra.mxu2 %v4326_v28  ;;  %v726_v28 = vpack.c.bf16 %v642_v23, %v635_v22  ;;  %v771_v34 = vld [vmem:[%s5186_s18 + $0x58] sm:$0xff]  ;;  %v4342_v46 = vld [vmem:[%s6476_s2 + $0xc8] sm:$0xff]  ;;  %v772_v48 = vld [vmem:[%s5186_s18 + $0x60] sm:$0xff] }
  0x36   : > { %1386 = vmatpush.bf16.msra.mxu3 %v4334_v29  ;;  %v727_v29 = vpack.c.bf16 %v643_v25, %v636_v24  ;;  %v5361_v35 = vpack.c.bf16 %v771_v34, %v770_v33  ;;  %v655_v37 = vld [vmem:[%s5247_s22 + $0x1f8] sm:$0xff]  ;;  %v4350_v47 = vld [vmem:[%s6476_s2 + $0x108] sm:$0xff]  ;;  %v662_v53 = vld [vmem:[%s5247_s22 + $0x230] sm:$0xff] }
  0x37   : > { %v669_v54 = vld [vmem:[%s5247_s22 + $0x268] sm:$0xff]  ;;  %v663_v55 = vld [vmem:[%s5247_s22 + $0x238] sm:$0xff]  ;;  %v670_v56 = vld [vmem:[%s5247_s22 + $0x270] sm:$0xff] }
  0x38   : > { %1289 = vmatpush.bf16.msra.mxu1 %v4317_v30  ;;  %v4359_v30 = vld [vmem:[%s6476_s2 + $0x150] sm:$0xff]  ;;  %v664_v57 = vld [vmem:[%s5247_s22 + $0x240] sm:$0xff]  ;;  %v671_v58 = vld [vmem:[%s5247_s22 + $0x278] sm:$0xff] }
  0x39   : > { %1338 = vmatpush.bf16.msra.mxu2 %v4325_v31  ;;  %v4343_v31 = vld [vmem:[%s6476_s2 + $0xd0] sm:$0xff]  ;;  %v4349_v63 = vld [vmem:[%s6476_s2 + $0x100] sm:$0xff]  ;;  %v775_v1 = vld [vmem:[%s5186_s18 + $0x78] sm:$0xff] }
  0x3a   : > { %1387 = vmatpush.bf16.msra.mxu3 %v4333_v32  ;;  %v4351_v32 = vld [vmem:[%s6476_s2 + $0x110] sm:$0xff]  ;;  %1434 = vmatpush.bf16.msrb.mxu0 %v4343_v31  ;;  %v676_v4 = vld [vmem:[%s5247_s22 + $0x2a0] sm:$0xff]  ;;  %v683_v5 = vld [vmem:[%s5247_s22 + $0x2d8] sm:$0xff] }
  0x3b   : > { %1290 = vmatmul.bf16.vlgmr.msra.gmra.mxu1 %v704_v41  ;;  %v657_v41 = vld [vmem:[%s5247_s22 + $0x208] sm:$0xff]  ;;  %v684_v7 = vld [vmem:[%s5247_s22 + $0x2e0] sm:$0xff]  ;;  %v678_v8 = vld [vmem:[%s5247_s22 + $0x2b0] sm:$0xff] }
  0x3c   : > { %1339 = vmatmul.bf16.vlgmr.msra.gmra.mxu2 %v705_v42  ;;  %1478 = vmatpush.bf16.msrb.mxu1 %v4356_v44  ;;  %v732_v42 = vpack.c.bf16 %v655_v37, %v648_v36  ;;  %v677_v6 = vld [vmem:[%s5247_s22 + $0x2a8] sm:$0xff]  ;;  %v602_v15 = vld [vmem:[%s5247_s22 + $0x50] sm:$0xff]  ;;  %v691_v21 = vld [vmem:[%s5247_s22 + $0x318] sm:$0xff] }
  0x3d   : > { %1527 = vmatpush.bf16.msrb.mxu2 %v4364_v39  ;;  %1388 = vmatmul.bf16.vlgmr.msra.gmra.mxu3 %v706_v43  ;;  %v656_v39 = vld [vmem:[%s5247_s22 + $0x200] sm:$0xff]  ;;  %v685_v9 = vld [vmem:[%s5247_s22 + $0x2e8] sm:$0xff]  ;;  %v690_v18 = vld [vmem:[%s5247_s22 + $0x310] sm:$0xff] }
  0x3e   : > { %1583 = vmatpush.bf16.msrb.mxu3 %v4365_v40  ;;  %v650_v40 = vld [vmem:[%s5247_s22 + $0x1d0] sm:$0xff]  ;;  %v733_v43 = vpack.c.bf16 %v656_v39, %v649_v38  ;;  %1435 = vmatpush.bf16.msrb.mxu0 %v4342_v46  ;;  %v697_v20 = vld [vmem:[%s5247_s22 + $0x348] sm:$0xff]  ;;  %v692_v23 = vld [vmem:[%s5247_s22 + $0x320] sm:$0xff] }
  0x3f   : > { %v734_v44 = vpack.c.bf16 %v657_v41, %v650_v40  ;;  %v698_v22 = vld [vmem:[%s5247_s22 + $0x350] sm:$0xff]  ;;  %v699_v24 = vld [vmem:[%s5247_s22 + $0x358] sm:$0xff]  ;;  %v753_v25 = vpack.c.bf16 %v697_v20, %v690_v18  ;;  %v616_v31 = vld [vmem:[%s5247_s22 + $0xc0] sm:$0xff] }
  0x40   : > { %1479 = vmatpush.bf16.msrb.mxu1 %v4355_v49  ;;  %v773_v49 = vld [vmem:[%s5186_s18 + $0x68] sm:$0xff]  ;;  %v4370_v34 = vld [vmem:[%s6479_s5 + $0x18] sm:$0xff]  ;;  %v596_v36 = vld [vmem:[%s5247_s22 + $0x20] sm:$0xff] }
  0x41   : > { %1528 = vmatpush.bf16.msrb.mxu2 %v4363_v45  ;;  %3858 = vmatmul.msk.bf16.gmra.mxu0 %vm890_vm0, %v5295_v51  ;;  %v4358_v45 = vld [vmem:[%s6476_s2 + $0x148] sm:$0xff]  ;;  %v603_v37 = vld [vmem:[%s5247_s22 + $0x58] sm:$0xff]  ;;  %v604_v39 = vld [vmem:[%s5247_s22 + $0x60] sm:$0xff] }
  0x42   : > { %v597_v38 = vld [vmem:[%s5247_s22 + $0x28] sm:$0xff]  ;;  %v598_v40 = vld [vmem:[%s5247_s22 + $0x30] sm:$0xff] }
  0x43   : > { %v605_v41 = vld [vmem:[%s5247_s22 + $0x68] sm:$0xff] }
  0x44   : > { %1480 = vmatpush.bf16.msrb.mxu1 %v4354_v52  ;;  %v4341_v52 = vld [vmem:[%s6476_s2 + $0xc0] sm:$0xff] }
  0x45   : > { %1529 = vmatpush.bf16.msrb.mxu2 %v4362_v50  ;;  %v5382_v50 = vpack.c.bf16 %v773_v49, %v772_v48  ;;  %1436 = vmatpush.bf16.msrb.mxu0 %v4341_v52  ;;  %v623_v48 = vld [vmem:[%s5247_s22 + $0xf8] sm:$0xff]  ;;  %v630_v49 = vld [vmem:[%s5247_s22 + $0x130] sm:$0xff] }
  0x48   : > { %1481 = vmatpush.bf16.msrb.mxu1 %v4353_v0  ;;  %v774_v0 = vld [vmem:[%s5186_s18 + $0x70] sm:$0xff] }
  0x49   : > { %1530 = vmatpush.bf16.msrb.mxu2 %v4361_v62  ;;  %v4357_v62 = vld [vmem:[%s6476_s2 + $0x140] sm:$0xff]  ;;  %v5403_v2 = vpack.c.bf16 %v775_v1, %v774_v0  ;;  %1734 = vmatpush.bf16.msra.mxu0 %v4370_v34  ;;  %v619_v1 = vld [vmem:[%s5247_s22 + $0xd8] sm:$0xff] }
  0x4a   : > { %v612_v0 = vld [vmem:[%s5247_s22 + $0xa0] sm:$0xff] }
  0x4b   : > { %1295 = vmatmul.bf16.gmra.mxu1 %v711_v59  ;;  %v739_v59 = vpack.c.bf16 %v669_v54, %v662_v53 }
  0x4c   : > { %1344 = vmatmul.bf16.gmra.mxu2 %v712_v60  ;;  %1482 = vmatpush.bf16.msrb.mxu1 %v4352_v16  ;;  %v740_v60 = vpack.c.bf16 %v670_v56, %v663_v55  ;;  %v721_v56 = vpack.c.bf16 %v630_v49, %v623_v48 }
  0x4d   : > { %1393 = vmatmul.bf16.gmra.mxu3 %v713_v61  ;;  %1531 = vmatpush.bf16.msrb.mxu2 %v4360_v14  ;;  %v741_v61 = vpack.c.bf16 %v671_v58, %v664_v57  ;;  %v595_v14 = vld [vmem:[%s5247_s22 + $0x18] sm:$0xff] }
  0x4e   : > { %v707_v16 = vpack.c.bf16 %v602_v15, %v595_v14  ;;  %v637_v15 = vld [vmem:[%s5247_s22 + $0x168] sm:$0xff] }
  0x50   : > { %1483 = vmatpush.bf16.msrb.mxu1 %v4351_v32 }
  0x51   : > { %3859 = vmatmul.msk.bf16.gmra.mxu0 %vm890_vm0, %v5319_v3  ;;  %1532 = vmatpush.bf16.msrb.mxu2 %v4359_v30  ;;  %v609_v30 = vld [vmem:[%s5247_s22 + $0x88] sm:$0xff] }
  0x52   : > { %v714_v32 = vpack.c.bf16 %v616_v31, %v609_v30  ;;  %v625_v30 = vld [vmem:[%s5247_s22 + $0x108] sm:$0xff]  ;;  %v632_v31 = vld [vmem:[%s5247_s22 + $0x140] sm:$0xff] }
  0x54   : > { %1484 = vmatpush.bf16.msrb.mxu1 %v4350_v47 }
  0x55   : > { %1533 = vmatpush.bf16.msrb.mxu2 %v4358_v45  ;;  %v710_v45 = vpack.c.bf16 %v605_v41, %v598_v40  ;;  %v723_v40 = vpack.c.bf16 %v632_v31, %v625_v30  ;;  %v653_v30 = vld [vmem:[%s5247_s22 + $0x1e8] sm:$0xff]  ;;  %v660_v31 = vld [vmem:[%s5247_s22 + $0x220] sm:$0xff] }
  0x58   : > { %1485 = vmatpush.bf16.msrb.mxu1 %v4349_v63  ;;  %v618_v63 = vld [vmem:[%s5247_s22 + $0xd0] sm:$0xff] }
  0x59   : > { %1534 = vmatpush.bf16.msrb.mxu2 %v4357_v62  ;;  %v611_v62 = vld [vmem:[%s5247_s22 + $0x98] sm:$0xff] }
  0x5b   : > { %1300 = vmatmul.bf16.gmra.mxu1 %v718_v10  ;;  %v746_v10 = vpack.c.bf16 %v683_v5, %v676_v4 }
  0x5c   : > { %1349 = vmatmul.bf16.gmra.mxu2 %v719_v11  ;;  %v747_v11 = vpack.c.bf16 %v684_v7, %v677_v6 }
  0x5d   : > { %1398 = vmatmul.bf16.gmra.mxu3 %v720_v13  ;;  %v748_v13 = vpack.c.bf16 %v685_v9, %v678_v8  ;;  %v716_v9 = vpack.c.bf16 %v618_v63, %v611_v62  ;;  %v640_v62 = vld [vmem:[%s5247_s22 + $0x180] sm:$0xff]  ;;  %v647_v63 = vld [vmem:[%s5247_s22 + $0x1b8] sm:$0xff] }
  0x61   : > { %3860 = vmatmul.msk.bf16.gmra.mxu0 %vm890_vm0, %v5340_v19 }
  0x6b   : > { %1305 = vmatmul.bf16.gmra.mxu1 %v725_v27  ;;  %v754_v27 = vpack.c.bf16 %v698_v22, %v691_v21 }
  0x6c   : > { %1354 = vmatmul.bf16.gmra.mxu2 %v726_v28  ;;  %v755_v28 = vpack.c.bf16 %v699_v24, %v692_v23 }
  0x6d   : > { %1403 = vmatmul.bf16.gmra.mxu3 %v727_v29 }
  0x71   : > { %3861 = vmatmul.msk.bf16.gmra.mxu0 %vm890_vm0, %v5361_v35 }
  0x7b   : > { %1310 = vmatmul.bf16.gmra.mxu1 %v732_v42  ;;  %v708_v42 = vpack.c.bf16 %v603_v37, %v596_v36 }
  0x7c   : > { %1359 = vmatmul.bf16.gmra.mxu2 %v733_v43 }
  0x7d   : > { %1408 = vmatmul.bf16.gmra.mxu3 %v734_v44  ;;  %v709_v44 = vpack.c.bf16 %v604_v39, %v597_v38 }
  0x81   : > { %3862 = vmatmul.msk.bf16.gmra.mxu0 %vm890_vm0, %v5382_v50 }
  0x8b   : > { %1315 = vmatmul.bf16.gmra.mxu1 %v739_v59 }
  0x8c   : > { %1364 = vmatmul.bf16.gmra.mxu2 %v740_v60  ;;  %v610_v60 = vld [vmem:[%s5247_s22 + $0x90] sm:$0xff] }
  0x8d   : > { %1413 = vmatmul.bf16.gmra.mxu3 %v741_v61  ;;  %v617_v61 = vld [vmem:[%s5247_s22 + $0xc8] sm:$0xff] }
  0x8e   : > { %v715_v6 = vpack.c.bf16 %v617_v61, %v610_v60  ;;  %v639_v60 = vld [vmem:[%s5247_s22 + $0x178] sm:$0xff]  ;;  %v646_v61 = vld [vmem:[%s5247_s22 + $0x1b0] sm:$0xff] }
  0x91   : > { %3863 = vmatmul.msk.bf16.gmra.mxu0 %vm890_vm0, %v5403_v2 }
  0x9b   : > { %1320 = vmatmul.bf16.gmra.mxu1 %v746_v10  ;;  %v717_v10 = vpack.c.bf16 %v619_v1, %v612_v0 }
  0x9c   : > { %1369 = vmatmul.bf16.gmra.mxu2 %v747_v11 }
  0x9d   : > { %1418 = vmatmul.bf16.gmra.mxu3 %v748_v13 }
  0x9e   : > { %v924_v17 = vpop.f32.mrf.mxu0 }
  0xa1   : > { %1437 = vmatmul.bf16.vlgmr.msrb.gmra.mxu0 %v707_v16  ;;  %v644_v16 = vld [vmem:[%s5247_s22 + $0x1a0] sm:$0xff] }
  0xa2   : > { %v728_v22 = vpack.c.bf16 %v644_v16, %v637_v15  ;;  %v672_v15 = vld [vmem:[%s5247_s22 + $0x280] sm:$0xff] }
  0xa6   : > { %v926_v29 = vpop.f32.mrf.mxu0 }
  0xab   : > { %1325 = vmatmul.bf16.gmra.mxu1 %v753_v25 }
  0xac   : > { %1374 = vmatmul.bf16.gmra.mxu2 %v754_v27  ;;  %v4369_v27 = vld [vmem:[%s6479_s5 + $0x10] sm:$0xff] }
  0xad   : > { %1423 = vmatmul.bf16.gmra.mxu3 %v755_v28  ;;  %v624_v28 = vld [vmem:[%s5247_s22 + $0x100] sm:$0xff]  ;;  %1735 = vmatpush.bf16.msra.mxu0 %v4369_v27  ;;  %v4368_v27 = vld [vmem:[%s6479_s5 + $0x8] sm:$0xff] }
  0xae   : > { %v929_v33 = vpop.f32.mrf.mxu0 }
  0xb1   : > { %1442 = vmatmul.bf16.gmra.mxu0 %v714_v32  ;;  %v626_v32 = vld [vmem:[%s5247_s22 + $0x110] sm:$0xff] }
  0xb2   : > { %1736 = vmatpush.bf16.msra.mxu0 %v4368_v27 }
  0xb6   : > { %v931_v46 = vpop.f32.mrf.mxu0 }
  0xb8   : > { %v1291_v43 = vpop.f32.mrf.mxu1 }
  0xb9   : > { %v1292_v47 = vadd.f32 %v1291_v43, %v924_v17 }
  0xbb   : > { %1486 = vmatmul.bf16.vlgmr.msrb.gmra.mxu1 %v708_v42 }
  0xbc   : > { %1535 = vmatmul.bf16.vlgmr.msrb.gmra.mxu2 %v709_v44 }
  0xbd   : > { %4060 = vmatmul.msk.bf16.vlgmr.msrb.gmra.mxu3 %vm890_vm0, %v710_v45  ;;  %v651_v45 = vld [vmem:[%s5247_s22 + $0x1d8] sm:$0xff] }
  0xbe   : > { %v934_v57 = vpop.f32.mrf.mxu0 }
  0xbf   : > { %v1340_v52 = vpop.f32.mrf.mxu2 }
  0xc0   : > { %v1389_v53 = vpop.f32.mrf.mxu3  ;;  %v1341_v54 = vadd.f32 %v1340_v52, %v1292_v47  ;;  %v1293_v55 = vpop.f32.mrf.mxu1 }
  0xc1   : > { %v1294_v58 = vadd.f32 %v1293_v55, %v926_v29  ;;  %1447 = vmatmul.bf16.gmra.mxu0 %v721_v56  ;;  %v631_v29 = vld [vmem:[%s5247_s22 + $0x138] sm:$0xff] }
  0xc2   : > { %v5435_v59 = vadd.f32 %v1389_v53, %v1341_v54  ;;  %v722_v37 = vpack.c.bf16 %v631_v29, %v624_v28  ;;  %v652_v28 = vld [vmem:[%s5247_s22 + $0x1e0] sm:$0xff]  ;;  %v659_v29 = vld [vmem:[%s5247_s22 + $0x218] sm:$0xff] }
  0xc6   : > { %v936_v11 = vpop.f32.mrf.mxu0 }
  0xc7   : > { %v1342_v4 = vpop.f32.mrf.mxu2 }
  0xc8   : > { %v1391_v5 = vpop.f32.mrf.mxu3  ;;  %v1343_v7 = vadd.f32 %v1342_v4, %v1294_v58  ;;  %v1296_v8 = vpop.f32.mrf.mxu1  ;;  %v645_v58 = vld [vmem:[%s5247_s22 + $0x1a8] sm:$0xff] }
  0xc9   : > { %v1297_v13 = vadd.f32 %v1296_v8, %v929_v33  ;;  %v633_v33 = vld [vmem:[%s5247_s22 + $0x148] sm:$0xff]  ;;  %v731_v8 = vpack.c.bf16 %v647_v63, %v640_v62  ;;  %v674_v62 = vld [vmem:[%s5247_s22 + $0x290] sm:$0xff]  ;;  %v668_v63 = vld [vmem:[%s5247_s22 + $0x260] sm:$0xff] }
  0xca   : > { %v5443_v14 = vadd.f32 %v1391_v5, %v1343_v7  ;;  %v724_v41 = vpack.c.bf16 %v633_v33, %v626_v32  ;;  %v730_v7 = vpack.c.bf16 %v646_v61, %v639_v60  ;;  %v654_v32 = vld [vmem:[%s5247_s22 + $0x1f0] sm:$0xff]  ;;  %v661_v33 = vld [vmem:[%s5247_s22 + $0x228] sm:$0xff]  ;;  %v667_v61 = vld [vmem:[%s5247_s22 + $0x258] sm:$0xff] }
  0xcb   : > { %1491 = vmatmul.bf16.gmra.mxu1 %v715_v6  ;;  %v673_v60 = vld [vmem:[%s5247_s22 + $0x288] sm:$0xff] }
  0xcc   : > { %1540 = vmatmul.bf16.gmra.mxu2 %v716_v9 }
  0xcd   : > { %4061 = vmatmul.msk.bf16.gmra.mxu3 %vm890_vm0, %v717_v10 }
  0xce   : > { %v939_v23 = vpop.f32.mrf.mxu0 }
  0xcf   : > { %v1345_v17 = vpop.f32.mrf.mxu2 }
  0xd0   : > { %v1394_v18 = vpop.f32.mrf.mxu3  ;;  %v1346_v20 = vadd.f32 %v1345_v17, %v1297_v13  ;;  %v1298_v21 = vpop.f32.mrf.mxu1  ;;  %v665_v13 = vld [vmem:[%s5247_s22 + $0x248] sm:$0xff] }
  0xd1   : > { %v1299_v24 = vadd.f32 %v1298_v21, %v931_v46  ;;  %1452 = vmatmul.bf16.gmra.mxu0 %v728_v22  ;;  %v658_v46 = vld [vmem:[%s5247_s22 + $0x210] sm:$0xff]  ;;  %v742_v21 = vpack.c.bf16 %v672_v15, %v665_v13  ;;  %v693_v15 = vld [vmem:[%s5247_s22 + $0x328] sm:$0xff] }
  0xd2   : > { %v5448_v25 = vadd.f32 %v1394_v18, %v1346_v20  ;;  %v735_v53 = vpack.c.bf16 %v658_v46, %v651_v45  ;;  %v679_v46 = vld [vmem:[%s5247_s22 + $0x2b8] sm:$0xff] }
  0xd6   : > { %v941_v42 = vpop.f32.mrf.mxu0 }
  0xd7   : > { %v1347_v34 = vpop.f32.mrf.mxu2 }
  0xd8   : > { %v1396_v36 = vpop.f32.mrf.mxu3  ;;  %v1348_v38 = vadd.f32 %v1347_v34, %v1299_v24  ;;  %v1301_v39 = vpop.f32.mrf.mxu1 }
  0xd9   : > { %v1302_v43 = vadd.f32 %v1301_v39, %v934_v57  ;;  %v638_v57 = vld [vmem:[%s5247_s22 + $0x170] sm:$0xff] }
  0xda   : > { %v5459_v44 = vadd.f32 %v1396_v36, %v1348_v38  ;;  %v729_v4 = vpack.c.bf16 %v645_v58, %v638_v57  ;;  %v666_v58 = vld [vmem:[%s5247_s22 + $0x250] sm:$0xff] }
  0xdb   : > { %1496 = vmatmul.bf16.gmra.mxu1 %v722_v37  ;;  %v736_v37 = vpack.c.bf16 %v659_v29, %v652_v28  ;;  %v680_v29 = vld [vmem:[%s5247_s22 + $0x2c0] sm:$0xff] }
  0xdc   : > { %1545 = vmatmul.bf16.gmra.mxu2 %v723_v40  ;;  %v737_v40 = vpack.c.bf16 %v660_v31, %v653_v30  ;;  %v687_v30 = vld [vmem:[%s5247_s22 + $0x2f8] sm:$0xff]  ;;  %v681_v31 = vld [vmem:[%s5247_s22 + $0x2c8] sm:$0xff] }
  0xdd   : > { %4062 = vmatmul.msk.bf16.gmra.mxu3 %vm890_vm0, %v724_v41  ;;  %v738_v41 = vpack.c.bf16 %v661_v33, %v654_v32  ;;  %v688_v32 = vld [vmem:[%s5247_s22 + $0x300] sm:$0xff]  ;;  %v682_v33 = vld [vmem:[%s5247_s22 + $0x2d0] sm:$0xff] }
  0xde   : > { %v944_v54 = vpop.f32.mrf.mxu0 }
  0xdf   : > { %v1350_v47 = vpop.f32.mrf.mxu2 }
  0xe0   : > { %v1399_v48 = vpop.f32.mrf.mxu3  ;;  %v1351_v49 = vadd.f32 %v1350_v47, %v1302_v43  ;;  %v1303_v52 = vpop.f32.mrf.mxu1  ;;  %v686_v47 = vld [vmem:[%s5247_s22 + $0x2f0] sm:$0xff] }
  0xe1   : > { %v1304_v55 = vadd.f32 %v1303_v52, %v936_v11  ;;  %1457 = vmatmul.bf16.gmra.mxu0 %v735_v53 }
  0xe2   : > { %v5464_v56 = vadd.f32 %v1399_v48, %v1351_v49 }
  0xe6   : > { %v5472_v9 = vpop.f32.mrf.mxu0 }
  0xe7   : > { %v1352_v0 = vpop.f32.mrf.mxu2 }
  0xe8   : > { %v1401_v1 = vpop.f32.mrf.mxu3  ;;  %v1353_v5 = vadd.f32 %v1352_v0, %v1304_v55  ;;  %v1306_v6 = vpop.f32.mrf.mxu1  ;;  %v749_v55 = vpack.c.bf16 %v686_v47, %v679_v46  ;;  %v675_v0 = vld [vmem:[%s5247_s22 + $0x298] sm:$0xff] }
  0xe9   : > { %v1307_v10 = vadd.f32 %v1306_v6, %v939_v23 }
  0xea   : > { %v5474_v11 = vadd.f32 %v1401_v1, %v1353_v5  ;;  %v743_v5 = vpack.c.bf16 %v673_v60, %v666_v58  ;;  %v694_v60 = vld [vmem:[%s5247_s22 + $0x330] sm:$0xff] }
  0xeb   : > { %1501 = vmatmul.bf16.gmra.mxu1 %v729_v4 }
  0xec   : > { %1550 = vmatmul.bf16.gmra.mxu2 %v730_v7  ;;  %v744_v7 = vpack.c.bf16 %v674_v62, %v667_v61  ;;  %v701_v61 = vld [vmem:[%s5247_s22 + $0x368] sm:$0xff]  ;;  %v695_v62 = vld [vmem:[%s5247_s22 + $0x338] sm:$0xff] }
  0xed   : > { %4063 = vmatmul.msk.bf16.gmra.mxu3 %vm890_vm0, %v731_v8  ;;  %v745_v8 = vpack.c.bf16 %v675_v0, %v668_v63  ;;  %v702_v63 = vld [vmem:[%s5247_s22 + $0x370] sm:$0xff]  ;;  %v696_v0 = vld [vmem:[%s5247_s22 + $0x340] sm:$0xff] }
  0xee   : > { %v949_v22 = vpop.f32.mrf.mxu0 }
  0xef   : > { %v1355_v16 = vpop.f32.mrf.mxu2 }
  0xf0   : > { %v1404_v17 = vpop.f32.mrf.mxu3  ;;  %v1356_v18 = vadd.f32 %v1355_v16, %v1307_v10  ;;  %v1308_v20 = vpop.f32.mrf.mxu1  ;;  %v700_v16 = vld [vmem:[%s5247_s22 + $0x360] sm:$0xff] }
  0xf1   : > { %v1309_v23 = vadd.f32 %v1308_v20, %v941_v42  ;;  %1462 = vmatmul.bf16.gmra.mxu0 %v742_v21 }
  0xf2   : > { %v5479_v24 = vadd.f32 %v1404_v17, %v1356_v18 }
  0xf6   : > { %v5490_v42 = vpop.f32.mrf.mxu0 }
  0xf7   : > { %v1357_v34 = vpop.f32.mrf.mxu2 }
  0xf8   : > { %v1406_v36 = vpop.f32.mrf.mxu3  ;;  %v1358_v38 = vadd.f32 %v1357_v34, %v1309_v23  ;;  %v1311_v39 = vpop.f32.mrf.mxu1  ;;  %v756_v23 = vpack.c.bf16 %v700_v16, %v693_v15  ;;  %v689_v34 = vld [vmem:[%s5247_s22 + $0x308] sm:$0xff] }
  0xf9   : > { %v1312_v43 = vadd.f32 %v1311_v39, %v944_v54 }
  0xfa   : > { %v5492_v45 = vadd.f32 %v1406_v36, %v1358_v38  ;;  %v750_v38 = vpack.c.bf16 %v687_v30, %v680_v29 }
  0xfb   : > { %1506 = vmatmul.bf16.gmra.mxu1 %v736_v37 }
  0xfc   : > { %1555 = vmatmul.bf16.gmra.mxu2 %v737_v40  ;;  %v751_v40 = vpack.c.bf16 %v688_v32, %v681_v31 }
  0xfd   : > { %4064 = vmatmul.msk.bf16.gmra.mxu3 %vm890_vm0, %v738_v41  ;;  %v752_v41 = vpack.c.bf16 %v689_v34, %v682_v33 }
  0xfe   : > { %v954_v54 = vpop.f32.mrf.mxu0 }
  0xff   : > { %v1360_v48 = vpop.f32.mrf.mxu2 }
 0x100   : > { %v1409_v49 = vpop.f32.mrf.mxu3  ;;  %v1361_v52 = vadd.f32 %v1360_v48, %v1312_v43  ;;  %v5497_v53 = vpop.f32.mrf.mxu1 }
 0x101   : > { %1467 = vmatmul.bf16.gmra.mxu0 %v749_v55 }
 0x102   : > { %v5499_v57 = vadd.f32 %v1409_v49, %v1361_v52 }
 0x106   : > { %v5511_v10 = vpop.f32.mrf.mxu0 }
 0x107   : > { %v5507_v1 = vpop.f32.mrf.mxu2 }
 0x108   : > { %v5509_v4 = vpop.f32.mrf.mxu3  ;;  %v1316_v6 = vpop.f32.mrf.mxu1 }
 0x109   : > { %v1317_v13 = vadd.f32 %v1316_v6, %v949_v22  ;;  %v4367_v22 = vld [vmem:[%s6479_s5] sm:$0xff] }
 0x10a   : > { %1737 = vmatpush.bf16.msra.mxu0 %v4367_v22 }
 0x10b   : > { %1511 = vmatmul.bf16.gmra.mxu1 %v743_v5  ;;  %v703_v5 = vld [vmem:[%s5247_s22 + $0x378] sm:$0xff]  ;;  %s3738_s22 = sshll.u32 %s5642_s30, 4  ;;  %s3739_s22 = int_to_ptr.vmem [resolvable:$true] %s3738_s22 }
 0x10c   : > { %1560 = vmatmul.bf16.gmra.mxu2 %v744_v7  ;;  %v757_v7 = vpack.c.bf16 %v701_v61, %v694_v60  ;;  %v759_v15 = vpack.c.bf16 %v703_v5, %v696_v0  ;;  %v5567_v61 = vld [vmem:[%s6478_s4] ss:$0 sm:$0xff] }
 0x10d   : > { %4065 = vmatmul.msk.bf16.gmra.mxu3 %vm890_vm0, %v745_v8 }
 0x10e   : > { %v959_v27 = vpop.f32.mrf.mxu0 }
 0x10f   : > { %v1365_v17 = vpop.f32.mrf.mxu2 }
 0x110   : > { %v1414_v18 = vpop.f32.mrf.mxu3  ;;  %v1366_v20 = vadd.f32 %v1365_v17, %v1317_v13  ;;  %v5516_v21 = vpop.f32.mrf.mxu1  ;;  %v758_v13 = vpack.c.bf16 %v702_v63, %v695_v62 }
 0x111   : > { %1472 = vmatmul.bf16.gmra.mxu0 %v756_v23 }
 0x112   : > { %v5518_v28 = vadd.f32 %v1414_v18, %v1366_v20 }
 0x116   : > { %v5533_v43 = vpop.f32.mrf.mxu0 }
 0x117   : > { %v5529_v36 = vpop.f32.mrf.mxu2 }
 0x118   : > { %v5531_v37 = vpop.f32.mrf.mxu3  ;;  %v1321_v39 = vpop.f32.mrf.mxu1 }
 0x119   : > { %v1322_v46 = vadd.f32 %v1321_v39, %v954_v54 }
 0x11b   : > { %1516 = vmatmul.bf16.gmra.mxu1 %v750_v38 }
 0x11c   : > { %1565 = vmatmul.bf16.gmra.mxu2 %v751_v40 }
 0x11d   : > { %4066 = vmatmul.msk.bf16.gmra.mxu3 %vm890_vm0, %v752_v41 }
 0x11e   : > { %v1438_v55 = vpop.f32.mrf.mxu0 }
 0x11f   : > { %v1370_v47 = vpop.f32.mrf.mxu2 }
 0x120   : > { %v1419_v48 = vpop.f32.mrf.mxu3  ;;  %v1371_v49 = vadd.f32 %v1370_v47, %v1322_v46  ;;  %v5536_v52 = vpop.f32.mrf.mxu1  ;;  %v4372_v46 = vld [vmem:[%s6481_s7 + $0x8] sm:$0xff] }
 0x121   : > { %1854 = vmatpush.bf16.msra.mxu1 %v4372_v46 }
 0x122   : > { %v5538_v58 = vadd.f32 %v1419_v48, %v1371_v49 }
 0x126   : > { %v1440_v17 = vpop.f32.mrf.mxu0 }
 0x127   : > { %v5546_v6 = vpop.f32.mrf.mxu2  ;;  %v1441_v49 = vadd.f32 %v1440_v17, %v5443_v14 }
 0x128   : > { %v5548_v54 = vpop.f32.mrf.mxu3  ;;  %v1326_v8 = vpop.f32.mrf.mxu1 }
 0x129   : > { %v1327_v16 = vadd.f32 %v1326_v8, %v959_v27  ;;  %v1439_v27 = vadd.f32 %v1438_v55, %v5435_v59 }
 0x12b   : > { %1521 = vmatmul.bf16.gmra.mxu1 %v757_v7 }
 0x12c   : > { %1570 = vmatmul.bf16.gmra.mxu2 %v758_v13 }
 0x12d   : > { %4067 = vmatmul.msk.bf16.gmra.mxu3 %vm890_vm0, %v759_v15 }
 0x12e   : > { %v1443_v29 = vpop.f32.mrf.mxu0 }
 0x12f   : > { %v1375_v18 = vpop.f32.mrf.mxu2  ;;  %v1444_v15 = vadd.f32 %v1443_v29, %v5448_v25 }
 0x130   : > { %v1424_v20 = vpop.f32.mrf.mxu3  ;;  %v1376_v23 = vadd.f32 %v1375_v18, %v1327_v16  ;;  %v5551_v22 = vpop.f32.mrf.mxu1 }
 0x132   : > { %v5553_v30 = vadd.f32 %v1424_v20, %v1376_v23 }
 0x136   : > { %v1445_v34 = vpop.f32.mrf.mxu0 }
 0x137   : > { %v5555_v31 = vpop.f32.mrf.mxu2 }
 0x138   : > { %v5557_v32 = vpop.f32.mrf.mxu3  ;;  %v1487_v33 = vpop.f32.mrf.mxu1 }
 0x139   : > { %v1488_v40 = vadd.f32 %v1487_v33, %v1439_v27 }
 0x13e   : > { %v1448_v48 = vpop.f32.mrf.mxu0 }
 0x13f   : > { %v1536_v38 = vpop.f32.mrf.mxu2 }
 0x140   : > { %v1585_v39 = vpop.f32.mrf.mxu3  ;;  %v1489_v41 = vpop.f32.mrf.mxu1  ;;  %v1537_v47 = vadd.f32 %v1536_v38, %v1488_v40  ;;  %v1446_v38 = vadd.f32 %v1445_v34, %v5459_v44 }
 0x141   : > { %v1490_v59 = vadd.f32 %v1489_v41, %v1441_v49 }
 0x142   : > { %v1586_v60 = vadd.f32 %v1585_v39, %v1537_v47 }
 0x144   : > { %v1629_v5 = vadd.f32 %v5567_v61, %v1586_v60 }
 0x146   : > { %v1450_v13 = vpop.f32.mrf.mxu0  ;;  %v1645_v14 = vmax.f32 %v1629_v5, 0.0 }
 0x147   : > { %v1538_v55 = vpop.f32.mrf.mxu2 }
 0x148   : > { %v1587_v62 = vpop.f32.mrf.mxu3  ;;  %v1539_v63 = vadd.f32 %v1538_v55, %v1490_v59  ;;  %v1492_v0 = vpop.f32.mrf.mxu1  ;;  %v1449_v55 = vadd.f32 %v1448_v48, %v5464_v56 }
 0x149   : > { %v1493_v23 = vadd.f32 %v1492_v0, %v1444_v15 }
 0x14a   : > { %v1588_v7 = vadd.f32 %v1587_v62, %v1539_v63 }
 0x14c   : > { %v1630_v8 = vadd.f32 %v5567_v61, %v1588_v7 }
 0x14e   : > { %v1646_v16 = vmax.f32 %v1630_v8, 0.0  ;;  %v1453_v39 = vpop.f32.mrf.mxu0 }
 0x14f   : > { %v1541_v17 = vpop.f32.mrf.mxu2 }
 0x150   : > { %v1590_v18 = vpop.f32.mrf.mxu3  ;;  %v1661_v20 = vpack.c.bf16 %v1646_v16, %v1645_v14  ;;  %v1494_v33 = vpop.f32.mrf.mxu1  ;;  %v1542_v27 = vadd.f32 %v1541_v17, %v1493_v23  ;;  %v1451_v14 = vadd.f32 %v1450_v13, %v5474_v11 }
 0x151   : > { %v1495_v40 = vadd.f32 %v1494_v33, %v1446_v38 }
 0x152   : > { %4084 = vmatmul.msk.bf16.vlgmr.msra.gmra.mxu0 %vm1705_vm1, %v1661_v20  ;;  %v1591_v41 = vadd.f32 %v1590_v18, %v1542_v27 }
 0x154   : > { %v1631_v29 = vadd.f32 %v5567_v61, %v1591_v41 }
 0x156   : > { %v1647_v62 = vmax.f32 %v1631_v29, 0.0  ;;  %v1455_v7 = vpop.f32.mrf.mxu0 }
 0x157   : > { %v1543_v46 = vpop.f32.mrf.mxu2 }
 0x158   : > { %v1592_v47 = vpop.f32.mrf.mxu3  ;;  %v1544_v49 = vadd.f32 %v1543_v46, %v1495_v40  ;;  %v1497_v25 = vpop.f32.mrf.mxu1  ;;  %v1454_v40 = vadd.f32 %v1453_v39, %v5479_v24 }
 0x159   : > { %v1498_v44 = vadd.f32 %v1497_v25, %v1449_v55 }
 0x15a   : > { %v1593_v60 = vadd.f32 %v1592_v47, %v1544_v49 }
 0x15c   : > { %v1632_v59 = vadd.f32 %v5567_v61, %v1593_v60  ;;  %v1456_v60 = vadd.f32 %v1455_v7, %v5492_v45 }
 0x15e   : > { %v1648_v63 = vmax.f32 %v1632_v59, 0.0  ;;  %v1458_v56 = vpop.f32.mrf.mxu0 }
 0x15f   : > { %v1546_v0 = vpop.f32.mrf.mxu2 }
 0x160   : > { %v1595_v5 = vpop.f32.mrf.mxu3  ;;  %v1662_v34 = vpack.c.bf16 %v1648_v63, %v1647_v62  ;;  %v1499_v8 = vpop.f32.mrf.mxu1  ;;  %v1547_v15 = vadd.f32 %v1546_v0, %v1498_v44 }
 0x161   : > { %v1500_v16 = vadd.f32 %v1499_v8, %v1451_v14  ;;  %v1459_v14 = vadd.f32 %v1458_v56, %v5499_v57 }
 0x162   : > { %4085 = vmatmul.msk.bf16.gmra.mxu0 %vm1705_vm1, %v1662_v34  ;;  %v1596_v17 = vadd.f32 %v1595_v5, %v1547_v15  ;;  %v1314_v34 = vadd.f32 %v5497_v53, %v5472_v9 }
 0x164   : > { %v1633_v48 = vadd.f32 %v5567_v61, %v1596_v17  ;;  %v1363_v15 = vadd.f32 %v5507_v1, %v1314_v34 }
 0x166   : > { %v1649_v41 = vmax.f32 %v1633_v48, 0.0  ;;  %v1460_v59 = vpop.f32.mrf.mxu0  ;;  %v4371_v48 = vld [vmem:[%s6481_s7] sm:$0xff]  ;;  %v1412_v9 = vadd.f32 %v5509_v4, %v1363_v15 }
 0x167   : > { %v1548_v18 = vpop.f32.mrf.mxu2  ;;  %1855 = vmatpush.bf16.msra.mxu1 %v4371_v48 }
 0x168   : > { %v1597_v20 = vpop.f32.mrf.mxu3  ;;  %v1549_v23 = vadd.f32 %v1548_v18, %v1500_v16  ;;  %v1502_v33 = vpop.f32.mrf.mxu1  ;;  %v1461_v1 = vadd.f32 %v1460_v59, %v1412_v9 }
 0x169   : > { %v1503_v25 = vadd.f32 %v1502_v33, %v1454_v40 }
 0x16a   : > { %v1598_v27 = vadd.f32 %v1597_v20, %v1549_v23 }
 0x16c   : > { %v1634_v38 = vadd.f32 %v5567_v61, %v1598_v27 }
 0x16e   : > { %v1650_v46 = vmax.f32 %v1634_v38, 0.0  ;;  %v1463_v45 = vpop.f32.mrf.mxu0 }
 0x16f   : > { %v1551_v47 = vpop.f32.mrf.mxu2 }
 0x170   : > { %v1600_v49 = vpop.f32.mrf.mxu3  ;;  %v1663_v11 = vpack.c.bf16 %v1650_v46, %v1649_v41  ;;  %v1504_v13 = vpop.f32.mrf.mxu1  ;;  %v1552_v29 = vadd.f32 %v1551_v47, %v1503_v25  ;;  %v1319_v25 = vadd.f32 %v5516_v21, %v5490_v42 }
 0x171   : > { %v1505_v55 = vadd.f32 %v1504_v13, %v1456_v60  ;;  %v1464_v13 = vadd.f32 %v1463_v45, %v5518_v28  ;;  %v1324_v45 = vadd.f32 %v5536_v52, %v5511_v10 }
 0x172   : > { %4086 = vmatmul.msk.bf16.gmra.mxu0 %vm1705_vm1, %v1663_v11  ;;  %v1601_v62 = vadd.f32 %v1600_v49, %v1552_v29  ;;  %v1368_v11 = vadd.f32 %v5529_v36, %v1319_v25 }
 0x174   : > { %v1635_v24 = vadd.f32 %v5567_v61, %v1601_v62 }
 0x176   : > { %v1651_v7 = vmax.f32 %v1635_v24, 0.0  ;;  %v1465_v40 = vpop.f32.mrf.mxu0 }
 0x177   : > { %v1553_v63 = vpop.f32.mrf.mxu2 }
 0x178   : > { %v1602_v0 = vpop.f32.mrf.mxu3  ;;  %v1554_v5 = vadd.f32 %v1553_v63, %v1505_v55  ;;  %v1507_v44 = vpop.f32.mrf.mxu1 }
 0x179   : > { %v1508_v20 = vadd.f32 %v1507_v44, %v1459_v14 }
 0x17a   : > { %v1603_v39 = vadd.f32 %v1602_v0, %v1554_v5  ;;  %v1417_v5 = vadd.f32 %v5531_v37, %v1368_v11 }
 0x17c   : > { %v1636_v8 = vadd.f32 %v5567_v61, %v1603_v39  ;;  %v1466_v42 = vadd.f32 %v1465_v40, %v1417_v5 }
 0x17e   : > { %v1652_v16 = vmax.f32 %v1636_v8, 0.0  ;;  %v1468_v44 = vpop.f32.mrf.mxu0 }
 0x17f   : > { %v1556_v17 = vpop.f32.mrf.mxu2 }
 0x180   : > { %v1605_v18 = vpop.f32.mrf.mxu3  ;;  %v1664_v23 = vpack.c.bf16 %v1652_v16, %v1651_v7  ;;  %v1509_v33 = vpop.f32.mrf.mxu1  ;;  %v1557_v53 = vadd.f32 %v1556_v17, %v1508_v20  ;;  %v1373_v16 = vadd.f32 %v5546_v6, %v1324_v45  ;;  %v1469_v17 = vadd.f32 %v1468_v44, %v5538_v58 }
 0x181   : > { %v1510_v57 = vadd.f32 %v1509_v33, %v1461_v1 }
 0x182   : > { %4087 = vmatmul.msk.bf16.gmra.mxu0 %vm1705_vm1, %v1664_v23  ;;  %v1606_v56 = vadd.f32 %v1605_v18, %v1557_v53  ;;  %v1422_v1 = vadd.f32 %v5548_v54, %v1373_v16 }
 0x184   : > { %v1637_v47 = vadd.f32 %v5567_v61, %v1606_v56 }
 0x186   : > { %v1653_v29 = vmax.f32 %v1637_v47, 0.0  ;;  %v1470_v7 = vpop.f32.mrf.mxu0  ;;  %v1329_v47 = vadd.f32 %v5551_v22, %v5533_v43 }
 0x187   : > { %v1558_v27 = vpop.f32.mrf.mxu2  ;;  %v1471_v10 = vadd.f32 %v1470_v7, %v1422_v1 }
 0x188   : > { %v1607_v38 = vpop.f32.mrf.mxu3  ;;  %v1559_v41 = vadd.f32 %v1558_v27, %v1510_v57  ;;  %v1512_v46 = vpop.f32.mrf.mxu1  ;;  %v1378_v54 = vadd.f32 %v5555_v31, %v1329_v47 }
 0x189   : > { %v1513_v62 = vadd.f32 %v1512_v46, %v1464_v13 }
 0x18a   : > { %v1608_v49 = vadd.f32 %v1607_v38, %v1559_v41 }
 0x18c   : > { %v1638_v4 = vadd.f32 %v5567_v61, %v1608_v49 }
 0x18e   : > { %v1654_v60 = vmax.f32 %v1638_v4, 0.0  ;;  %v1473_v52 = vpop.f32.mrf.mxu0 }
 0x18f   : > { %v1561_v59 = vpop.f32.mrf.mxu2  ;;  %v1474_v25 = vadd.f32 %v1473_v52, %v5553_v30 }
 0x190   : > { %v1610_v55 = vpop.f32.mrf.mxu3  ;;  %v1665_v63 = vpack.c.bf16 %v1654_v60, %v1653_v29  ;;  %v1514_v0 = vpop.f32.mrf.mxu1  ;;  %v1562_v24 = vadd.f32 %v1561_v59, %v1513_v62  ;;  %v1427_v62 = vadd.f32 %v5557_v32, %v1378_v54 }
 0x191   : > { %v1515_v21 = vadd.f32 %v1514_v0, %v1466_v42 }
 0x192   : > { %4088 = vmatmul.msk.bf16.gmra.mxu0 %vm1705_vm1, %v1665_v63  ;;  %v1611_v39 = vadd.f32 %v1610_v55, %v1562_v24 }
 0x194   : > { %v1639_v15 = vadd.f32 %v5567_v61, %v1611_v39 }
 0x196   : > { %v1655_v18 = vmax.f32 %v1639_v15, 0.0  ;;  %v1475_v55 = vpop.f32.mrf.mxu0 }
 0x197   : > { %v1563_v34 = vpop.f32.mrf.mxu2  ;;  %v1476_v43 = vadd.f32 %v1475_v55, %v1427_v62 }
 0x198   : > { %v1612_v36 = vpop.f32.mrf.mxu3  ;;  %v1564_v8 = vadd.f32 %v1563_v34, %v1515_v21  ;;  %v1517_v28 = vpop.f32.mrf.mxu1 }
 0x199   : > { %v1518_v48 = vadd.f32 %v1517_v28, %v1469_v17 }
 0x19a   : > { %v1613_v14 = vadd.f32 %v1612_v36, %v1564_v8  ;;  %v4451_v8 = vld [vmem:[%s6480_s6] ss:$0 sm:$0xff] }
 0x19c   : > { %v1640_v37 = vadd.f32 %v5567_v61, %v1613_v14 }
 0x19e   : > { %v1656_v20 = vmax.f32 %v1640_v37, 0.0 }
 0x19f   : > { %v1566_v23 = vpop.f32.mrf.mxu2 }
 0x1a0   : > { %v1615_v33 = vpop.f32.mrf.mxu3  ;;  %v1666_v9 = vpack.c.bf16 %v1656_v20, %v1655_v18  ;;  %v1519_v53 = vpop.f32.mrf.mxu1  ;;  %v1567_v57 = vadd.f32 %v1566_v23, %v1518_v48 }
 0x1a1   : > { %v1520_v56 = vadd.f32 %v1519_v53, %v1471_v10 }
 0x1a2   : > { %4089 = vmatmul.msk.bf16.gmra.mxu0 %vm1705_vm1, %v1666_v9  ;;  %v1616_v27 = vadd.f32 %v1615_v33, %v1567_v57 }
 0x1a4   : > { %v1641_v41 = vadd.f32 %v5567_v61, %v1616_v27 }
 0x1a6   : > { %v1657_v4 = vmax.f32 %v1641_v41, 0.0 }
 0x1a7   : > { %v1568_v38 = vpop.f32.mrf.mxu2 }
 0x1a8   : > { %v1617_v6 = vpop.f32.mrf.mxu3  ;;  %v1569_v40 = vadd.f32 %v1568_v38, %v1520_v56  ;;  %v1522_v58 = vpop.f32.mrf.mxu1 }
 0x1a9   : > { %v1523_v60 = vadd.f32 %v1522_v58, %v1474_v25 }
 0x1aa   : > { %v1618_v46 = vadd.f32 %v1617_v6, %v1569_v40 }
 0x1ac   : > { %v1642_v49 = vadd.f32 %v5567_v61, %v1618_v46 }
 0x1ae   : > { %v1658_v11 = vmax.f32 %v1642_v49, 0.0 }
 0x1af   : > { %v1571_v13 = vpop.f32.mrf.mxu2 }
 0x1b0   : > { %v1620_v29 = vpop.f32.mrf.mxu3  ;;  %v1667_v59 = vpack.c.bf16 %v1658_v11, %v1657_v4  ;;  %v1572_v63 = vadd.f32 %v1571_v13, %v1523_v60  ;;  %v1524_v0 = vpop.f32.mrf.mxu1 }
 0x1b1   : > { %v1525_v22 = vadd.f32 %v1524_v0, %v1476_v43 }
 0x1b2   : > { %4090 = vmatmul.msk.bf16.gmra.mxu0 %vm1705_vm1, %v1667_v59  ;;  %v1621_v5 = vadd.f32 %v1620_v29, %v1572_v63 }
 0x1b4   : > { %v1643_v30 = vadd.f32 %v5567_v61, %v1621_v5 }
 0x1b6   : > { %v1659_v39 = vmax.f32 %v1643_v30, 0.0 }
 0x1b7   : > { %v1573_v44 = vpop.f32.mrf.mxu2 }
 0x1b8   : > { %v1622_v31 = vpop.f32.mrf.mxu3  ;;  %v1574_v24 = vadd.f32 %v1573_v44, %v1525_v22 }
 0x1ba   : > { %v1623_v42 = vadd.f32 %v1622_v31, %v1574_v24 }
 0x1bc   : > { %v1644_v21 = vadd.f32 %v5567_v61, %v1623_v42 }
 0x1be   : > { %v1660_v34 = vmax.f32 %v1644_v21, 0.0 }
 0x1c0   : > { %v1668_v36 = vpack.c.bf16 %v1660_v34, %v1659_v39 }
 0x1c2   : > { %4091 = vmatmul.msk.bf16.gmra.mxu0 %vm1705_vm1, %v1668_v36 }
 0x1cf   : > { %v1739_v32 = vpop.f32.mrf.mxu0 }
 0x1d0   : > { %v1740_v28 = vadd.f32 %v4451_v8, %v1739_v32 }
 0x1d2   : > { %v1779_v45 = vmax.f32 %v1740_v28, 0.0  ;;  %v5639_v28 = vld [vmem:[%s6482_s8] ss:$0 sm:$0xff] }
 0x1d7   : > { %v1741_v15 = vpop.f32.mrf.mxu0 }
 0x1d8   : > { %v1742_v14 = vadd.f32 %v4451_v8, %v1741_v15 }
 0x1da   : > { %v1780_v7 = vmax.f32 %v1742_v14, 0.0 }
 0x1dc   : > { %v1795_v37 = vpack.c.bf16 %v1780_v7, %v1779_v45 }
 0x1de   : > { %4100 = vmatmul.msk.bf16.vlgmr.msra.gmra.mxu1 %vm1823_vm2, %v1795_v37 }
 0x1df   : > { %v1744_v61 = vpop.f32.mrf.mxu0 }
 0x1e0   : > { %v1745_v16 = vadd.f32 %v4451_v8, %v1744_v61 }
 0x1e2   : > { %v1781_v20 = vmax.f32 %v1745_v16, 0.0 }
 0x1e7   : > { %v1746_v17 = vpop.f32.mrf.mxu0 }
 0x1e8   : > { %v1747_v18 = vadd.f32 %v4451_v8, %v1746_v17 }
 0x1ea   : > { %v1782_v23 = vmax.f32 %v1747_v18, 0.0 }
 0x1ec   : > { %v1796_v33 = vpack.c.bf16 %v1782_v23, %v1781_v20 }
 0x1ee   : > { %4101 = vmatmul.msk.bf16.gmra.mxu1 %vm1823_vm2, %v1796_v33 }
 0x1ef   : > { %v1749_v48 = vpop.f32.mrf.mxu0 }
 0x1f0   : > { %v1750_v9 = vadd.f32 %v4451_v8, %v1749_v48 }
 0x1f2   : > { %v1783_v57 = vmax.f32 %v1750_v9, 0.0 }
 0x1f7   : > { %v1751_v53 = vpop.f32.mrf.mxu0 }
 0x1f8   : > { %v1752_v1 = vadd.f32 %v4451_v8, %v1751_v53 }
 0x1fa   : > { %v1784_v10 = vmax.f32 %v1752_v1, 0.0 }
 0x1fc   : > { %v1797_v52 = vpack.c.bf16 %v1784_v10, %v1783_v57 }
 0x1fe   : > { %4102 = vmatmul.msk.bf16.gmra.mxu1 %vm1823_vm2, %v1797_v52 }
 0x1ff   : > { %v1754_v56 = vpop.f32.mrf.mxu0 }
 0x200   : > { %v1755_v27 = vadd.f32 %v4451_v8, %v1754_v56 }
 0x202   : > { %v1785_v40 = vmax.f32 %v1755_v27, 0.0 }
 0x207   : > { %v1756_v38 = vpop.f32.mrf.mxu0 }
 0x208   : > { %v1757_v6 = vadd.f32 %v4451_v8, %v1756_v38 }
 0x20a   : > { %v1786_v58 = vmax.f32 %v1757_v6, 0.0 }
 0x20c   : > { %v1798_v41 = vpack.c.bf16 %v1786_v58, %v1785_v40 }
 0x20e   : > { %4103 = vmatmul.msk.bf16.gmra.mxu1 %vm1823_vm2, %v1798_v41 }
 0x20f   : > { %v1759_v46 = vpop.f32.mrf.mxu0 }
 0x210   : > { %v1760_v47 = vadd.f32 %v4451_v8, %v1759_v46 }
 0x212   : > { %v1787_v25 = vmax.f32 %v1760_v47, 0.0 }
 0x217   : > { %v1761_v49 = vpop.f32.mrf.mxu0 }
 0x218   : > { %v1762_v54 = vadd.f32 %v4451_v8, %v1761_v49 }
 0x21a   : > { %v1788_v4 = vmax.f32 %v1762_v54, 0.0 }
 0x21c   : > { %v1799_v11 = vpack.c.bf16 %v1788_v4, %v1787_v25 }
 0x21e   : > { %4104 = vmatmul.msk.bf16.gmra.mxu1 %vm1823_vm2, %v1799_v11 }
 0x21f   : > { %v1764_v13 = vpop.f32.mrf.mxu0 }
 0x220   : > { %v1765_v29 = vadd.f32 %v4451_v8, %v1764_v13 }
 0x222   : > { %v1789_v55 = vmax.f32 %v1765_v29, 0.0 }
 0x227   : > { %v1766_v60 = vpop.f32.mrf.mxu0 }
 0x228   : > { %v1767_v59 = vadd.f32 %v4451_v8, %v1766_v60 }
 0x22a   : > { %v1790_v62 = vmax.f32 %v1767_v59, 0.0 }
 0x22c   : > { %v1800_v63 = vpack.c.bf16 %v1790_v62, %v1789_v55 }
 0x22e   : > { %4105 = vmatmul.msk.bf16.gmra.mxu1 %vm1823_vm2, %v1800_v63 }
 0x22f   : > { %v1769_v0 = vpop.f32.mrf.mxu0 }
 0x230   : > { %v1770_v43 = vadd.f32 %v4451_v8, %v1769_v0 }
 0x232   : > { %v1791_v44 = vmax.f32 %v1770_v43, 0.0 }
 0x237   : > { %v1771_v22 = vpop.f32.mrf.mxu0 }
 0x238   : > { %v1772_v5 = vadd.f32 %v4451_v8, %v1771_v22 }
 0x23a   : > { %v1792_v31 = vmax.f32 %v1772_v5, 0.0 }
 0x23c   : > { %v1801_v24 = vpack.c.bf16 %v1792_v31, %v1791_v44 }
 0x23e   : > { %4106 = vmatmul.msk.bf16.gmra.mxu1 %vm1823_vm2, %v1801_v24 }
 0x23f   : > { %v1774_v30 = vpop.f32.mrf.mxu0 }
 0x240   : > { %v1775_v42 = vadd.f32 %v4451_v8, %v1774_v30 }
 0x242   : > { %v1793_v34 = vmax.f32 %v1775_v42, 0.0 }
 0x247   : > { %v1776_v21 = vpop.f32.mrf.mxu0 }
 0x248   : > { %v1777_v39 = vadd.f32 %v4451_v8, %v1776_v21 }
 0x24a   : > { %v1794_v36 = vmax.f32 %v1777_v39, 0.0 }
 0x24c   : > { %v1802_v32 = vpack.c.bf16 %v1794_v36, %v1793_v34 }
 0x24e   : > { %4107 = vmatmul.msk.bf16.gmra.mxu1 %vm1823_vm2, %v1802_v32 }
 0x25b   : > { %v1857_v15 = vpop.f32.mrf.mxu1 }
 0x25c   : > { %v1858_v14 = vadd.f32 %v5639_v28, %v1857_v15 }
 0x25e   : > { %v1897_v45 = vmul.f32 0.5, %v1858_v14  ;;  %3682 = vst.msk [vmem:[%s5642_s30] sm:$0xff] %vm890_vm0, %v1858_v14  ;;  %2041 = vrot.lane.b32.xlu1 %v1858_v14, %s5016_s20 }
 0x260   : > { %v1913_v8 = vmul.f32 1.442695, %v1897_v45 }
 0x262   : > { %4455 = vpow2.f32 %v1913_v8 }
 0x263   : > { %v1859_v7 = vpop.f32.mrf.mxu1 }
 0x264   : > { %v1860_v37 = vadd.f32 %v5639_v28, %v1859_v7 }
 0x266   : > { %v1898_v61 = vmul.f32 0.5, %v1860_v37  ;;  %3683 = vst.msk [vmem:[%s5642_s30 + $0x8] sm:$0xff] %vm890_vm0, %v1860_v37  ;;  %2043 = vrot.lane.b32.xlu1 %v1860_v37, %s5016_s20 }
 0x268   : > { %v4456_v16 = vpop.eup %4455  ;;  %v1915_v17 = vmul.f32 1.442695, %v1898_v61 }
 0x269   : > { %1961 = vrot.lane.b32.xlu0 %v4456_v16, %s6498_s27  ;;  %v4935_v16 = vld [vmem:[%s5186_s18] sm:$0xff] }
 0x26a   : > { %4457 = vpow2.f32 %v1915_v17 }
 0x26b   : > { %v1862_v18 = vpop.f32.mrf.mxu1 }
 0x26c   : > { %v1863_v20 = vadd.f32 %v5639_v28, %v1862_v18 }
 0x26e   : > { %v1899_v23 = vmul.f32 0.5, %v1863_v20  ;;  %3684 = vst.msk [vmem:[%s5642_s30 + $0x10] sm:$0xff] %vm890_vm0, %v1863_v20 }
 0x270   : > { %v4458_v33 = vpop.eup %4457  ;;  %v1917_v48 = vmul.f32 1.442695, %v1899_v23 }
 0x271   : > { %1963 = vrot.lane.b32.xlu0 %v4458_v33, %s6498_s27  ;;  %v4936_v33 = vld [vmem:[%s5186_s18 + $0x8] sm:$0xff] }
 0x272   : > { %4459 = vpow2.f32 %v1917_v48 }
 0x273   : > { %v1864_v9 = vpop.f32.mrf.mxu1 }
 0x274   : > { %v1865_v53 = vadd.f32 %v5639_v28, %v1864_v9 }
 0x276   : > { %v1900_v1 = vmul.f32 0.5, %v1865_v53  ;;  %3685 = vst.msk [vmem:[%s5642_s30 + $0x18] sm:$0xff] %vm890_vm0, %v1865_v53  ;;  %2047 = vrot.lane.b32.xlu1 %v1865_v53, %s5016_s20  ;;  %v4937_v53 = vld [vmem:[%s5186_s18 + $0x18] sm:$0xff] }
 0x278   : > { %v4460_v57 = vpop.eup %4459  ;;  %v1919_v10 = vmul.f32 1.442695, %v1900_v1 }
 0x279   : > { %1965 = vrot.lane.b32.xlu2 %v4460_v57, %s6498_s27  ;;  %2045 = vrot.lane.b32.xlu0 %v1863_v20, %s5016_s20 }
 0x27a   : > { %4461 = vpow2.f32 %v1919_v10 }
 0x27b   : > { %v1867_v52 = vpop.f32.mrf.mxu1 }
 0x27c   : > { %v1868_v56 = vadd.f32 %v5639_v28, %v1867_v52 }
 0x27e   : > { %v1901_v27 = vmul.f32 0.5, %v1868_v56  ;;  %3686 = vst.msk [vmem:[%s5642_s30 + $0x20] sm:$0xff] %vm890_vm0, %v1868_v56  ;;  %2049 = vrot.lane.b32.xlu1 %v1868_v56, %s5016_s20  ;;  %v4938_v56 = vld [vmem:[%s5186_s18 + $0x10] sm:$0xff] }
 0x280   : > { %v4462_v38 = vpop.eup %4461  ;;  %v1921_v6 = vmul.f32 1.442695, %v1901_v27 }
 0x281   : > { %1967 = vrot.lane.b32.xlu2 %v4462_v38, %s6498_s27 }
 0x282   : > { %4463 = vpow2.f32 %v1921_v6 }
 0x283   : > { %v1869_v40 = vpop.f32.mrf.mxu1 }
 0x284   : > { %v1870_v58 = vadd.f32 %v5639_v28, %v1869_v40 }
 0x286   : > { %v1902_v41 = vmul.f32 0.5, %v1870_v58  ;;  %3687 = vst.msk [vmem:[%s5642_s30 + $0x28] sm:$0xff] %vm890_vm0, %v1870_v58 }
 0x288   : > { %v4464_v46 = vpop.eup %4463  ;;  %v1923_v47 = vmul.f32 1.442695, %v1902_v41 }
 0x289   : > { %1969 = vrot.lane.b32.xlu2 %v4464_v46, %s6498_s27 }
 0x28a   : > { %4465 = vpow2.f32 %v1923_v47  ;;  %v4939_v47 = vld [vmem:[%s5186_s18 + $0x20] sm:$0xff] }
 0x28b   : > { %v1872_v49 = vpop.f32.mrf.mxu1 }
 0x28c   : > { %v5672_v54 = vadd.f32 %v5639_v28, %v1872_v49 }
 0x28e   : > { %v1903_v25 = vmul.f32 0.5, %v5672_v54  ;;  %3688 = vst.msk [vmem:[%s5642_s30 + $0x30] sm:$0xff] %vm890_vm0, %v5672_v54 }
 0x290   : > { %v4466_v4 = vpop.eup %4465  ;;  %v1925_v11 = vmul.f32 1.442695, %v1903_v25 }
 0x291   : > { %2051 = vrot.lane.b32.xlu2 %v1870_v58, %s5016_s20  ;;  %1971 = vrot.lane.b32.xlu0 %v4466_v4, %s6498_s27 }
 0x292   : > { %4467 = vpow2.f32 %v1925_v11 }
 0x293   : > { %v1874_v13 = vpop.f32.mrf.mxu1 }
 0x294   : > { %v1875_v29 = vadd.f32 %v5639_v28, %v1874_v13 }
 0x296   : > { %v1904_v60 = vmul.f32 0.5, %v1875_v29  ;;  %3689 = vst.msk [vmem:[%s5642_s30 + $0x38] sm:$0xff] %vm890_vm0, %v1875_v29 }
 0x298   : > { %v4468_v59 = vpop.eup %4467  ;;  %v1927_v55 = vmul.f32 1.442695, %v1904_v60 }
 0x299   : > { %1973 = vrot.lane.b32.xlu1 %v4468_v59, %s6498_s27 }
 0x29a   : > { %4469 = vpow2.f32 %v1927_v55 }
 0x29b   : > { %v1877_v62 = vpop.f32.mrf.mxu1 }
 0x29c   : > { %v5685_v63 = vadd.f32 %v5639_v28, %v1877_v62 }
 0x29e   : > { %3690 = vst.msk [vmem:[%s5642_s30 + $0x40] sm:$0xff] %vm890_vm0, %v5685_v63  ;;  %v1905_v38 = vmul.f32 0.5, %v5685_v63 }
 0x2a0   : > { %v4470_v0 = vpop.eup %4469  ;;  %v1929_v46 = vmul.f32 1.442695, %v1905_v38 }
 0x2a1   : > { %1975 = vrot.lane.b32.xlu2 %v4470_v0, %s6498_s27  ;;  %2055 = vrot.lane.b32.xlu1 %v1875_v29, %s5016_s20  ;;  %v4940_v0 = vld [vmem:[%s5186_s18 + $0x28] sm:$0xff] }
 0x2a3   : > { %v1879_v43 = vpop.f32.mrf.mxu1 }
 0x2a4   : > { %v5693_v22 = vadd.f32 %v5639_v28, %v1879_v43 }
 0x2a6   : > { %v1906_v5 = vmul.f32 0.5, %v5693_v22  ;;  %3691 = vst.msk [vmem:[%s5642_s30 + $0x48] sm:$0xff] %vm890_vm0, %v5693_v22 }
 0x2a8   : > { %v1931_v44 = vmul.f32 1.442695, %v1906_v5 }
 0x2aa   : > { %4471 = vpow2.f32 %v1931_v44 }
 0x2ab   : > { %v1882_v31 = vpop.f32.mrf.mxu1  ;;  %4473 = vpow2.f32 %v1929_v46 }
 0x2ac   : > { %v5700_v24 = vadd.f32 %v5639_v28, %v1882_v31 }
 0x2ae   : > { %3692 = vst.msk [vmem:[%s5642_s30 + $0x50] sm:$0xff] %vm890_vm0, %v5700_v24  ;;  %v1907_v4 = vmul.f32 0.5, %v5700_v24 }
 0x2b0   : > { %v4472_v30 = vpop.eup %4471  ;;  %v1933_v13 = vmul.f32 1.442695, %v1907_v4 }
 0x2b1   : > { %1979 = vrot.lane.b32.xlu1 %v4472_v30, %s6498_s27  ;;  %v4474_v29 = vpop.eup %4473 }
 0x2b2   : > { %4475 = vpow2.f32 %v1933_v13 }
 0x2b3   : > { %v1884_v42 = vpop.f32.mrf.mxu1 }
 0x2b4   : > { %v5707_v21 = vadd.f32 %v5639_v28, %v1884_v42 }
 0x2b6   : > { %3693 = vst.msk [vmem:[%s5642_s30 + $0x58] sm:$0xff] %vm890_vm0, %v5707_v21  ;;  %v1908_v60 = vmul.f32 0.5, %v5707_v21 }
 0x2b8   : > { %v4476_v59 = vpop.eup %4475  ;;  %v1935_v55 = vmul.f32 1.442695, %v1908_v60 }
 0x2ba   : > { %4477 = vpow2.f32 %v1935_v55 }
 0x2bb   : > { %v1887_v39 = vpop.f32.mrf.mxu1 }
 0x2bc   : > { %v5713_v34 = vadd.f32 %v5639_v28, %v1887_v39 }
 0x2be   : > { %3694 = vst.msk [vmem:[%s5642_s30 + $0x60] sm:$0xff] %vm890_vm0, %v5713_v34 }
 0x2c0   : > { %v4478_v30 = vpop.eup %4477 }
 0x2c3   : > { %v1889_v36 = vpop.f32.mrf.mxu1 }
 0x2c4   : > { %v5719_v32 = vadd.f32 %v5639_v28, %v1889_v36 }
 0x2c6   : > { %3695 = vst.msk [vmem:[%s5642_s30 + $0x68] sm:$0xff] %vm890_vm0, %v5719_v32 }
 0x2cb   : > { %v1892_v15 = vpop.f32.mrf.mxu1 }
 0x2cc   : > { %v5725_v14 = vadd.f32 %v5639_v28, %v1892_v15 }
 0x2ce   : > { %3696 = vst.msk [vmem:[%s5642_s30 + $0x70] sm:$0xff] %vm890_vm0, %v5725_v14 }
 0x2d0   : > { %v2042_v7 = vpop.permute.xlu1 %2041 }
 0x2d3   : > { %v1894_v45 = vpop.f32.mrf.mxu1  ;;  %v1966_v37 = vpop.permute.xlu2 %1965 }
 0x2d4   : > { %v5731_v8 = vadd.f32 %v5639_v28, %v1894_v45  ;;  %v2011_v27 = vmul.f32 %v4938_v56, %v1966_v37  ;;  %v4941_v45 = vld [vmem:[%s5186_s18 + $0x38] sm:$0xff] }
 0x2d6   : > { %3697 = vst.msk [vmem:[%s5642_s30 + $0x78] sm:$0xff] %vm890_vm0, %v5731_v8 }
 0x2d8   : > { %v2044_v20 = vpop.permute.xlu1 %2043 }
 0x2db   : > { %v1962_v61 = vpop.permute.xlu0 %1961  ;;  %v1968_v23 = vpop.permute.xlu2 %1967 }
 0x2dc   : > { %v2009_v17 = vmul.f32 %v4935_v16, %v1962_v61  ;;  %v2012_v1 = vmul.f32 %v4937_v53, %v1968_v23  ;;  %v1912_v16 = vmul.f32 0.5, %v5731_v8 }
 0x2de   : > { %v2089_v18 = vadd.f32 %v2042_v7, %v2009_v17  ;;  %v1943_v17 = vmul.f32 1.442695, %v1912_v16 }
 0x2e0   : > { %3699 = vst.msk [vmem:[%s5642_s30] sm:$0xff] %vm3698_vm3, %v2089_v18 }
 0x2e3   : > { %v1964_v28 = vpop.permute.xlu0 %1963  ;;  %v1970_v40 = vpop.permute.xlu2 %1969 }
 0x2e4   : > { %v2010_v48 = vmul.f32 %v4936_v33, %v1964_v28  ;;  %v2013_v49 = vmul.f32 %v4939_v47, %v1970_v40  ;;  %v4942_v33 = vld [vmem:[%s5186_s18 + $0x30] sm:$0xff] }
 0x2e6   : > { %v2090_v9 = vadd.f32 %v2044_v20, %v2010_v48  ;;  %v2113_v20 = vld [vmem:[%s6483_s9] sm:$0xf] }
 0x2e7   : > { %v2222_v23 = vsel %vm2220_vm4, %v2113_v20, 0 }
 0x2e8   : > { %3700 = vst.msk [vmem:[%s5642_s30 + $0x8] sm:$0xff] %vm3698_vm3, %v2090_v9  ;;  %v2048_v57 = vpop.permute.xlu1 %2047  ;;  %v2105_v10 = vpack.c.bf16 %v2090_v9, %v2089_v18  ;;  %2231 = vmatpush.bf16.msra.mxu3 %v2222_v23 }
 0x2e9   : > { %v2092_v52 = vadd.f32 %v2048_v57, %v2012_v1  ;;  %v4943_v57 = vld [vmem:[%s5186_s18 + $0x40] sm:$0xff] }
 0x2ea   : > { %2179 = vrot.lane.b32.xlu0 %v2105_v10, %s5018_s21 }
 0x2eb   : > { %3702 = vst.msk [vmem:[%s5642_s30 + $0x18] sm:$0xff] %vm3698_vm3, %v2092_v52  ;;  %v2046_v6 = vpop.permute.xlu0 %2045  ;;  %v2052_v5 = vpop.permute.xlu2 %2051 }
 0x2ec   : > { %v2091_v58 = vadd.f32 %v2046_v6, %v2011_v27 }
 0x2ee   : > { %v2106_v41 = vpack.c.bf16 %v2092_v52, %v2091_v58  ;;  %3701 = vst.msk [vmem:[%s5642_s30 + $0x10] sm:$0xff] %vm3698_vm3, %v2091_v58 }
 0x2f0   : > { %v2050_v25 = vpop.permute.xlu1 %2049  ;;  %2181 = vrot.lane.b32.xlu2 %v2106_v41, %s5018_s21 }
 0x2f1   : > { %v2093_v11 = vadd.f32 %v2050_v25, %v2013_v49  ;;  %v4945_v49 = vld [vmem:[%s5186_s18 + $0x58] sm:$0xff] }
 0x2f2   : > { %2053 = vrot.lane.b32.xlu0 %v5672_v54, %s5016_s20  ;;  %v1910_v54 = vmul.f32 0.5, %v5719_v32 }
 0x2f3   : > { %3703 = vst.msk [vmem:[%s5642_s30 + $0x20] sm:$0xff] %vm3698_vm3, %v2093_v11 }
 0x2f4   : > { %v1939_v43 = vmul.f32 1.442695, %v1910_v54 }
 0x2f6   : > { %4479 = vpow2.f32 %v1939_v43 }
 0x2f8   : > { %2057 = vrot.lane.b32.xlu2 %v5685_v63, %s5016_s20 }
 0x2fa   : > { %1977 = vrot.lane.b32.xlu0 %v4474_v29, %s6498_s27 }
 0x2fb   : > { %v1976_v15 = vpop.permute.xlu2 %1975 }
 0x2fc   : > { %v4480_v39 = vpop.eup %4479  ;;  %v2016_v7 = vmul.f32 %v4941_v45, %v1976_v15 }
 0x300   : > { %1981 = vrot.lane.b32.xlu2 %v4476_v59, %s6498_s27 }
 0x302   : > { %2059 = vrot.lane.b32.xlu0 %v5693_v22, %s5016_s20  ;;  %v1909_v22 = vmul.f32 0.5, %v5713_v34 }
 0x303   : > { %v1972_v62 = vpop.permute.xlu0 %1971 }
 0x304   : > { %v2014_v63 = vmul.f32 %v4940_v0, %v1972_v62  ;;  %v1937_v36 = vmul.f32 1.442695, %v1909_v22  ;;  %v4947_v62 = vld [vmem:[%s5186_s18 + $0x68] sm:$0xff] }
 0x306   : > { %v2094_v44 = vadd.f32 %v2052_v5, %v2014_v63  ;;  %4481 = vpow2.f32 %v1937_v36  ;;  %v5849_v36 = vld [vmem:[%s6485_s11] ss:$0 sm:$0xff] }
 0x307   : > { %4483 = vpow2.f32 %v1943_v17  ;;  %v4949_v17 = vld [vmem:[%s5186_s18 + $0x70] sm:$0xff] }
 0x308   : > { %3704 = vst.msk [vmem:[%s5642_s30 + $0x28] sm:$0xff] %vm3698_vm3, %v2094_v44  ;;  %2063 = vrot.lane.b32.xlu2 %v5707_v21, %s5016_s20  ;;  %v2107_v31 = vpack.c.bf16 %v2094_v44, %v2093_v11 }
 0x30a   : > { %1983 = vrot.lane.b32.xlu0 %v4478_v30, %s6498_s27  ;;  %2183 = vrot.lane.b32.xlu1 %v2107_v31, %s5018_s21  ;;  %v4948_v31 = vld [vmem:[%s5186_s18 + $0x60] sm:$0xff] }
 0x30b   : > { %v1974_v42 = vpop.permute.xlu1 %1973 }
 0x30c   : > { %v4482_v61 = vpop.eup %4481  ;;  %v2015_v48 = vmul.f32 %v4942_v33, %v1974_v42 }
 0x30d   : > { %v4484_v18 = vpop.eup %4483 }
 0x310   : > { %1987 = vrot.lane.b32.xlu2 %v4480_v39, %s6498_s27 }
 0x312   : > { %2061 = vrot.lane.b32.xlu1 %v5700_v24, %s5016_s20  ;;  %v4373_v24 = vld [vmem:[%s6484_s10] sm:$0xff] }
 0x313   : > { %v2056_v21 = vpop.permute.xlu1 %2055  ;;  %2129 = vmatpush.bf16.msra.mxu2 %v4373_v24 }
 0x314   : > { %v2096_v37 = vadd.f32 %v2056_v21, %v2016_v7 }
 0x316   : > { %3706 = vst.msk [vmem:[%s5642_s30 + $0x38] sm:$0xff] %vm3698_vm3, %v2096_v37  ;;  %4112 = vmatmul.msk.bf16.vlgmr.msra.gmra.mxu2 %vm890_vm0, %v5199_v12  ;;  %v1911_v12 = vmul.f32 0.5, %v5725_v14 }
 0x318   : > { %v1941_v52 = vmul.f32 1.442695, %v1911_v12 }
 0x31a   : > { %1985 = vrot.lane.b32.xlu1 %v4482_v61, %s6498_s27  ;;  %4485 = vpow2.f32 %v1941_v52 }
 0x320   : > { %v4486_v46 = vpop.eup %4485 }
 0x322   : > { %2067 = vrot.lane.b32.xlu1 %v5719_v32, %s5016_s20 }
 0x323   : > { %v1980_v27 = vpop.permute.xlu1 %1979 }
 0x326   : > { %4113 = vmatmul.msk.bf16.gmra.mxu2 %vm890_vm0, %v5239_v26 }
 0x32a   : > { %1991 = vrot.lane.b32.xlu1 %v4484_v18, %s6498_s27 }
 0x336   : > { %4114 = vmatmul.msk.bf16.gmra.mxu2 %vm890_vm0, %v5295_v51 }
 0x346   : > { %4115 = vmatmul.msk.bf16.gmra.mxu2 %vm890_vm0, %v5319_v3  ;;  %v4944_v3 = vld [vmem:[%s5186_s18 + $0x48] sm:$0xff] }
 0x347   : > { %v2018_v38 = vmul.f32 %v4944_v3, %v1980_v27 }
 0x34a   : > { %v2182_v28 = vpop.permute.xlu2 %2181 }
 0x352   : > { %v2058_v26 = vpop.permute.xlu2 %2057 }
 0x356   : > { %4116 = vmatmul.msk.bf16.gmra.mxu2 %vm890_vm0, %v5340_v19  ;;  %v4946_v19 = vld [vmem:[%s5186_s18 + $0x50] sm:$0xff] }
 0x35a   : > { %v1982_v6 = vpop.permute.xlu2 %1981 }
 0x35b   : > { %v2019_v13 = vmul.f32 %v4946_v19, %v1982_v6 }
 0x35c   : > { %v2180_v32 = vpop.permute.xlu0 %2179 }
 0x35d   : > { %4120 = vmatmul.msk.bf16.vlgmr.msra.gmra.mxu3 %vm2195_vm5, %v2180_v32 }
 0x362   : > { %v2064_v4 = vpop.permute.xlu2 %2063 }
 0x364   : > { %v2054_v9 = vpop.permute.xlu0 %2053 }
 0x365   : > { %v2095_v53 = vadd.f32 %v2054_v9, %v2015_v48  ;;  %v4950_v9 = vld [vmem:[%s5186_s18 + $0x78] sm:$0xff] }
 0x366   : > { %4117 = vmatmul.msk.bf16.gmra.mxu2 %vm890_vm0, %v5361_v35  ;;  %v4375_v35 = vld [vmem:[%s6486_s12 + $0x8] sm:$0xff] }
 0x367   : > { %v2108_v1 = vpack.c.bf16 %v2096_v37, %v2095_v53  ;;  %3705 = vst.msk [vmem:[%s5642_s30 + $0x30] sm:$0xff] %vm3698_vm3, %v2095_v53  ;;  %2367 = vmatpush.bf16.msrb.mxu0 %v4375_v35 }
 0x369   : > { %2185 = vrot.lane.b32.xlu0 %v2108_v1, %s5018_s21 }
 0x36a   : > { %v1988_v54 = vpop.permute.xlu2 %1987 }
 0x36c   : > { %v1978_v51 = vpop.permute.xlu0 %1977 }
 0x36d   : > { %v2017_v10 = vmul.f32 %v4943_v57, %v1978_v51  ;;  %4121 = vmatmul.msk.bf16.gmra.mxu3 %vm2195_vm5, %v2182_v28 }
 0x36f   : > { %v2097_v56 = vadd.f32 %v2058_v26, %v2017_v10 }
 0x371   : > { %3707 = vst.msk [vmem:[%s5642_s30 + $0x40] sm:$0xff] %vm3698_vm3, %v2097_v56  ;;  %2065 = vrot.lane.b32.xlu0 %v5713_v34, %s5016_s20 }
 0x374   : > { %v2060_v40 = vpop.permute.xlu0 %2059 }
 0x375   : > { %v2098_v58 = vadd.f32 %v2060_v40, %v2018_v38 }
 0x376   : > { %4118 = vmatmul.msk.bf16.gmra.mxu2 %vm890_vm0, %v5382_v50 }
 0x377   : > { %v2109_v41 = vpack.c.bf16 %v2098_v58, %v2097_v56  ;;  %3708 = vst.msk [vmem:[%s5642_s30 + $0x48] sm:$0xff] %vm3698_vm3, %v2098_v58 }
 0x379   : > { %1989 = vrot.lane.b32.xlu0 %v4486_v46, %s6498_s27  ;;  %2187 = vrot.lane.b32.xlu2 %v2109_v41, %s5018_s21  ;;  %s3722_s27 = scalar_lea.sflag [#allocation3], %s6514_s28 }
 0x37c   : > { %v2184_v34 = vpop.permute.xlu1 %2183  ;;  %v1984_v47 = vpop.permute.xlu0 %1983 }
 0x37d   : > { %v2020_v25 = vmul.f32 %v4945_v49, %v1984_v47  ;;  %4122 = vmatmul.msk.bf16.gmra.mxu3 %vm2195_vm5, %v2184_v34 }
 0x37f   : > { %v2100_v11 = vadd.f32 %v2064_v4, %v2020_v25 }
 0x381   : > { %3710 = vst.msk [vmem:[%s5642_s30 + $0x58] sm:$0xff] %vm3698_vm3, %v2100_v11  ;;  %2071 = vrot.lane.b32.xlu0 %v5731_v8, %s5016_s20  ;;  %2069 = vrot.lane.b32.xlu2 %v5725_v14, %s5016_s20  ;;  %v2022_v8 = vmul.f32 %v4947_v62, %v1988_v54  ;;  %v4374_v14 = vld [vmem:[%s6486_s12] sm:$0xff]  ;;  %s3740_s20 = sshll.u32 %s3737_s0, 4  ;;  %s3741_s20 = int_to_ptr.hbm [resolvable:$true] %s3740_s20 }
 0x382   : > { %2368 = vmatpush.bf16.msrb.mxu0 %v4374_v14  ;;  %v4232_v62 = vld [vmem:[%s6488_s14 + $0xc4] sm:$0xf0]  ;;  %v4202_v14 = vld [vmem:[%s6488_s14 + $0x70] sm:$0xf] }
 0x384   : > { %v2062_v29 = vpop.permute.xlu1 %2061 }
 0x385   : > { %v2099_v60 = vadd.f32 %v2062_v29, %v2019_v13 }
 0x386   : > { %4119 = vmatmul.msk.bf16.gmra.mxu2 %vm890_vm0, %v5403_v2 }
 0x387   : > { %v2110_v59 = vpack.c.bf16 %v2100_v11, %v2099_v60  ;;  %3709 = vst.msk [vmem:[%s5642_s30 + $0x50] sm:$0xff] %vm3698_vm3, %v2099_v60  ;;  %v4230_v60 = vld [vmem:[%s6488_s14 + $0xa8] sm:$0xf] }
 0x389   : > { %2189 = vrot.lane.b32.xlu1 %v2110_v59, %s5018_s21  ;;  %v4400_v59 = vld [vmem:[%s6488_s14 + $0xc0] sm:$0xf0] }
 0x38a   : > { %v4231_v54 = vor.u32 %v4400_v59, %v4230_v60 }
 0x38c   : > { %v1986_v55 = vpop.permute.xlu1 %1985  ;;  %2654 = vmatpush.bf16.msrb.mxu1 %v4231_v54 }
 0x38d   : > { %v2021_v2 = vmul.f32 %v4948_v31, %v1986_v55  ;;  %v4397_v55 = vld [vmem:[%s6488_s14 + $0xac] sm:$0xf]  ;;  %v4210_v31 = vld [vmem:[%s6488_s14 + $0x78] sm:$0xf] }
 0x394   : > { %v2068_v0 = vpop.permute.xlu1 %2067 }
 0x395   : > { %v2102_v63 = vadd.f32 %v2068_v0, %v2022_v8  ;;  %v4238_v8 = vld [vmem:[%s6488_s14 + $0xb0] sm:$0xf]  ;;  %v4401_v0 = vld [vmem:[%s6488_s14 + $0xc8] sm:$0xf0] }
 0x396   : > { %v4239_v35 = vor.u32 %v4401_v0, %v4238_v8 }
 0x397   : > { %3712 = vst.msk [vmem:[%s5642_s30 + $0x68] sm:$0xff] %vm3698_vm3, %v2102_v63 }
 0x398   : > { %2752 = vmatpush.bf16.msrb.mxu3 %v4239_v35 }
 0x399   : > { %v2131_v43 = vpop.f32.mrf.mxu2 }
 0x39c   : > { %v1992_v28 = vpop.permute.xlu1 %1991 }
 0x39d   : > { %v2024_v53 = vmul.f32 %v4950_v9, %v1992_v28  ;;  %v4154_v28 = vld [vmem:[%s6488_s14 + $0x8] sm:$0xf] }
 0x3a1   : > { %v2133_v44 = vpop.f32.mrf.mxu2 }
 0x3a9   : > { %v2136_v7 = vpop.f32.mrf.mxu2 }
 0x3b1   : > { %v2138_v1 = vpop.f32.mrf.mxu2 }
 0x3b9   : > { %v2141_v38 = vpop.f32.mrf.mxu2 }
 0x3c1   : > { %v2143_v34 = vpop.f32.mrf.mxu2 }
 0x3d3   : > { %v2188_v30 = vpop.permute.xlu2 %2187 }
 0x3db   : > { %v2186_v5 = vpop.permute.xlu0 %2185  ;;  %v2070_v24 = vpop.permute.xlu2 %2069 }
 0x3dc   : > { %4123 = vmatmul.msk.bf16.gmra.mxu3 %vm2195_vm5, %v2186_v5  ;;  %v4390_v5 = vld [vmem:[%s6488_s14 + $0x74] sm:$0xf] }
 0x3e0   : > { %v2233_v50 = vpop.f32.mrf.mxu3 }
 0x3e1   : > { %v2234_v39 = vadd.f32 %v2233_v50, %v2131_v43  ;;  %v4393_v43 = vld [vmem:[%s6488_s14 + $0x88] sm:$0xf0]  ;;  %v4204_v50 = vld [vmem:[%s6488_s14 + $0x8c] sm:$0xf0] }
 0x3e3   : > { %v2066_v22 = vpop.permute.xlu0 %2065  ;;  %v2277_v21 = vadd.f32 %v5849_v36, %v2234_v39  ;;  %v4174_v39 = vld [vmem:[%s6488_s14 + $0x38] sm:$0xf] }
 0x3e4   : > { %v2101_v42 = vadd.f32 %v2066_v22, %v2021_v2  ;;  %v4394_v2 = vld [vmem:[%s6488_s14 + $0x90] sm:$0xf0] }
 0x3e5   : > { %v2293_v20 = vmax.f32 %v2277_v21, 0.0  ;;  %v4211_v22 = vor.u32 %v4394_v2, %v4210_v31  ;;  %v4176_v21 = vld [vmem:[%s6488_s14 + $0x54] sm:$0xf0] }
 0x3e6   : > { %v2111_v15 = vpack.c.bf16 %v2102_v63, %v2101_v42  ;;  %3711 = vst.msk [vmem:[%s5642_s30 + $0x60] sm:$0xff] %vm3698_vm3, %v2101_v42  ;;  %v4235_v63 = vor.u32 %v4397_v55, %v4232_v62  ;;  %v2146_v42 = vpop.f32.mrf.mxu2 }
 0x3e7   : > { %2753 = vmatpush.bf16.msrb.mxu3 %v4211_v22 }
 0x3e8   : > { %v2235_v45 = vpop.f32.mrf.mxu3  ;;  %2191 = vrot.lane.b32.xlu2 %v2111_v15, %s5018_s21  ;;  %2703 = vmatpush.bf16.msrb.mxu2 %v4235_v63  ;;  %v4386_v15 = vld [vmem:[%s6488_s14 + $0x50] sm:$0xf0] }
 0x3e9   : > { %v2236_v37 = vadd.f32 %v2235_v45, %v2133_v44  ;;  %v4203_v44 = vor.u32 %v4393_v43, %v4202_v14  ;;  %v4383_v45 = vld [vmem:[%s6488_s14 + $0x3c] sm:$0xf] }
 0x3eb   : > { %v2278_v61 = vadd.f32 %v5849_v36, %v2236_v37  ;;  %v1990_v16 = vpop.permute.xlu0 %1989  ;;  %2655 = vmatpush.bf16.msrb.mxu1 %v4203_v44  ;;  %v4182_v37 = vld [vmem:[%s6488_s14 + $0x40] sm:$0xf] }
 0x3ec   : > { %v2023_v18 = vmul.f32 %v4949_v17, %v1990_v16  ;;  %4124 = vmatmul.msk.bf16.gmra.mxu3 %vm2195_vm5, %v2188_v30  ;;  %v4207_v30 = vor.u32 %v4390_v5, %v4204_v50  ;;  %v4179_v16 = vor.u32 %v4383_v45, %v4176_v21 }
 0x3ed   : > { %v2294_v23 = vmax.f32 %v2278_v61, 0.0  ;;  %v4387_v61 = vld [vmem:[%s6488_s14 + $0x58] sm:$0xf0] }
 0x3ee   : > { %v2103_v32 = vadd.f32 %v2070_v24, %v2023_v18  ;;  %2704 = vmatpush.bf16.msrb.mxu2 %v4207_v30  ;;  %v4183_v17 = vor.u32 %v4387_v61, %v4182_v37  ;;  %v4146_v18 = vld [vmem:[%s6488_s14] sm:$0xf]  ;;  %v4379_v24 = vld [vmem:[%s6488_s14 + $0x18] sm:$0xf0] }
 0x3ef   : > { %v2309_v33 = vpack.c.bf16 %v2294_v23, %v2293_v20  ;;  %v4376_v20 = vld [vmem:[%s6488_s14 + $0x4] sm:$0xf]  ;;  %v4147_v23 = vor.u32 %v4379_v24, %v4146_v18 }
 0x3f0   : > { %3713 = vst.msk [vmem:[%s5642_s30 + $0x70] sm:$0xff] %vm3698_vm3, %v2103_v32  ;;  %v2238_v48 = vpop.f32.mrf.mxu3  ;;  %2754 = vmatpush.bf16.msrb.mxu3 %v4183_v17 }
 0x3f1   : > { %4136 = vmatmul.msk.bf16.vlgmr.msrb.gmra.mxu0 %vm1823_vm2, %v2309_v33  ;;  %v2239_v51 = vadd.f32 %v2238_v48, %v2136_v7  ;;  %v4175_v7 = vor.u32 %v4386_v15, %v4174_v39  ;;  %v4380_v33 = vld [vmem:[%s6488_s14 + $0x20] sm:$0xf0] }
 0x3f2   : > { %2705 = vmatpush.bf16.msrb.mxu2 %v4179_v16  ;;  %v4155_v9 = vor.u32 %v4380_v33, %v4154_v28 }
 0x3f3   : > { %v2072_v12 = vpop.permute.xlu0 %2071  ;;  %v2279_v52 = vadd.f32 %v5849_v36, %v2239_v51  ;;  %2656 = vmatpush.bf16.msrb.mxu1 %v4175_v7 }
 0x3f4   : > { %v2104_v26 = vadd.f32 %v2072_v12, %v2024_v53  ;;  %2755 = vmatpush.bf16.msrb.mxu3 %v4155_v9  ;;  %v2148_v53 = vpop.f32.mrf.mxu2 }
 0x3f5   : > { %v2295_v6 = vmax.f32 %v2279_v52, 0.0 }
 0x3f6   : > { %v2112_v57 = vpack.c.bf16 %v2104_v26, %v2103_v32  ;;  %3714 = vst.msk [vmem:[%s5642_s30 + $0x78] sm:$0xff] %vm3698_vm3, %v2104_v26  ;;  %v4148_v32 = vld [vmem:[%s6488_s14 + $0x1c] sm:$0xf0]  ;;  %s4966_s30 = sshra.s32 %s3741_s20, 4  ;;  %s4967_s30 = int_to_ptr.hbm [resolvable:$true] %s4966_s30 }
 0x3f7   : > { %v4151_v48 = vor.u32 %v4376_v20, %v4148_v32  ;;  %2657 = vmatpush.bf16.msrb.mxu1 %v4147_v23  ;;  %s4968_s29 = scalar_lea.hbm %s4967_s30, 128  ;;  %p4973_p0 = scmp.lt.s32.totalorder %s4967_s30, %s6491_s17 }
 0x3f8   : > { %v2240_v10 = vpop.f32.mrf.mxu3  ;;  %2193 = vrot.lane.b32.xlu0 %v2112_v57, %s5018_s21  ;;  %s6077_s21 = scalar_lea.vmem %s6490_s16, %s4406_s3  ;;  %p4969_p11 = scmp.ne.s32.totalorder %s4967_s30, %s4968_s29 }
 0x3f9   : > { %v2241_v56 = vadd.f32 %v2240_v10, %v2138_v1  ;;  %2706 = vmatpush.bf16.msrb.mxu2 %v4151_v48  ;;  %p4974_p1 = scmp.lt.s32.totalorder %s4972_s23, %s4968_s29 }
 0x3fa   : > { %p4970_p12 = pnand %p4969_p11, %p5148_p5 }
 0x3fb   : > { %v2280_v27 = vadd.f32 %v5849_v36, %v2241_v56  ;;  %v2190_v3 = vpop.permute.xlu1 %2189  ;;  %p4975_p2 = por %p4974_p1, %p4973_p0 }
 0x3fc   : > { %4125 = vmatmul.msk.bf16.gmra.mxu3 %vm2195_vm5, %v2190_v3  ;;  %v2151_v51 = vpop.f32.mrf.mxu2  ;;  %p4971_p13 = pneg %p4970_p12 }
 0x3fd   : > { %v2296_v40 = vmax.f32 %v2280_v27, 0.0 }
 0x3fe   : > { %p4976_p3 = pnand %p4975_p2, %p4971_p13 }
 0x3ff   : > { %v2310_v58 = vpack.c.bf16 %v2296_v40, %v2295_v6 }
 0x400   : > { %v2243_v41 = vpop.f32.mrf.mxu3 }
 0x401   : > { %4137 = vmatmul.msk.bf16.gmra.mxu0 %vm1823_vm2, %v2310_v58  ;;  %v2244_v46 = vadd.f32 %v2243_v41, %v2141_v38  ;;  %v5952_v58 = vld [vmem:[%s6487_s13] ss:$0 sm:$0xff] }
 0x403   : > { %v2281_v49 = vadd.f32 %v5849_v36, %v2244_v46 }
 0x404   : > { %v2153_v41 = vpop.f32.mrf.mxu2 }
 0x405   : > { %v2297_v11 = vmax.f32 %v2281_v49, 0.0 }
 0x408   : > { %v2245_v47 = vpop.f32.mrf.mxu3 }
 0x409   : > { %v2246_v25 = vadd.f32 %v2245_v47, %v2143_v34 }
 0x40b   : > { %v2282_v4 = vadd.f32 %v5849_v36, %v2246_v25 }
 0x40c   : > { %v2156_v59 = vpop.f32.mrf.mxu2 }
 0x40d   : > { %v2298_v19 = vmax.f32 %v2282_v4, 0.0 }
 0x40f   : > { %v2311_v13 = vpack.c.bf16 %v2298_v19, %v2297_v11 }
 0x411   : > { %4138 = vmatmul.msk.bf16.gmra.mxu0 %vm1823_vm2, %v2311_v13 }
 0x414   : > { %v2158_v14 = vpop.f32.mrf.mxu2 }
 0x41c   : > { %v2161_v24 = vpop.f32.mrf.mxu2 }
 0x424   : > { %v2163_v32 = vpop.f32.mrf.mxu2 }
 0x442   : > { %v2192_v29 = vpop.permute.xlu2 %2191 }
 0x443   : > { %4126 = vmatmul.msk.bf16.gmra.mxu3 %vm2195_vm5, %v2192_v29 }
 0x45f   : > { %v2248_v1 = vpop.f32.mrf.mxu3 }
 0x460   : > { %v2249_v12 = vadd.f32 %v2248_v1, %v2146_v42 }
 0x462   : > { %v2283_v57 = vadd.f32 %v5849_v36, %v2249_v12 }
 0x464   : > { %v2299_v27 = vmax.f32 %v2283_v57, 0.0 }
 0x467   : > { %v2250_v26 = vpop.f32.mrf.mxu3 }
 0x468   : > { %v2251_v10 = vadd.f32 %v2250_v26, %v2148_v53  ;;  %v4398_v26 = vld [vmem:[%s6488_s14 + $0xb4] sm:$0xf] }
 0x46a   : > { %v2284_v52 = vadd.f32 %v5849_v36, %v2251_v10  ;;  %v2194_v56 = vpop.permute.xlu0 %2193  ;;  %v4391_v10 = vld [vmem:[%s6488_s14 + $0x7c] sm:$0xf] }
 0x46b   : > { %4127 = vmatmul.msk.bf16.gmra.mxu3 %vm2195_vm5, %v2194_v56 }
 0x46c   : > { %v2300_v3 = vmax.f32 %v2284_v52, 0.0  ;;  %v4212_v52 = vld [vmem:[%s6488_s14 + $0x94] sm:$0xf0] }
 0x46d   : > { %v4215_v56 = vor.u32 %v4391_v10, %v4212_v52 }
 0x46e   : > { %v2312_v38 = vpack.c.bf16 %v2300_v3, %v2299_v27  ;;  %v2370_v6 = vpop.f32.mrf.mxu0  ;;  %v4384_v27 = vld [vmem:[%s6488_s14 + $0x44] sm:$0xf]  ;;  %v4184_v3 = vld [vmem:[%s6488_s14 + $0x5c] sm:$0xf0] }
 0x46f   : > { %v2253_v40 = vpop.f32.mrf.mxu3  ;;  %v2371_v34 = vadd.f32 %v5952_v58, %v2370_v6  ;;  %v2166_v6 = vpop.f32.mrf.mxu2 }
 0x470   : > { %4139 = vmatmul.msk.bf16.gmra.mxu0 %vm1823_vm2, %v2312_v38  ;;  %v2254_v46 = vadd.f32 %v2253_v40, %v2151_v51  ;;  %v4240_v51 = vld [vmem:[%s6488_s14 + $0xcc] sm:$0xf0]  ;;  %v4187_v38 = vor.u32 %v4384_v27, %v4184_v3 }
 0x471   : > { %v2410_v19 = vmax.f32 %v2371_v34, 0.0  ;;  %v4243_v57 = vor.u32 %v4398_v26, %v4240_v51 }
 0x472   : > { %v2285_v4 = vadd.f32 %v5849_v36, %v2254_v46  ;;  %v4156_v46 = vld [vmem:[%s6488_s14 + $0x24] sm:$0xf0] }
 0x473   : > { %2801 = vmatpush.bf16.msra.mxu0 %v4243_v57 }
 0x474   : > { %v2301_v55 = vmax.f32 %v2285_v4, 0.0  ;;  %v6021_v4 = vld [vmem:[%s6489_s15] sm:$0x7f] }
 0x476   : > { %v2372_v47 = vpop.f32.mrf.mxu0 }
 0x477   : > { %v2373_v49 = vadd.f32 %v5952_v58, %v2372_v47  ;;  %v2255_v25 = vpop.f32.mrf.mxu3  ;;  %2802 = vmatpush.bf16.msra.mxu0 %v4215_v56 }
 0x478   : > { %v2256_v11 = vadd.f32 %v2255_v25, %v2153_v41  ;;  %v4377_v41 = vld [vmem:[%s6488_s14 + $0xc] sm:$0xf] }
 0x479   : > { %v2411_v13 = vmax.f32 %v2373_v49, 0.0  ;;  %v4159_v47 = vor.u32 %v4377_v41, %v4156_v46 }
 0x47a   : > { %v2286_v29 = vadd.f32 %v5849_v36, %v2256_v11 }
 0x47b   : > { %v5958_v60 = vpack.c.bf16 %v2411_v13, %v2410_v19  ;;  %2803 = vmatpush.bf16.msra.mxu0 %v4187_v38  ;;  %v2168_v19 = vpop.f32.mrf.mxu2  ;;  %v4399_v38 = vld [vmem:[%s6488_s14 + $0xbc] sm:$0xf] }
 0x47c   : > { %v2302_v54 = vmax.f32 %v2286_v29, 0.0 }
 0x47d   : > { %4256 = vmatmul.msk.bf16.vlgmr.msrb.gmra.mxu1 %vm1705_vm1, %v5958_v60  ;;  %4264 = vmatmul.msk.bf16.vlgmr.msrb.gmra.mxu2 %vm1705_vm1, %v5958_v60 }
 0x47e   : > { %v2313_v62 = vpack.c.bf16 %v2302_v54, %v2301_v55  ;;  %4272 = vmatmul.msk.bf16.vlgmr.msrb.gmra.mxu3 %vm1705_vm1, %v5958_v60  ;;  %v2375_v8 = vpop.f32.mrf.mxu0  ;;  %v6026_v54 = vperm.slane %v6021_v4, 0 }
 0x47f   : > { %v2258_v0 = vpop.f32.mrf.mxu3  ;;  %v2376_v35 = vadd.f32 %v5952_v58, %v2375_v8  ;;  %2804 = vmatpush.bf16.msra.mxu0 %v4159_v47  ;;  %v4403_v47 = vld [vmem:[%s6488_s14 + $0xd8] sm:$0xf0] }
 0x480   : > { %4140 = vmatmul.msk.bf16.gmra.mxu0 %vm1823_vm2, %v2313_v62  ;;  %v2259_v63 = vadd.f32 %v2258_v0, %v2156_v59 }
 0x481   : > { %v2412_v2 = vmax.f32 %v2376_v35, 0.0 }
 0x482   : > { %v2287_v50 = vadd.f32 %v5849_v36, %v2259_v63 }
 0x484   : > { %v2303_v39 = vmax.f32 %v2287_v50, 0.0 }
 0x486   : > { %v2377_v43 = vpop.f32.mrf.mxu0 }
 0x487   : > { %v2378_v5 = vadd.f32 %v5952_v58, %v2377_v43  ;;  %v2260_v44 = vpop.f32.mrf.mxu3 }
 0x488   : > { %v2261_v31 = vadd.f32 %v2260_v44, %v2158_v14 }
 0x489   : > { %v2413_v30 = vmax.f32 %v2378_v5, 0.0 }
 0x48a   : > { %v2288_v22 = vadd.f32 %v5849_v36, %v2261_v31 }
 0x48b   : > { %v5971_v42 = vpack.c.bf16 %v2413_v30, %v2412_v2 }
 0x48c   : > { %v2304_v15 = vmax.f32 %v2288_v22, 0.0 }
 0x48d   : > { %4257 = vmatmul.msk.bf16.gmra.mxu1 %vm1705_vm1, %v5971_v42  ;;  %4265 = vmatmul.msk.bf16.gmra.mxu2 %vm1705_vm1, %v5971_v42 }
 0x48e   : > { %v2314_v45 = vpack.c.bf16 %v2304_v15, %v2303_v39  ;;  %4273 = vmatmul.msk.bf16.gmra.mxu3 %vm1705_vm1, %v5971_v42  ;;  %v2380_v7 = vpop.f32.mrf.mxu0 }
 0x48f   : > { %v2381_v21 = vadd.f32 %v5952_v58, %v2380_v7 }
 0x490   : > { %4141 = vmatmul.msk.bf16.gmra.mxu0 %vm1823_vm2, %v2314_v45 }
 0x491   : > { %v2414_v16 = vmax.f32 %v2381_v21, 0.0 }
 0x496   : > { %v2382_v37 = vpop.f32.mrf.mxu0 }
 0x497   : > { %v2383_v61 = vadd.f32 %v5952_v58, %v2382_v37 }
 0x499   : > { %v2415_v17 = vmax.f32 %v2383_v61, 0.0 }
 0x49b   : > { %v5982_v18 = vpack.c.bf16 %v2415_v17, %v2414_v16 }
 0x49d   : > { %4258 = vmatmul.msk.bf16.gmra.mxu1 %vm1705_vm1, %v5982_v18  ;;  %4266 = vmatmul.msk.bf16.gmra.mxu2 %vm1705_vm1, %v5982_v18 }
 0x49e   : > { %4274 = vmatmul.msk.bf16.gmra.mxu3 %vm1705_vm1, %v5982_v18 }
 0x4c6   : > { %v2263_v20 = vpop.f32.mrf.mxu3 }
 0x4c7   : > { %v2264_v23 = vadd.f32 %v2263_v20, %v2161_v24 }
 0x4c9   : > { %v2289_v33 = vadd.f32 %v5849_v36, %v2264_v23 }
 0x4cb   : > { %v2305_v53 = vmax.f32 %v2289_v33, 0.0 }
 0x4ce   : > { %v2265_v28 = vpop.f32.mrf.mxu3 }
 0x4cf   : > { %v2266_v48 = vadd.f32 %v2265_v28, %v2163_v32 }
 0x4d1   : > { %v2290_v9 = vadd.f32 %v5849_v36, %v2266_v48 }
 0x4d3   : > { %v2306_v1 = vmax.f32 %v2290_v9, 0.0 }
 0x4d5   : > { %v2315_v12 = vpack.c.bf16 %v2306_v1, %v2305_v53 }
 0x4d7   : > { %4142 = vmatmul.msk.bf16.gmra.mxu0 %vm1823_vm2, %v2315_v12 }
 0x4ed   : > { %v2385_v40 = vpop.f32.mrf.mxu0 }
 0x4ee   : > { %v2268_v34 = vpop.f32.mrf.mxu3  ;;  %v2386_v25 = vadd.f32 %v5952_v58, %v2385_v40  ;;  %v4254_v40 = vld [vmem:[%s6488_s14 + $0xc0] sm:$0xf] }
 0x4ef   : > { %v2269_v49 = vadd.f32 %v2268_v34, %v2166_v6  ;;  %v4248_v6 = vld [vmem:[%s6488_s14 + $0xd4] sm:$0xf0] }
 0x4f0   : > { %v2416_v62 = vmax.f32 %v2386_v25, 0.0  ;;  %v4251_v34 = vor.u32 %v4399_v38, %v4248_v6  ;;  %v4395_v6 = vld [vmem:[%s6488_s14 + $0x98] sm:$0xf0] }
 0x4f1   : > { %v2291_v59 = vadd.f32 %v5849_v36, %v2269_v49 }
 0x4f2   : > { %2899 = vmatpush.bf16.msra.mxu2 %v4251_v34 }
 0x4f3   : > { %v2307_v14 = vmax.f32 %v2291_v59, 0.0 }
 0x4f5   : > { %v2387_v11 = vpop.f32.mrf.mxu0 }
 0x4f6   : > { %v2388_v13 = vadd.f32 %v5952_v58, %v2387_v11  ;;  %v2270_v29 = vpop.f32.mrf.mxu3  ;;  %v4255_v11 = vor.u32 %v4403_v47, %v4254_v40 }
 0x4f7   : > { %v2271_v55 = vadd.f32 %v2270_v29, %v2168_v19 }
 0x4f8   : > { %v2417_v8 = vmax.f32 %v2388_v13, 0.0  ;;  %2948 = vmatpush.bf16.msra.mxu3 %v4255_v11 }
 0x4f9   : > { %v2292_v0 = vadd.f32 %v5849_v36, %v2271_v55  ;;  %v6039_v36 = vperm.slane %v6021_v4, 1 }
 0x4fa   : > { %v6029_v63 = vpack.c.bf16 %v2417_v8, %v2416_v62  ;;  %v2659_v35 = vpop.f32.mrf.mxu1 }
 0x4fb   : > { %v2308_v43 = vmax.f32 %v2292_v0, 0.0  ;;  %v2660_v5 = vadd.f32 %v2659_v35, %v6026_v54 }
 0x4fc   : > { %4259 = vmatmul.msk.bf16.gmra.mxu1 %vm1705_vm1, %v6029_v63  ;;  %4267 = vmatmul.msk.bf16.gmra.mxu2 %vm1705_vm1, %v6029_v63 }
 0x4fd   : > { %v2316_v44 = vpack.c.bf16 %v2308_v43, %v2307_v14  ;;  %v2993_v50 = vsub.f32 0.0, %v2660_v5  ;;  %4275 = vmatmul.msk.bf16.gmra.mxu3 %vm1705_vm1, %v6029_v63  ;;  %v2390_v31 = vpop.f32.mrf.mxu0 }
 0x4fe   : > { %v2391_v7 = vadd.f32 %v5952_v58, %v2390_v31 }
 0x4ff   : > { %v3105_v2 = vmul.f32 1.442695, %v2993_v50  ;;  %4143 = vmatmul.msk.bf16.gmra.mxu0 %vm1823_vm2, %v2316_v44 }
 0x500   : > { %v2708_v30 = vpop.f32.mrf.mxu2  ;;  %v2418_v20 = vmax.f32 %v2391_v7, 0.0 }
 0x501   : > { %4487 = vpow2.f32 %v3105_v2  ;;  %v2709_v22 = vadd.f32 %v2708_v30, %v6039_v36  ;;  %v4246_v2 = vld [vmem:[%s6488_s14 + $0xb8] sm:$0xf]  ;;  %v4402_v30 = vld [vmem:[%s6488_s14 + $0xd0] sm:$0xf0] }
 0x502   : > { %v2661_v39 = vpop.f32.mrf.mxu1 }
 0x503   : > { %v2994_v15 = vsub.f32 0.0, %v2709_v22  ;;  %v2662_v45 = vadd.f32 %v2661_v39, %v6026_v54 }
 0x505   : > { %v3107_v21 = vmul.f32 1.442695, %v2994_v15  ;;  %v3000_v37 = vsub.f32 0.0, %v2662_v45  ;;  %v2392_v61 = vpop.f32.mrf.mxu0 }
 0x506   : > { %v2393_v16 = vadd.f32 %v5952_v58, %v2392_v61 }
 0x507   : > { %v4488_v17 = vpop.eup %4487  ;;  %4489 = vpow2.f32 %v3107_v21  ;;  %v3119_v24 = vmul.f32 1.442695, %v3000_v37  ;;  %v4247_v37 = vor.u32 %v4402_v30, %v4246_v2 }
 0x508   : > { %v2419_v23 = vmax.f32 %v2393_v16, 0.0  ;;  %v2710_v32 = vpop.f32.mrf.mxu2  ;;  %v3329_v33 = vadd.f32 1.0, %v4488_v17 }
 0x509   : > { %4491 = vpow2.f32 %v3119_v24  ;;  %v2711_v28 = vadd.f32 %v2710_v32, %v6039_v36  ;;  %2850 = vmatpush.bf16.msra.mxu1 %v4247_v37 }
 0x50a   : > { %v6047_v48 = vpack.c.bf16 %v2419_v23, %v2418_v20  ;;  %v2664_v9 = vpop.f32.mrf.mxu1  ;;  %4493 = vrcp.f32 %v3329_v33 }
 0x50b   : > { %v3001_v53 = vsub.f32 0.0, %v2711_v28  ;;  %v2665_v1 = vadd.f32 %v2664_v9, %v6026_v54 }
 0x50c   : > { %4260 = vmatmul.msk.bf16.gmra.mxu1 %vm1705_vm1, %v6047_v48  ;;  %4268 = vmatmul.msk.bf16.gmra.mxu2 %vm1705_vm1, %v6047_v48 }
 0x50d   : > { %v4490_v12 = vpop.eup %4489  ;;  %v3121_v26 = vmul.f32 1.442695, %v3001_v53  ;;  %v3007_v51 = vsub.f32 0.0, %v2665_v1  ;;  %4276 = vmatmul.msk.bf16.gmra.mxu3 %vm1705_vm1, %v6047_v48  ;;  %v2395_v57 = vpop.f32.mrf.mxu0 }
 0x50e   : > { %v3330_v10 = vadd.f32 1.0, %v4490_v12  ;;  %v2396_v13 = vadd.f32 %v5952_v58, %v2395_v57  ;;  %v4392_v12 = vld [vmem:[%s6488_s14 + $0x84] sm:$0xf] }
 0x50f   : > { %v4492_v52 = vpop.eup %4491  ;;  %4495 = vpow2.f32 %v3121_v26  ;;  %4280 = vmatmul.msk.bf16.vlgmr.msra.gmra.mxu0 %vm1705_vm1, %v5958_v60  ;;  %v3133_v56 = vmul.f32 1.442695, %v3007_v51  ;;  %v4220_v26 = vld [vmem:[%s6488_s14 + $0x9c] sm:$0xf0] }
 0x510   : > { %4497 = vrcp.f32 %v3330_v10  ;;  %v2713_v27 = vpop.f32.mrf.mxu2  ;;  %v3336_v41 = vadd.f32 1.0, %v4492_v52  ;;  %v4494_v19 = vpop.eup %4493  ;;  %v2420_v5 = vmax.f32 %v2396_v13, 0.0  ;;  %v4223_v57 = vor.u32 %v4392_v12, %v4220_v26  ;;  %v4226_v10 = vld [vmem:[%s6488_s14 + $0x88] sm:$0xf]  ;;  %v4396_v52 = vld [vmem:[%s6488_s14 + $0xa0] sm:$0xf0] }
 0x511   : > { %v2714_v3 = vadd.f32 %v2713_v27, %v6039_v36  ;;  %4499 = vpow2.f32 %v3133_v56  ;;  %v4218_v56 = vld [vmem:[%s6488_s14 + $0x80] sm:$0xf]  ;;  %v4227_v38 = vor.u32 %v4396_v52, %v4226_v10  ;;  %v4378_v10 = vld [vmem:[%s6488_s14 + $0x14] sm:$0xf]  ;;  %v4164_v52 = vld [vmem:[%s6488_s14 + $0x2c] sm:$0xf0] }
 0x512   : > { %v2666_v46 = vpop.f32.mrf.mxu1  ;;  %4501 = vrcp.f32 %v3336_v41  ;;  %2900 = vmatpush.bf16.msra.mxu2 %v4223_v57  ;;  %v4219_v41 = vor.u32 %v4395_v6, %v4218_v56  ;;  %v2757_v57 = vpop.f32.mrf.mxu3  ;;  %v4170_v56 = vld [vmem:[%s6488_s14 + $0x18] sm:$0xf] }
 0x513   : > { %v3008_v49 = vsub.f32 0.0, %v2714_v3  ;;  %v2667_v25 = vadd.f32 %v2666_v46, %v6026_v54  ;;  %2949 = vmatpush.bf16.msra.mxu3 %v4227_v38 }
 0x514   : > { %2851 = vmatpush.bf16.msra.mxu1 %v4219_v41  ;;  %v4381_v41 = vld [vmem:[%s6488_s14 + $0x28] sm:$0xf0] }
 0x515   : > { %v4496_v29 = vpop.eup %4495  ;;  %v3135_v59 = vmul.f32 1.442695, %v3008_v49  ;;  %v3014_v55 = vsub.f32 0.0, %v2667_v25  ;;  %v2397_v62 = vpop.f32.mrf.mxu0 }
 0x516   : > { %v4498_v8 = vpop.eup %4497  ;;  %v3337_v0 = vadd.f32 1.0, %v4496_v29  ;;  %v2398_v35 = vadd.f32 %v5952_v58, %v2397_v62 }
 0x517   : > { %v3553_v14 = vpack.c.bf16 %v4498_v8, %v4494_v19  ;;  %4503 = vpow2.f32 %v3135_v59  ;;  %v3147_v43 = vmul.f32 1.442695, %v3014_v55  ;;  %v4500_v22 = vpop.eup %4499 }
 0x518   : > { %4505 = vrcp.f32 %v3337_v0  ;;  %v2421_v44 = vmax.f32 %v2398_v35, 0.0  ;;  %v2715_v50 = vpop.f32.mrf.mxu2  ;;  %v3343_v45 = vadd.f32 1.0, %v4500_v22  ;;  %v4502_v61 = vpop.eup %4501 }
 0x519   : > { %3617 = vst [vmem:[%s6077_s21] sm:$0xff] %v3553_v14  ;;  %v2716_v31 = vadd.f32 %v2715_v50, %v6039_v36  ;;  %4507 = vpow2.f32 %v3147_v43 }
 0x51a   : > { %v6088_v39 = vpack.c.bf16 %v2421_v44, %v2420_v5  ;;  %v2669_v15 = vpop.f32.mrf.mxu1  ;;  %4509 = vrcp.f32 %v3343_v45  ;;  %v4385_v45 = vld [vmem:[%s6488_s14 + $0x4c] sm:$0xf]  ;;  %v2759_v6 = vpop.f32.mrf.mxu3 }
 0x51b   : > { %v3015_v7 = vsub.f32 0.0, %v2716_v31  ;;  %v2670_v21 = vadd.f32 %v2669_v15, %v6026_v54 }
 0x51c   : > { %4261 = vmatmul.msk.bf16.gmra.mxu1 %vm1705_vm1, %v6088_v39  ;;  %4269 = vmatmul.msk.bf16.gmra.mxu2 %vm1705_vm1, %v6088_v39 }
 0x51d   : > { %v4504_v16 = vpop.eup %4503  ;;  %v3149_v17 = vmul.f32 1.442695, %v3015_v7  ;;  %v3021_v24 = vsub.f32 0.0, %v2670_v21  ;;  %4277 = vmatmul.msk.bf16.gmra.mxu3 %vm1705_vm1, %v6088_v39  ;;  %v4192_v7 = vld [vmem:[%s6488_s14 + $0x64] sm:$0xf0] }
 0x51e   : > { %v4506_v20 = vpop.eup %4505  ;;  %v3344_v23 = vadd.f32 1.0, %v4504_v16  ;;  %v4198_v21 = vld [vmem:[%s6488_s14 + $0x50] sm:$0xf]  ;;  %v4195_v37 = vor.u32 %v4385_v45, %v4192_v7 }
 0x51f   : > { %v3557_v32 = vpack.c.bf16 %v4506_v20, %v4502_v61  ;;  %4511 = vpow2.f32 %v3149_v17  ;;  %4281 = vmatmul.msk.bf16.gmra.mxu0 %vm1705_vm1, %v5971_v42  ;;  %v4508_v28 = vpop.eup %4507  ;;  %v3161_v33 = vmul.f32 1.442695, %v3021_v24  ;;  %v4389_v61 = vld [vmem:[%s6488_s14 + $0x68] sm:$0xf0] }
 0x520   : > { %4513 = vrcp.f32 %v3344_v23  ;;  %v2718_v9 = vpop.f32.mrf.mxu2  ;;  %v3350_v53 = vadd.f32 1.0, %v4508_v28  ;;  %v4510_v40 = vpop.eup %4509  ;;  %v4199_v16 = vor.u32 %v4389_v61, %v4198_v21  ;;  %2901 = vmatpush.bf16.msra.mxu2 %v4195_v37  ;;  %v4190_v23 = vld [vmem:[%s6488_s14 + $0x48] sm:$0xf] }
 0x521   : > { %3622 = vst [vmem:[%s6077_s21 + $0x1c] sm:$0xff] %v3557_v32  ;;  %v2719_v1 = vadd.f32 %v2718_v9, %v6039_v36  ;;  %4515 = vpow2.f32 %v3161_v33  ;;  %v4388_v32 = vld [vmem:[%s6488_s14 + $0x60] sm:$0xf0] }
 0x522   : > { %v2671_v51 = vpop.f32.mrf.mxu1  ;;  %4517 = vrcp.f32 %v3350_v53  ;;  %2950 = vmatpush.bf16.msra.mxu3 %v4199_v16  ;;  %v4191_v28 = vor.u32 %v4388_v32, %v4190_v23  ;;  %v6196_v23 = vperm.slane %v6021_v4, 3 }
 0x523   : > { %v3022_v27 = vsub.f32 0.0, %v2719_v1  ;;  %v2672_v3 = vadd.f32 %v2671_v51, %v6026_v54 }
 0x524   : > { %2852 = vmatpush.bf16.msra.mxu1 %v4191_v28 }
 0x525   : > { %v4512_v46 = vpop.eup %4511  ;;  %v3163_v34 = vmul.f32 1.442695, %v3022_v27  ;;  %v3028_v47 = vsub.f32 0.0, %v2672_v3  ;;  %v4167_v27 = vor.u32 %v4378_v10, %v4164_v52  ;;  %v4382_v3 = vld [vmem:[%s6488_s14 + $0x30] sm:$0xf0] }
 0x526   : > { %v4514_v49 = vpop.eup %4513  ;;  %v3351_v25 = vadd.f32 1.0, %v4512_v46  ;;  %v4171_v38 = vor.u32 %v4382_v3, %v4170_v56 }
 0x527   : > { %v3561_v11 = vpack.c.bf16 %v4514_v49, %v4510_v40  ;;  %4519 = vpow2.f32 %v3163_v34  ;;  %v3175_v19 = vmul.f32 1.442695, %v3028_v47  ;;  %v4516_v59 = vpop.eup %4515  ;;  %2902 = vmatpush.bf16.msra.mxu2 %v4167_v27  ;;  %v4162_v40 = vld [vmem:[%s6488_s14 + $0x10] sm:$0xf]  ;;  %v2762_v49 = vpop.f32.mrf.mxu3 }
 0x528   : > { %4521 = vrcp.f32 %v3351_v25  ;;  %v2720_v13 = vpop.f32.mrf.mxu2  ;;  %v3357_v55 = vadd.f32 1.0, %v4516_v59  ;;  %v4518_v8 = vpop.eup %4517  ;;  %2951 = vmatpush.bf16.msra.mxu3 %v4171_v38  ;;  %v4163_v34 = vor.u32 %v4381_v41, %v4162_v40  ;;  %v6183_v25 = vperm.slane %v6021_v4, 2 }
 0x529   : > { %3626 = vst [vmem:[%s6077_s21 + $0x38] sm:$0xff] %v3561_v11  ;;  %v2721_v29 = vadd.f32 %v2720_v13, %v6039_v36  ;;  %4523 = vpow2.f32 %v3175_v19 }
 0x52a   : > { %4525 = vrcp.f32 %v3357_v55  ;;  %2853 = vmatpush.bf16.msra.mxu1 %v4163_v34  ;;  %v2758_v59 = vadd.f32 %v2757_v57, %v6183_v25 }
 0x52b   : > { %v3029_v62 = vsub.f32 0.0, %v2721_v29 }
 0x52d   : > { %v4520_v0 = vpop.eup %4519  ;;  %v3177_v35 = vmul.f32 1.442695, %v3029_v62 }
 0x52e   : > { %v4522_v14 = vpop.eup %4521  ;;  %v3358_v43 = vadd.f32 1.0, %v4520_v0 }
 0x52f   : > { %v3565_v5 = vpack.c.bf16 %v4522_v14, %v4518_v8  ;;  %4527 = vpow2.f32 %v3177_v35  ;;  %4282 = vmatmul.msk.bf16.gmra.mxu0 %vm1705_vm1, %v5982_v18  ;;  %v4524_v44 = vpop.eup %4523  ;;  %v2995_v14 = vsub.f32 0.0, %v2758_v59 }
 0x530   : > { %4529 = vrcp.f32 %v3358_v43  ;;  %v3364_v50 = vadd.f32 1.0, %v4524_v44  ;;  %v4526_v31 = vpop.eup %4525 }
 0x531   : > { %3630 = vst [vmem:[%s6077_s21 + $0x54] sm:$0xff] %v3565_v5  ;;  %v3109_v37 = vmul.f32 1.442695, %v2995_v14 }
 0x532   : > { %4531 = vrcp.f32 %v3364_v50  ;;  %v2760_v50 = vadd.f32 %v2759_v6, %v6183_v25 }
 0x534   : > { %v3002_v16 = vsub.f32 0.0, %v2760_v50 }
 0x535   : > { %v4528_v2 = vpop.eup %4527 }
 0x536   : > { %v4530_v30 = vpop.eup %4529  ;;  %v3365_v22 = vadd.f32 1.0, %v4528_v2 }
 0x537   : > { %v3569_v15 = vpack.c.bf16 %v4530_v30, %v4526_v31  ;;  %v2764_v31 = vpop.f32.mrf.mxu3 }
 0x538   : > { %4533 = vrcp.f32 %v3365_v22  ;;  %v4532_v17 = vpop.eup %4531  ;;  %v2763_v22 = vadd.f32 %v2762_v49, %v6183_v25 }
 0x539   : > { %3634 = vst [vmem:[%s6077_s21 + $0x70] sm:$0xff] %v3569_v15 }
 0x53e   : > { %v4534_v24 = vpop.eup %4533 }
 0x53f   : > { %v3573_v20 = vpack.c.bf16 %v4534_v24, %v4532_v17  ;;  %4283 = vmatmul.msk.bf16.gmra.mxu0 %vm1705_vm1, %v6029_v63  ;;  %v6208_v52 = vpop.f32.mrf.mxu3 }
 0x541   : > { %3638 = vst [vmem:[%s6077_s21 + $0x8c] sm:$0xff] %v3573_v20 }
 0x54f   : > { %4284 = vmatmul.msk.bf16.gmra.mxu0 %vm1705_vm1, %v6047_v48 }
 0x554   : > { %v2400_v33 = vpop.f32.mrf.mxu0 }
 0x555   : > { %v2401_v9 = vadd.f32 %v5952_v58, %v2400_v33 }
 0x557   : > { %v2422_v12 = vmax.f32 %v2401_v9, 0.0 }
 0x55c   : > { %v2402_v53 = vpop.f32.mrf.mxu0 }
 0x55d   : > { %v2403_v1 = vadd.f32 %v5952_v58, %v2402_v53 }
 0x55f   : > { %v2423_v26 = vmax.f32 %v2403_v1, 0.0  ;;  %4285 = vmatmul.msk.bf16.gmra.mxu0 %vm1705_vm1, %v6088_v39  ;;  %v3123_v1 = vmul.f32 1.442695, %v3002_v16 }
 0x561   : > { %v6153_v51 = vpack.c.bf16 %v2423_v26, %v2422_v12 }
 0x563   : > { %4262 = vmatmul.msk.bf16.gmra.mxu1 %vm1705_vm1, %v6153_v51  ;;  %4270 = vmatmul.msk.bf16.gmra.mxu2 %vm1705_vm1, %v6153_v51 }
 0x564   : > { %4278 = vmatmul.msk.bf16.gmra.mxu3 %vm1705_vm1, %v6153_v51 }
 0x56f   : > { %4286 = vmatmul.msk.bf16.gmra.mxu0 %vm1705_vm1, %v6153_v51 }
 0x579   : > { %v2674_v46 = vpop.f32.mrf.mxu1 }
 0x57a   : > { %v2675_v47 = vadd.f32 %v2674_v46, %v6026_v54 }
 0x57c   : > { %v3035_v11 = vsub.f32 0.0, %v2675_v47  ;;  %v2405_v19 = vpop.f32.mrf.mxu0 }
 0x57d   : > { %v2406_v35 = vadd.f32 %v5952_v58, %v2405_v19 }
 0x57e   : > { %v3189_v13 = vmul.f32 1.442695, %v3035_v11 }
 0x57f   : > { %v2723_v29 = vpop.f32.mrf.mxu2  ;;  %v2424_v45 = vmax.f32 %v2406_v35, 0.0 }
 0x580   : > { %4535 = vpow2.f32 %v3189_v13  ;;  %v2724_v55 = vadd.f32 %v2723_v29, %v6039_v36 }
 0x581   : > { %v2676_v62 = vpop.f32.mrf.mxu1 }
 0x582   : > { %v3036_v8 = vsub.f32 0.0, %v2724_v55  ;;  %v2677_v0 = vadd.f32 %v2676_v62, %v6026_v54  ;;  %v2765_v55 = vadd.f32 %v2764_v31, %v6183_v25 }
 0x584   : > { %v3191_v43 = vmul.f32 1.442695, %v3036_v8  ;;  %v3042_v5 = vsub.f32 0.0, %v2677_v0  ;;  %v2407_v44 = vpop.f32.mrf.mxu0 }
 0x585   : > { %v2408_v2 = vadd.f32 %v5952_v58, %v2407_v44  ;;  %v3009_v58 = vsub.f32 0.0, %v2763_v22  ;;  %v3016_v22 = vsub.f32 0.0, %v2765_v55 }
 0x586   : > { %v4536_v30 = vpop.eup %4535  ;;  %4537 = vpow2.f32 %v3191_v43  ;;  %v3203_v15 = vmul.f32 1.442695, %v3042_v5 }
 0x587   : > { %v2425_v7 = vmax.f32 %v2408_v2, 0.0  ;;  %v2725_v21 = vpop.f32.mrf.mxu2  ;;  %v3371_v17 = vadd.f32 1.0, %v4536_v30  ;;  %v3137_v10 = vmul.f32 1.442695, %v3009_v58 }
 0x588   : > { %4539 = vpow2.f32 %v3203_v15  ;;  %v2726_v61 = vadd.f32 %v2725_v21, %v6039_v36  ;;  %v6216_v15 = vpop.f32.mrf.mxu3 }
 0x589   : > { %v6193_v24 = vpack.c.bf16 %v2425_v7, %v2424_v45  ;;  %v2679_v20 = vpop.f32.mrf.mxu1  ;;  %4541 = vpow2.f32 %v3109_v37 }
 0x58a   : > { %v3043_v32 = vsub.f32 0.0, %v2726_v61  ;;  %v2680_v28 = vadd.f32 %v2679_v20, %v6026_v54  ;;  %4543 = vrcp.f32 %v3371_v17 }
 0x58b   : > { %4263 = vmatmul.msk.bf16.gmra.mxu1 %vm1705_vm1, %v6193_v24  ;;  %4271 = vmatmul.msk.bf16.gmra.mxu2 %vm1705_vm1, %v6193_v24 }
 0x58c   : > { %v4538_v33 = vpop.eup %4537  ;;  %v3205_v9 = vmul.f32 1.442695, %v3043_v32  ;;  %v3049_v53 = vsub.f32 0.0, %v2680_v28  ;;  %4279 = vmatmul.msk.bf16.gmra.mxu3 %vm1705_vm1, %v6193_v24  ;;  %4287 = vmatmul.msk.bf16.gmra.mxu0 %vm1705_vm1, %v6193_v24  ;;  %v2806_v4 = vpop.f32.mrf.mxu0 }
 0x58d   : > { %v3372_v12 = vadd.f32 1.0, %v4538_v33  ;;  %v2807_v26 = vadd.f32 %v2806_v4, %v6196_v23 }
 0x58e   : > { %v4540_v57 = vpop.eup %4539  ;;  %4545 = vpow2.f32 %v3205_v9  ;;  %v3217_v56 = vmul.f32 1.442695, %v3049_v53 }
 0x58f   : > { %4547 = vrcp.f32 %v3372_v12  ;;  %v2996_v27 = vsub.f32 0.0, %v2807_v26  ;;  %v2728_v3 = vpop.f32.mrf.mxu2  ;;  %v3378_v6 = vadd.f32 1.0, %v4540_v57  ;;  %v4542_v46 = vpop.eup %4541 }
 0x590   : > { %v2729_v38 = vadd.f32 %v2728_v3, %v6039_v36  ;;  %4549 = vpow2.f32 %v3123_v1  ;;  %v4544_v49 = vpop.eup %4543  ;;  %v3331_v43 = vadd.f32 1.0, %v4542_v46  ;;  %v3151_v1 = vmul.f32 1.442695, %v3016_v22 }
 0x591   : > { %v3111_v40 = vmul.f32 1.442695, %v2996_v27  ;;  %v2681_v41 = vpop.f32.mrf.mxu1  ;;  %4551 = vpow2.f32 %v3137_v10  ;;  %v2768_v10 = vadd.f32 %v6208_v52, %v6183_v25 }
 0x592   : > { %v3050_v34 = vsub.f32 0.0, %v2729_v38  ;;  %v2682_v47 = vadd.f32 %v2681_v41, %v6026_v54  ;;  %4553 = vpow2.f32 %v3217_v56 }
 0x593   : > { %4555 = vpow2.f32 %v3111_v40 }
 0x594   : > { %v4546_v11 = vpop.eup %4545  ;;  %v3219_v19 = vmul.f32 1.442695, %v3050_v34  ;;  %v3056_v13 = vsub.f32 0.0, %v2682_v47  ;;  %v2808_v29 = vpop.f32.mrf.mxu0  ;;  %4557 = vrcp.f32 %v3378_v6 }
 0x595   : > { %v4548_v59 = vpop.eup %4547  ;;  %v3379_v62 = vadd.f32 1.0, %v4546_v11  ;;  %v2809_v8 = vadd.f32 %v2808_v29, %v6196_v23  ;;  %v6230_v6 = vpop.f32.mrf.mxu3 }
 0x596   : > { %v3577_v0 = vpack.c.bf16 %v4548_v59, %v4544_v49  ;;  %4559 = vpow2.f32 %v3219_v19  ;;  %v3231_v35 = vmul.f32 1.442695, %v3056_v13  ;;  %v4550_v14 = vpop.eup %4549  ;;  %v3023_v49 = vsub.f32 0.0, %v2768_v10 }
 0x597   : > { %4561 = vrcp.f32 %v3379_v62  ;;  %v3003_v5 = vsub.f32 0.0, %v2809_v8  ;;  %v2730_v44 = vpop.f32.mrf.mxu2  ;;  %v4552_v50 = vpop.eup %4551  ;;  %v3338_v9 = vadd.f32 1.0, %v4550_v14 }
 0x598   : > { %3642 = vst [vmem:[%s6077_s21 + $0xa8] sm:$0xff] %v3577_v0  ;;  %v2731_v2 = vadd.f32 %v2730_v44, %v6039_v36  ;;  %v4554_v30 = vpop.eup %4553  ;;  %4563 = vpow2.f32 %v3231_v35  ;;  %v3345_v57 = vadd.f32 1.0, %v4552_v50  ;;  %v2770_v44 = vadd.f32 %v6216_v15, %v6183_v25 }
 0x599   : > { %v2684_v31 = vpop.f32.mrf.mxu1  ;;  %v4556_v45 = vpop.eup %4555  ;;  %v3385_v7 = vadd.f32 1.0, %v4554_v30  ;;  %v3125_v21 = vmul.f32 1.442695, %v3003_v5  ;;  %4565 = vrcp.f32 %v3331_v43 }
 0x59a   : > { %v3057_v37 = vsub.f32 0.0, %v2731_v2  ;;  %v2685_v61 = vadd.f32 %v2684_v31, %v6026_v54  ;;  %v4558_v16 = vpop.eup %4557  ;;  %v3332_v17 = vadd.f32 1.0, %v4556_v45  ;;  %v3165_v31 = vmul.f32 1.442695, %v3023_v49 }
 0x59b   : > { %4288 = vmatmul.msk.bf16.vlgmr.msra.gmra.mxu1 %vm1705_vm1, %v5958_v60  ;;  %4296 = vmatmul.msk.bf16.vlgmr.msra.gmra.mxu2 %vm1705_vm1, %v5958_v60  ;;  %4567 = vrcp.f32 %v3385_v7 }
 0x59c   : > { %v4560_v20 = vpop.eup %4559  ;;  %v3233_v58 = vmul.f32 1.442695, %v3057_v37  ;;  %v3063_v32 = vsub.f32 0.0, %v2685_v61  ;;  %4304 = vmatmul.msk.bf16.vlgmr.msra.gmra.mxu3 %vm1705_vm1, %v5958_v60  ;;  %v2811_v28 = vpop.f32.mrf.mxu0  ;;  %4569 = vrcp.f32 %v3332_v17  ;;  %v3030_v17 = vsub.f32 0.0, %v2770_v44 }
 0x59d   : > { %v4562_v33 = vpop.eup %4561  ;;  %v3386_v53 = vadd.f32 1.0, %v4560_v20  ;;  %v2812_v4 = vadd.f32 %v2811_v28, %v6196_v23  ;;  %4571 = vpow2.f32 %v3125_v21  ;;  %v2774_v20 = vpop.f32.mrf.mxu3 }
 0x59e   : > { %v3581_v12 = vpack.c.bf16 %v4562_v33, %v4558_v16  ;;  %v4564_v26 = vpop.eup %4563  ;;  %v3245_v60 = vmul.f32 1.442695, %v3063_v32  ;;  %v3179_v10 = vmul.f32 1.442695, %v3030_v17 }
 0x59f   : > { %4573 = vrcp.f32 %v3386_v53  ;;  %v3010_v56 = vsub.f32 0.0, %v2812_v4  ;;  %v2733_v27 = vpop.f32.mrf.mxu2  ;;  %v4566_v38 = vpop.eup %4565  ;;  %v3392_v11 = vadd.f32 1.0, %v4564_v26 }
 0x5a0   : > { %3646 = vst [vmem:[%s6077_s21 + $0xc4] sm:$0xff] %v3581_v12  ;;  %4575 = vpow2.f32 %v3233_v58  ;;  %v2734_v3 = vadd.f32 %v2733_v27, %v6039_v36 }
 0x5a1   : > { %4577 = vrcp.f32 %v3338_v9  ;;  %v3139_v40 = vmul.f32 1.442695, %v3010_v56  ;;  %v2686_v41 = vpop.f32.mrf.mxu1  ;;  %v4568_v46 = vpop.eup %4567 }
 0x5a2   : > { %4579 = vpow2.f32 %v3151_v1  ;;  %v3064_v34 = vsub.f32 0.0, %v2734_v3  ;;  %v2687_v47 = vadd.f32 %v2686_v41, %v6026_v54  ;;  %v4570_v52 = vpop.eup %4569  ;;  %v2773_v3 = vadd.f32 %v6230_v6, %v6183_v25 }
 0x5a3   : > { %4581 = vrcp.f32 %v3345_v57  ;;  %v4572_v19 = vpop.eup %4571  ;;  %v3554_v13 = vpack.c.bf16 %v4570_v52, %v4566_v38 }
 0x5a4   : > { %4583 = vpow2.f32 %v3245_v60  ;;  %v3247_v29 = vmul.f32 1.442695, %v3064_v34  ;;  %v3070_v59 = vsub.f32 0.0, %v2687_v47  ;;  %v2813_v55 = vpop.f32.mrf.mxu0  ;;  %v3339_v8 = vadd.f32 1.0, %v4572_v19 }
 0x5a5   : > { %v4574_v62 = vpop.eup %4573  ;;  %4585 = vpow2.f32 %v3139_v40  ;;  %v2814_v0 = vadd.f32 %v2813_v55, %v6196_v23  ;;  %3618 = vst [vmem:[%s6077_s21 + $0x8] sm:$0xff] %v3554_v13  ;;  %v2777_v19 = vpop.f32.mrf.mxu3 }
 0x5a6   : > { %v4576_v35 = vpop.eup %4575  ;;  %v3585_v14 = vpack.c.bf16 %v4574_v62, %v4568_v46  ;;  %4587 = vpow2.f32 %v3247_v29  ;;  %v3259_v43 = vmul.f32 1.442695, %v3070_v59 }
 0x5a7   : > { %v4578_v5 = vpop.eup %4577  ;;  %4589 = vrcp.f32 %v3339_v8  ;;  %v3393_v50 = vadd.f32 1.0, %v4576_v35  ;;  %v3017_v2 = vsub.f32 0.0, %v2814_v0  ;;  %v2735_v30 = vpop.f32.mrf.mxu2  ;;  %v2775_v35 = vadd.f32 %v2774_v20, %v6183_v25 }
 0x5a8   : > { %v4580_v22 = vpop.eup %4579  ;;  %3650 = vst [vmem:[%s6077_s21 + $0xe0] sm:$0xff] %v3585_v14  ;;  %4591 = vrcp.f32 %v3392_v11  ;;  %v2736_v45 = vadd.f32 %v2735_v30, %v6039_v36  ;;  %v3037_v11 = vsub.f32 0.0, %v2773_v3 }
 0x5a9   : > { %v4582_v7 = vpop.eup %4581  ;;  %4593 = vrcp.f32 %v3393_v50  ;;  %v3153_v21 = vmul.f32 1.442695, %v3017_v2  ;;  %v3352_v12 = vadd.f32 1.0, %v4580_v22  ;;  %v3044_v30 = vsub.f32 0.0, %v2775_v35 }
 0x5aa   : > { %v4584_v37 = vpop.eup %4583  ;;  %4595 = vpow2.f32 %v3259_v43  ;;  %v3071_v61 = vsub.f32 0.0, %v2736_v45  ;;  %v3193_v43 = vmul.f32 1.442695, %v3037_v11 }
 0x5ab   : > { %v4586_v16 = vpop.eup %4585  ;;  %v3399_v15 = vadd.f32 1.0, %v4584_v37  ;;  %4597 = vpow2.f32 %v3153_v21  ;;  %4289 = vmatmul.msk.bf16.gmra.mxu1 %vm1705_vm1, %v5971_v42  ;;  %4297 = vmatmul.msk.bf16.gmra.mxu2 %vm1705_vm1, %v5971_v42  ;;  %v3207_v17 = vmul.f32 1.442695, %v3044_v30 }
 0x5ac   : > { %v4588_v58 = vpop.eup %4587  ;;  %4599 = vpow2.f32 %v3165_v31  ;;  %v3346_v32 = vadd.f32 1.0, %v4586_v16  ;;  %v3261_v28 = vmul.f32 1.442695, %v3071_v61  ;;  %4305 = vmatmul.msk.bf16.gmra.mxu3 %vm1705_vm1, %v5971_v42  ;;  %v2816_v33 = vpop.f32.mrf.mxu0 }
 0x5ad   : > { %v4590_v9 = vpop.eup %4589  ;;  %4601 = vrcp.f32 %v3399_v15  ;;  %v3400_v53 = vadd.f32 1.0, %v4588_v58  ;;  %v2817_v4 = vadd.f32 %v2816_v33, %v6196_v23  ;;  %v2779_v61 = vpop.f32.mrf.mxu3  ;;  %v2778_v58 = vadd.f32 %v2777_v19, %v6183_v25 }
 0x5ae   : > { %v4592_v1 = vpop.eup %4591  ;;  %v3558_v26 = vpack.c.bf16 %v4590_v9, %v4578_v5  ;;  %4603 = vrcp.f32 %v3346_v32 }
 0x5af   : > { %v4594_v57 = vpop.eup %4593  ;;  %4605 = vrcp.f32 %v3400_v53  ;;  %v3024_v56 = vsub.f32 0.0, %v2817_v4  ;;  %v3051_v4 = vsub.f32 0.0, %v2778_v58 }
 0x5b0   : > { %v4596_v27 = vpop.eup %4595  ;;  %3623 = vst [vmem:[%s6077_s21 + $0x24] sm:$0xff] %v3558_v26  ;;  %v3589_v60 = vpack.c.bf16 %v4594_v57, %v4592_v1  ;;  %4607 = vpow2.f32 %v3261_v28  ;;  %v2780_v57 = vadd.f32 %v2779_v61, %v6183_v25 }
 0x5b1   : > { %v4598_v42 = vpop.eup %4597  ;;  %v3167_v38 = vmul.f32 1.442695, %v3024_v56  ;;  %4609 = vrcp.f32 %v3352_v12  ;;  %v3406_v47 = vadd.f32 1.0, %v4596_v27 }
 0x5b2   : > { %v4600_v40 = vpop.eup %4599  ;;  %3654 = vst [vmem:[%s6077_s21 + $0xfc] sm:$0xff] %v3589_v60  ;;  %v3353_v41 = vadd.f32 1.0, %v4598_v42  ;;  %4611 = vpow2.f32 %v3179_v10  ;;  %v3221_v60 = vmul.f32 1.442695, %v3051_v4 }
 0x5b3   : > { %v4602_v46 = vpop.eup %4601  ;;  %v3359_v55 = vadd.f32 1.0, %v4600_v40  ;;  %v3058_v40 = vsub.f32 0.0, %v2780_v57 }
 0x5b4   : > { %v4604_v34 = vpop.eup %4603  ;;  %4613 = vrcp.f32 %v3353_v41  ;;  %v2818_v52 = vpop.f32.mrf.mxu0 }
 0x5b5   : > { %v4606_v49 = vpop.eup %4605  ;;  %v3562_v13 = vpack.c.bf16 %v4604_v34, %v4582_v7  ;;  %4615 = vpow2.f32 %v3167_v38  ;;  %v2819_v6 = vadd.f32 %v2818_v52, %v6196_v23  ;;  %v2782_v42 = vpop.f32.mrf.mxu3  ;;  %v3235_v11 = vmul.f32 1.442695, %v3058_v40 }
 0x5b6   : > { %v4608_v29 = vpop.eup %4607  ;;  %v3593_v59 = vpack.c.bf16 %v4606_v49, %v4602_v46  ;;  %4617 = vrcp.f32 %v3406_v47 }
 0x5b7   : > { %3627 = vst [vmem:[%s6077_s21 + $0x40] sm:$0xff] %v3562_v13  ;;  %v3407_v62 = vadd.f32 1.0, %v4608_v29  ;;  %v3031_v8 = vsub.f32 0.0, %v2819_v6  ;;  %v4610_v0 = vpop.eup %4609  ;;  %v2783_v29 = vadd.f32 %v2782_v42, %v6183_v25 }
 0x5b8   : > { %3658 = vst [vmem:[%s6077_s21 + $0x118] sm:$0xff] %v3593_v59  ;;  %v4612_v14 = vpop.eup %4611 }
 0x5b9   : > { %4619 = vrcp.f32 %v3407_v62  ;;  %v3181_v5 = vmul.f32 1.442695, %v3031_v8  ;;  %v3366_v21 = vadd.f32 1.0, %v4612_v14  ;;  %v3065_v14 = vsub.f32 0.0, %v2783_v29 }
 0x5ba   : > { %v4614_v44 = vpop.eup %4613  ;;  %4621 = vrcp.f32 %v3359_v55 }
 0x5bb   : > { %v4616_v50 = vpop.eup %4615  ;;  %v3566_v2 = vpack.c.bf16 %v4614_v44, %v4610_v0  ;;  %4290 = vmatmul.msk.bf16.gmra.mxu1 %vm1705_vm1, %v5982_v18  ;;  %4298 = vmatmul.msk.bf16.gmra.mxu2 %vm1705_vm1, %v5982_v18  ;;  %4623 = vpow2.f32 %v3181_v5 }
 0x5bc   : > { %v3360_v22 = vadd.f32 1.0, %v4616_v50  ;;  %4306 = vmatmul.msk.bf16.gmra.mxu3 %vm1705_vm1, %v5982_v18  ;;  %v2821_v31 = vpop.f32.mrf.mxu0  ;;  %4625 = vpow2.f32 %v3193_v43  ;;  %v4618_v7 = vpop.eup %4617 }
 0x5bd   : > { %3631 = vst [vmem:[%s6077_s21 + $0x5c] sm:$0xff] %v3566_v2  ;;  %v2822_v45 = vadd.f32 %v2821_v31, %v6196_v23  ;;  %v3249_v31 = vmul.f32 1.442695, %v3065_v14 }
 0x5be   : > { %4627 = vrcp.f32 %v3360_v22 }
 0x5bf   : > { %v4620_v37 = vpop.eup %4619  ;;  %v3038_v16 = vsub.f32 0.0, %v2822_v45  ;;  %4629 = vrcp.f32 %v3366_v21 }
 0x5c0   : > { %v3597_v20 = vpack.c.bf16 %v4620_v37, %v4618_v7  ;;  %v4622_v15 = vpop.eup %4621 }
 0x5c1   : > { %v3195_v32 = vmul.f32 1.442695, %v3038_v16  ;;  %v4624_v18 = vpop.eup %4623 }
 0x5c2   : > { %3662 = vst [vmem:[%s6077_s21 + $0x134] sm:$0xff] %v3597_v20  ;;  %v4626_v28 = vpop.eup %4625  ;;  %v3367_v33 = vadd.f32 1.0, %v4624_v18 }
 0x5c3   : > { %4631 = vpow2.f32 %v3195_v32  ;;  %v3373_v26 = vadd.f32 1.0, %v4626_v28 }
 0x5c4   : > { %v4628_v9 = vpop.eup %4627  ;;  %4633 = vpow2.f32 %v3207_v17  ;;  %v2823_v53 = vpop.f32.mrf.mxu0 }
 0x5c5   : > { %v3570_v1 = vpack.c.bf16 %v4628_v9, %v4622_v15  ;;  %4635 = vrcp.f32 %v3367_v33  ;;  %v2824_v12 = vadd.f32 %v2823_v53, %v6196_v23  ;;  %v4630_v56 = vpop.eup %4629 }
 0x5c6   : > { %4637 = vrcp.f32 %v3373_v26 }
 0x5c7   : > { %3635 = vst [vmem:[%s6077_s21 + $0x78] sm:$0xff] %v3570_v1  ;;  %v3045_v10 = vsub.f32 0.0, %v2824_v12 }
 0x5c9   : > { %v4632_v27 = vpop.eup %4631  ;;  %v3209_v3 = vmul.f32 1.442695, %v3045_v10 }
 0x5ca   : > { %v4634_v38 = vpop.eup %4633  ;;  %v3374_v41 = vadd.f32 1.0, %v4632_v27 }
 0x5cb   : > { %v4636_v46 = vpop.eup %4635  ;;  %4639 = vpow2.f32 %v3209_v3  ;;  %4291 = vmatmul.msk.bf16.gmra.mxu1 %vm1705_vm1, %v6029_v63  ;;  %4299 = vmatmul.msk.bf16.gmra.mxu2 %vm1705_vm1, %v6029_v63  ;;  %v3380_v52 = vadd.f32 1.0, %v4634_v38 }
 0x5cc   : > { %v3574_v34 = vpack.c.bf16 %v4636_v46, %v4630_v56  ;;  %4641 = vrcp.f32 %v3374_v41  ;;  %4307 = vmatmul.msk.bf16.gmra.mxu3 %vm1705_vm1, %v6029_v63  ;;  %v2826_v47 = vpop.f32.mrf.mxu0  ;;  %v4638_v13 = vpop.eup %4637 }
 0x5cd   : > { %4643 = vpow2.f32 %v3221_v60  ;;  %v2827_v49 = vadd.f32 %v2826_v47, %v6196_v23  ;;  %v2784_v63 = vpop.f32.mrf.mxu3 }
 0x5ce   : > { %3639 = vst [vmem:[%s6077_s21 + $0x94] sm:$0xff] %v3574_v34  ;;  %4645 = vrcp.f32 %v3380_v52  ;;  %v2785_v44 = vadd.f32 %v2784_v63, %v6183_v25 }
 0x5cf   : > { %v3052_v19 = vsub.f32 0.0, %v2827_v49  ;;  %4647 = vpow2.f32 %v3235_v11 }
 0x5d0   : > { %v3072_v21 = vsub.f32 0.0, %v2785_v44 }
 0x5d1   : > { %v4640_v6 = vpop.eup %4639  ;;  %v3223_v59 = vmul.f32 1.442695, %v3052_v19 }
 0x5d2   : > { %v4642_v55 = vpop.eup %4641  ;;  %v3381_v62 = vadd.f32 1.0, %v4640_v6  ;;  %v3263_v15 = vmul.f32 1.442695, %v3072_v21 }
 0x5d3   : > { %v4644_v8 = vpop.eup %4643  ;;  %v3578_v0 = vpack.c.bf16 %v4642_v55, %v4638_v13  ;;  %4649 = vpow2.f32 %v3223_v59 }
 0x5d4   : > { %4651 = vrcp.f32 %v3381_v62  ;;  %v2828_v35 = vpop.f32.mrf.mxu0  ;;  %v3387_v5 = vadd.f32 1.0, %v4644_v8  ;;  %v4646_v50 = vpop.eup %4645 }
 0x5d5   : > { %3643 = vst [vmem:[%s6077_s21 + $0xb0] sm:$0xff] %v3578_v0  ;;  %v2829_v43 = vadd.f32 %v2828_v35, %v6196_v23  ;;  %v4648_v30 = vpop.eup %4647 }
 0x5d6   : > { %4653 = vrcp.f32 %v3387_v5  ;;  %v3394_v17 = vadd.f32 1.0, %v4648_v30 }
 0x5d7   : > { %v3059_v2 = vsub.f32 0.0, %v2829_v43 }
 0x5d9   : > { %v4650_v22 = vpop.eup %4649  ;;  %v3237_v45 = vmul.f32 1.442695, %v3059_v2 }
 0x5da   : > { %v4652_v7 = vpop.eup %4651  ;;  %v3388_v37 = vadd.f32 1.0, %v4650_v22 }
 0x5db   : > { %v3582_v61 = vpack.c.bf16 %v4652_v7, %v4646_v50  ;;  %4655 = vpow2.f32 %v3237_v45  ;;  %4292 = vmatmul.msk.bf16.gmra.mxu1 %vm1705_vm1, %v6047_v48  ;;  %4300 = vmatmul.msk.bf16.gmra.mxu2 %vm1705_vm1, %v6047_v48 }
 0x5dc   : > { %4657 = vrcp.f32 %v3388_v37  ;;  %4308 = vmatmul.msk.bf16.gmra.mxu3 %vm1705_vm1, %v6047_v48  ;;  %v2831_v16 = vpop.f32.mrf.mxu0  ;;  %v4654_v32 = vpop.eup %4653 }
 0x5dd   : > { %4659 = vpow2.f32 %v3249_v31  ;;  %3647 = vst [vmem:[%s6077_s21 + $0xcc] sm:$0xff] %v3582_v61  ;;  %v2832_v20 = vadd.f32 %v2831_v16, %v6196_v23 }
 0x5de   : > { %4661 = vrcp.f32 %v3394_v17 }
 0x5df   : > { %v3066_v58 = vsub.f32 0.0, %v2832_v20  ;;  %4663 = vpow2.f32 %v3263_v15 }
 0x5e0   : > { %v2689_v18 = vpop.f32.mrf.mxu1 }
 0x5e1   : > { %v4656_v28 = vpop.eup %4655  ;;  %v3251_v33 = vmul.f32 1.442695, %v3066_v58  ;;  %v2690_v9 = vadd.f32 %v2689_v18, %v6026_v54 }
 0x5e2   : > { %v4658_v53 = vpop.eup %4657  ;;  %v3395_v4 = vadd.f32 1.0, %v4656_v28 }
 0x5e3   : > { %v4660_v48 = vpop.eup %4659  ;;  %v3586_v1 = vpack.c.bf16 %v4658_v53, %v4654_v32  ;;  %4665 = vpow2.f32 %v3251_v33  ;;  %v3077_v12 = vsub.f32 0.0, %v2690_v9 }
 0x5e4   : > { %4667 = vrcp.f32 %v3395_v4  ;;  %v2833_v26 = vpop.f32.mrf.mxu0  ;;  %v3401_v56 = vadd.f32 1.0, %v4660_v48  ;;  %v4662_v60 = vpop.eup %4661 }
 0x5e5   : > { %3651 = vst [vmem:[%s6077_s21 + $0xe8] sm:$0xff] %v3586_v1  ;;  %v3273_v57 = vmul.f32 1.442695, %v3077_v12  ;;  %v2834_v10 = vadd.f32 %v2833_v26, %v6196_v23  ;;  %v4664_v40 = vpop.eup %4663 }
 0x5e6   : > { %v2738_v27 = vpop.f32.mrf.mxu2  ;;  %v3408_v63 = vadd.f32 1.0, %v4664_v40 }
 0x5e7   : > { %4669 = vpow2.f32 %v3273_v57  ;;  %v3073_v42 = vsub.f32 0.0, %v2834_v10  ;;  %v2739_v3 = vadd.f32 %v2738_v27, %v6039_v36  ;;  %v2787_v38 = vpop.f32.mrf.mxu3 }
 0x5e8   : > { %v2788_v41 = vadd.f32 %v2787_v38, %v6183_v25  ;;  %v2691_v46 = vpop.f32.mrf.mxu1  ;;  %4671 = vrcp.f32 %v3401_v56 }
 0x5e9   : > { %v4666_v34 = vpop.eup %4665  ;;  %v3265_v47 = vmul.f32 1.442695, %v3073_v42  ;;  %v3078_v52 = vsub.f32 0.0, %v2739_v3  ;;  %v2692_v49 = vadd.f32 %v2691_v46, %v6026_v54 }
 0x5ea   : > { %v4668_v11 = vpop.eup %4667  ;;  %v3402_v19 = vadd.f32 1.0, %v4666_v34  ;;  %v3079_v13 = vsub.f32 0.0, %v2788_v41 }
 0x5eb   : > { %v3590_v6 = vpack.c.bf16 %v4668_v11, %v4662_v60  ;;  %4673 = vpow2.f32 %v3265_v47  ;;  %v3275_v29 = vmul.f32 1.442695, %v3078_v52  ;;  %v3084_v59 = vsub.f32 0.0, %v2692_v49  ;;  %4293 = vmatmul.msk.bf16.gmra.mxu1 %vm1705_vm1, %v6088_v39  ;;  %4301 = vmatmul.msk.bf16.gmra.mxu2 %vm1705_vm1, %v6088_v39 }
 0x5ec   : > { %4675 = vrcp.f32 %v3402_v19  ;;  %v3277_v55 = vmul.f32 1.442695, %v3079_v13  ;;  %4309 = vmatmul.msk.bf16.gmra.mxu3 %vm1705_vm1, %v6088_v39  ;;  %v2836_v62 = vpop.f32.mrf.mxu0 }
 0x5ed   : > { %v4670_v8 = vpop.eup %4669  ;;  %3655 = vst [vmem:[%s6077_s21 + $0x104] sm:$0xff] %v3590_v6  ;;  %4677 = vpow2.f32 %v3275_v29  ;;  %v3287_v0 = vmul.f32 1.442695, %v3084_v59  ;;  %v2837_v35 = vadd.f32 %v2836_v62, %v6196_v23 }
 0x5ee   : > { %v3413_v14 = vadd.f32 1.0, %v4670_v8  ;;  %4679 = vpow2.f32 %v3277_v55  ;;  %v2740_v43 = vpop.f32.mrf.mxu2  ;;  %v4672_v2 = vpop.eup %4671 }
 0x5ef   : > { %v3080_v5 = vsub.f32 0.0, %v2837_v35  ;;  %v2741_v44 = vadd.f32 %v2740_v43, %v6039_v36  ;;  %v2789_v50 = vpop.f32.mrf.mxu3  ;;  %4681 = vpow2.f32 %v3287_v0 }
 0x5f0   : > { %v2790_v30 = vadd.f32 %v2789_v50, %v6183_v25  ;;  %4683 = vrcp.f32 %v3408_v63 }
 0x5f1   : > { %v4674_v39 = vpop.eup %4673  ;;  %v3279_v22 = vmul.f32 1.442695, %v3080_v5  ;;  %v3085_v31 = vsub.f32 0.0, %v2741_v44  ;;  %4685 = vrcp.f32 %v3413_v14 }
 0x5f2   : > { %v4676_v45 = vpop.eup %4675  ;;  %v3409_v7 = vadd.f32 1.0, %v4674_v39  ;;  %v3086_v21 = vsub.f32 0.0, %v2790_v30 }
 0x5f3   : > { %v4678_v37 = vpop.eup %4677  ;;  %v3594_v61 = vpack.c.bf16 %v4676_v45, %v4672_v2  ;;  %4687 = vpow2.f32 %v3279_v22  ;;  %v3289_v16 = vmul.f32 1.442695, %v3085_v31 }
 0x5f4   : > { %v4680_v17 = vpop.eup %4679  ;;  %4689 = vrcp.f32 %v3409_v7  ;;  %v3414_v20 = vadd.f32 1.0, %v4678_v37  ;;  %v2838_v15 = vpop.f32.mrf.mxu0  ;;  %v3291_v58 = vmul.f32 1.442695, %v3086_v21  ;;  %v4951_v37 = vld [vmem:[%s6489_s15] sm:$0x7f] }
 0x5f5   : > { %3659 = vst [vmem:[%s6077_s21 + $0x120] sm:$0xff] %v3594_v61  ;;  %4691 = vpow2.f32 %v3289_v16  ;;  %v2839_v32 = vadd.f32 %v2838_v15, %v6196_v23  ;;  %v4682_v18 = vpop.eup %4681  ;;  %v3415_v28 = vadd.f32 1.0, %v4680_v17  ;;  %v6331_v61 = vperm.slane %v4951_v37, 4 }
 0x5f6   : > { %4693 = vrcp.f32 %v3414_v20  ;;  %v4684_v33 = vpop.eup %4683  ;;  %v3420_v48 = vadd.f32 1.0, %v4682_v18 }
 0x5f7   : > { %v3087_v9 = vsub.f32 0.0, %v2839_v32  ;;  %v4686_v53 = vpop.eup %4685  ;;  %4695 = vpow2.f32 %v3291_v58 }
 0x5f8   : > { %4697 = vrcp.f32 %v3415_v28 }
 0x5f9   : > { %v4688_v4 = vpop.eup %4687  ;;  %v3293_v1 = vmul.f32 1.442695, %v3087_v9 }
 0x5fa   : > { %v4690_v12 = vpop.eup %4689  ;;  %v3416_v26 = vadd.f32 1.0, %v4688_v4 }
 0x5fb   : > { %v4692_v57 = vpop.eup %4691  ;;  %v3598_v10 = vpack.c.bf16 %v4690_v12, %v4684_v33  ;;  %4699 = vpow2.f32 %v3293_v1  ;;  %4294 = vmatmul.msk.bf16.gmra.mxu1 %vm1705_vm1, %v6153_v51  ;;  %4302 = vmatmul.msk.bf16.gmra.mxu2 %vm1705_vm1, %v6153_v51  ;;  %v6336_v1 = vperm.slane %v4951_v37, 5 }
 0x5fc   : > { %v4694_v56 = vpop.eup %4693  ;;  %4701 = vrcp.f32 %v3416_v26  ;;  %v3421_v27 = vadd.f32 1.0, %v4692_v57  ;;  %4310 = vmatmul.msk.bf16.gmra.mxu3 %vm1705_vm1, %v6153_v51 }
 0x5fd   : > { %3663 = vst [vmem:[%s6077_s21 + $0x13c] sm:$0xff] %v3598_v10  ;;  %v3601_v60 = vpack.c.bf16 %v4694_v56, %v4686_v53  ;;  %4703 = vrcp.f32 %v3420_v48  ;;  %v4696_v42 = vpop.eup %4695 }
 0x5fe   : > { %4705 = vrcp.f32 %v3421_v27  ;;  %v4698_v3 = vpop.eup %4697  ;;  %v3422_v38 = vadd.f32 1.0, %v4696_v42 }
 0x5ff   : > { %3666 = vst [vmem:[%s6077_s21 + $0x150] sm:$0xff] %v3601_v60 }
 0x600   : > { %4707 = vrcp.f32 %v3422_v38 }
 0x601   : > { %v4700_v40 = vpop.eup %4699 }
 0x602   : > { %v4702_v41 = vpop.eup %4701  ;;  %v3423_v46 = vadd.f32 1.0, %v4700_v40 }
 0x603   : > { %v4704_v34 = vpop.eup %4703  ;;  %v3602_v47 = vpack.c.bf16 %v4702_v41, %v4698_v3 }
 0x604   : > { %v4706_v52 = vpop.eup %4705  ;;  %4709 = vrcp.f32 %v3423_v46 }
 0x605   : > { %3667 = vst [vmem:[%s6077_s21 + $0x158] sm:$0xff] %v3602_v47  ;;  %v3605_v51 = vpack.c.bf16 %v4706_v52, %v4704_v34 }
 0x606   : > { %v4708_v11 = vpop.eup %4707 }
 0x607   : > { %3670 = vst [vmem:[%s6077_s21 + $0x16c] sm:$0xff] %v3605_v51 }
 0x608   : > { %v2694_v49 = vpop.f32.mrf.mxu1 }
 0x609   : > { %v2695_v19 = vadd.f32 %v2694_v49, %v6026_v54  ;;  %v2841_v13 = vpop.f32.mrf.mxu0 }
 0x60a   : > { %v4710_v6 = vpop.eup %4709  ;;  %v2842_v29 = vadd.f32 %v2841_v13, %v6196_v23 }
 0x60b   : > { %v3606_v59 = vpack.c.bf16 %v4710_v6, %v4708_v11  ;;  %v3091_v55 = vsub.f32 0.0, %v2695_v19  ;;  %4295 = vmatmul.msk.bf16.gmra.mxu1 %vm1705_vm1, %v6193_v24  ;;  %4303 = vmatmul.msk.bf16.gmra.mxu2 %vm1705_vm1, %v6193_v24 }
 0x60c   : > { %v3094_v62 = vsub.f32 0.0, %v2842_v29  ;;  %4311 = vmatmul.msk.bf16.gmra.mxu3 %vm1705_vm1, %v6193_v24 }
 0x60d   : > { %3671 = vst [vmem:[%s6077_s21 + $0x174] sm:$0xff] %v3606_v59  ;;  %v3301_v8 = vmul.f32 1.442695, %v3091_v55 }
 0x60e   : > { %v3307_v63 = vmul.f32 1.442695, %v3094_v62  ;;  %v2743_v0 = vpop.f32.mrf.mxu2 }
 0x60f   : > { %4711 = vpow2.f32 %v3301_v8  ;;  %v2744_v35 = vadd.f32 %v2743_v0, %v6039_v36  ;;  %v2792_v14 = vpop.f32.mrf.mxu3 }
 0x610   : > { %4713 = vpow2.f32 %v3307_v63  ;;  %v2793_v43 = vadd.f32 %v2792_v14, %v6183_v25  ;;  %v2696_v5 = vpop.f32.mrf.mxu1 }
 0x611   : > { %v3092_v44 = vsub.f32 0.0, %v2744_v35  ;;  %v2697_v50 = vadd.f32 %v2696_v5, %v6026_v54  ;;  %v2843_v2 = vpop.f32.mrf.mxu0 }
 0x612   : > { %v3093_v30 = vsub.f32 0.0, %v2793_v43  ;;  %v2844_v39 = vadd.f32 %v2843_v2, %v6196_v23 }
 0x613   : > { %v3303_v24 = vmul.f32 1.442695, %v3092_v44  ;;  %v3098_v22 = vsub.f32 0.0, %v2697_v50 }
 0x614   : > { %v3305_v31 = vmul.f32 1.442695, %v3093_v30  ;;  %v3101_v45 = vsub.f32 0.0, %v2844_v39 }
 0x615   : > { %v4712_v7 = vpop.eup %4711  ;;  %4715 = vpow2.f32 %v3303_v24  ;;  %v3315_v21 = vmul.f32 1.442695, %v3098_v22 }
 0x616   : > { %v4714_v16 = vpop.eup %4713  ;;  %v3427_v17 = vadd.f32 1.0, %v4712_v7  ;;  %4717 = vpow2.f32 %v3305_v31  ;;  %v2745_v54 = vpop.f32.mrf.mxu2  ;;  %v3321_v58 = vmul.f32 1.442695, %v3101_v45 }
 0x617   : > { %v3430_v20 = vadd.f32 1.0, %v4714_v16  ;;  %4719 = vpow2.f32 %v3315_v21  ;;  %v2746_v23 = vadd.f32 %v2745_v54, %v6039_v36  ;;  %v2794_v15 = vpop.f32.mrf.mxu3  ;;  %v6338_v36 = vperm.slane %v4951_v37, 6 }
 0x618   : > { %v2795_v32 = vadd.f32 %v2794_v15, %v6183_v25  ;;  %v2855_v18 = vpop.f32.mrf.mxu1  ;;  %4721 = vrcp.f32 %v3427_v17 }
 0x619   : > { %v3099_v28 = vsub.f32 0.0, %v2746_v23  ;;  %v2856_v33 = vadd.f32 %v2855_v18, %v6331_v61  ;;  %4723 = vrcp.f32 %v3430_v20 }
 0x61a   : > { %v3100_v9 = vsub.f32 0.0, %v2795_v32  ;;  %4725 = vpow2.f32 %v3321_v58 }
 0x61b   : > { %v4716_v53 = vpop.eup %4715  ;;  %v3317_v4 = vmul.f32 1.442695, %v3099_v28  ;;  %v2997_v48 = vsub.f32 0.0, %v2856_v33 }
 0x61c   : > { %v4718_v12 = vpop.eup %4717  ;;  %v3428_v26 = vadd.f32 1.0, %v4716_v53  ;;  %v3319_v25 = vmul.f32 1.442695, %v3100_v9 }
 0x61d   : > { %v4720_v57 = vpop.eup %4719  ;;  %v3429_v10 = vadd.f32 1.0, %v4718_v12  ;;  %4727 = vpow2.f32 %v3317_v4  ;;  %v3113_v56 = vmul.f32 1.442695, %v2997_v48 }
 0x61e   : > { %4729 = vrcp.f32 %v3428_v26  ;;  %v2904_v27 = vpop.f32.mrf.mxu2  ;;  %v4722_v3 = vpop.eup %4721  ;;  %v3434_v38 = vadd.f32 1.0, %v4720_v57 }
 0x61f   : > { %4731 = vrcp.f32 %v3429_v10  ;;  %v2905_v60 = vadd.f32 %v2904_v27, %v6336_v1  ;;  %v2953_v42 = vpop.f32.mrf.mxu3  ;;  %v4724_v46 = vpop.eup %4723 }
 0x620   : > { %v2954_v40 = vadd.f32 %v2953_v42, %v6338_v36  ;;  %v2857_v41 = vpop.f32.mrf.mxu1  ;;  %4733 = vpow2.f32 %v3319_v25  ;;  %v4726_v52 = vpop.eup %4725 }
 0x621   : > { %v2998_v34 = vsub.f32 0.0, %v2905_v60  ;;  %v2858_v47 = vadd.f32 %v2857_v41, %v6331_v61  ;;  %4735 = vpow2.f32 %v3113_v56  ;;  %v3437_v62 = vadd.f32 1.0, %v4726_v52 }
 0x622   : > { %v2999_v51 = vsub.f32 0.0, %v2954_v40  ;;  %4737 = vrcp.f32 %v3434_v38 }
 0x623   : > { %v4728_v49 = vpop.eup %4727  ;;  %v3115_v11 = vmul.f32 1.442695, %v2998_v34  ;;  %v3004_v19 = vsub.f32 0.0, %v2858_v47 }
 0x624   : > { %v4730_v13 = vpop.eup %4729  ;;  %v3435_v6 = vadd.f32 1.0, %v4728_v49  ;;  %v3117_v29 = vmul.f32 1.442695, %v2999_v51 }
 0x625   : > { %v4732_v59 = vpop.eup %4731  ;;  %v3609_v55 = vpack.c.bf16 %v4730_v13, %v4722_v3  ;;  %4739 = vpow2.f32 %v3115_v11  ;;  %v3127_v8 = vmul.f32 1.442695, %v3004_v19 }
 0x626   : > { %v3610_v63 = vpack.c.bf16 %v4724_v46, %v4732_v59  ;;  %4741 = vrcp.f32 %v3435_v6  ;;  %v2906_v0 = vpop.f32.mrf.mxu2  ;;  %v4734_v35 = vpop.eup %4733 }
 0x627   : > { %3674 = vst [vmem:[%s6077_s21 + $0x188] sm:$0xff] %v3609_v55  ;;  %4743 = vpow2.f32 %v3117_v29  ;;  %v2907_v14 = vadd.f32 %v2906_v0, %v6336_v1  ;;  %v2955_v43 = vpop.f32.mrf.mxu3  ;;  %v4736_v5 = vpop.eup %4735  ;;  %v3436_v44 = vadd.f32 1.0, %v4734_v35 }
 0x628   : > { %3675 = vst [vmem:[%s6077_s21 + $0x190] sm:$0xff] %v3610_v63  ;;  %4745 = vpow2.f32 %v3127_v8  ;;  %v2956_v50 = vadd.f32 %v2955_v43, %v6338_v36  ;;  %v2860_v2 = vpop.f32.mrf.mxu1  ;;  %v3333_v30 = vadd.f32 1.0, %v4736_v5  ;;  %v4738_v22 = vpop.eup %4737 }
 0x629   : > { %4747 = vrcp.f32 %v3437_v62  ;;  %v3005_v39 = vsub.f32 0.0, %v2907_v14  ;;  %v2861_v24 = vadd.f32 %v2860_v2, %v6331_v61 }
 0x62a   : > { %4749 = vrcp.f32 %v3436_v44  ;;  %v3006_v31 = vsub.f32 0.0, %v2956_v50 }
 0x62b   : > { %v4740_v45 = vpop.eup %4739  ;;  %v3129_v7 = vmul.f32 1.442695, %v3005_v39  ;;  %v3011_v21 = vsub.f32 0.0, %v2861_v24  ;;  %4751 = vrcp.f32 %v3333_v30 }
 0x62c   : > { %v4742_v37 = vpop.eup %4741  ;;  %v3334_v16 = vadd.f32 1.0, %v4740_v45  ;;  %v3131_v17 = vmul.f32 1.442695, %v3006_v31 }
 0x62d   : > { %v4744_v54 = vpop.eup %4743  ;;  %v3613_v20 = vpack.c.bf16 %v4742_v37, %v4738_v22  ;;  %4753 = vpow2.f32 %v3129_v7  ;;  %v3141_v58 = vmul.f32 1.442695, %v3011_v21 }
 0x62e   : > { %v4746_v23 = vpop.eup %4745  ;;  %4755 = vrcp.f32 %v3334_v16  ;;  %v3335_v15 = vadd.f32 1.0, %v4744_v54  ;;  %v2909_v32 = vpop.f32.mrf.mxu2 }
 0x62f   : > { %v4748_v18 = vpop.eup %4747  ;;  %3678 = vst [vmem:[%s6077_s21 + $0x1a4] sm:$0xff] %v3613_v20  ;;  %4757 = vpow2.f32 %v3131_v17  ;;  %v2910_v28 = vadd.f32 %v2909_v32, %v6336_v1  ;;  %v2958_v33 = vpop.f32.mrf.mxu3  ;;  %v3340_v53 = vadd.f32 1.0, %v4746_v23 }
 0x630   : > { %v4750_v9 = vpop.eup %4749  ;;  %4759 = vrcp.f32 %v3335_v15  ;;  %v2959_v4 = vadd.f32 %v2958_v33, %v6338_v36  ;;  %v2862_v48 = vpop.f32.mrf.mxu1 }
 0x631   : > { %v3614_v12 = vpack.c.bf16 %v4748_v18, %v4750_v9  ;;  %v3012_v26 = vsub.f32 0.0, %v2910_v28  ;;  %v2863_v57 = vadd.f32 %v2862_v48, %v6331_v61  ;;  %v4752_v10 = vpop.eup %4751  ;;  %4761 = vpow2.f32 %v3141_v58 }
 0x632   : > { %v3013_v25 = vsub.f32 0.0, %v2959_v4  ;;  %4763 = vrcp.f32 %v3340_v53 }
 0x633   : > { %v4754_v56 = vpop.eup %4753  ;;  %3679 = vst [vmem:[%s6077_s21 + $0x1ac] sm:$0xff] %v3614_v12  ;;  %v3143_v27 = vmul.f32 1.442695, %v3012_v26  ;;  %v3018_v60 = vsub.f32 0.0, %v2863_v57 }
 0x634   : > { %v4756_v42 = vpop.eup %4755  ;;  %v3341_v3 = vadd.f32 1.0, %v4754_v56  ;;  %v3145_v38 = vmul.f32 1.442695, %v3013_v25 }
 0x635   : > { %v4758_v40 = vpop.eup %4757  ;;  %v3555_v41 = vpack.c.bf16 %v4756_v42, %v4752_v10  ;;  %4765 = vpow2.f32 %v3143_v27  ;;  %v3155_v46 = vmul.f32 1.442695, %v3018_v60 }
 0x636   : > { %4979 = shalt.err (!%p4976_p3)
}
 0x637   : > { %s5019_s26 = smov 128   ;;  %s6515_s0 = smov 8   ;;  %v4760_v34 = vpop.eup %4759  ;;  %vm3620_vm6 = vcmask 125952   ;;  %4767 = vrcp.f32 %v3341_v3  ;;  %v3342_v47 = vadd.f32 1.0, %v4758_v40  ;;  %v2911_v52 = vpop.f32.mrf.mxu2  ;;  %3619 = vst [vmem:[%s6077_s21 + $0x10] sm:$0xff] %v3555_v41 }
 0x638   : > { %4407 = dma.vmem_to_hbm [thread:$0]  (%p5148_p5), %s3739_s22, 2048, %s3741_s20, %s3722_s27, %s5019_s26, %s5019_s26, %s6515_s0   ;;  %v3556_v51 = vpack.c.bf16 %v4760_v34, %v4760_v34  ;;  %4769 = vpow2.f32 %v3145_v38  ;;  %v2912_v49 = vadd.f32 %v2911_v52, %v6336_v1  ;;  %v2960_v11 = vpop.f32.mrf.mxu3  ;;  %v4762_v19 = vpop.eup %4761 }
 0x639   : > { %4771 = vrcp.f32 %v3342_v47  ;;  %v2961_v13 = vadd.f32 %v2960_v11, %v6338_v36  ;;  %v2865_v6 = vpop.f32.mrf.mxu1  ;;  %v3347_v29 = vadd.f32 1.0, %v4762_v19  ;;  %v4764_v62 = vpop.eup %4763 }
 0x63a   : > { %3621 = vst.msk [vmem:[%s6077_s21 + $0x18] sm:$0xf] %vm3620_vm6, %v3556_v51  ;;  %4773 = vpow2.f32 %v3155_v46  ;;  %v3019_v59 = vsub.f32 0.0, %v2912_v49  ;;  %v2866_v55 = vadd.f32 %v2865_v6, %v6331_v61 }
 0x63b   : > { %v3020_v8 = vsub.f32 0.0, %v2961_v13  ;;  %v4766_v63 = vpop.eup %4765  ;;  %4775 = vrcp.f32 %v3347_v29 }
 0x63c   : > { %v3157_v0 = vmul.f32 1.442695, %v3019_v59  ;;  %v3025_v35 = vsub.f32 0.0, %v2866_v55  ;;  %v3348_v43 = vadd.f32 1.0, %v4766_v63 }
 0x63d   : > { %v4768_v14 = vpop.eup %4767  ;;  %v3159_v5 = vmul.f32 1.442695, %v3020_v8 }
 0x63e   : > { %v4770_v44 = vpop.eup %4769  ;;  %v3559_v50 = vpack.c.bf16 %v4768_v14, %v4764_v62  ;;  %4777 = vpow2.f32 %v3157_v0  ;;  %v3169_v2 = vmul.f32 1.442695, %v3025_v35 }
 0x63f   : > { %v4772_v30 = vpop.eup %4771  ;;  %4779 = vrcp.f32 %v3348_v43  ;;  %v3349_v39 = vadd.f32 1.0, %v4770_v44  ;;  %v2914_v24 = vpop.f32.mrf.mxu2 }
 0x640   : > { %v4774_v22 = vpop.eup %4773  ;;  %3624 = vst [vmem:[%s6077_s21 + $0x2c] sm:$0xff] %v3559_v50  ;;  %v3560_v31 = vpack.c.bf16 %v4772_v30, %v4772_v30  ;;  %4781 = vpow2.f32 %v3159_v5  ;;  %v2915_v45 = vadd.f32 %v2914_v24, %v6336_v1  ;;  %v2963_v7 = vpop.f32.mrf.mxu3 }
 0x641   : > { %4783 = vrcp.f32 %v3349_v39  ;;  %v3354_v21 = vadd.f32 1.0, %v4774_v22  ;;  %v2964_v37 = vadd.f32 %v2963_v7, %v6338_v36  ;;  %v2867_v16 = vpop.f32.mrf.mxu1  ;;  %v4776_v20 = vpop.eup %4775 }
 0x642   : > { %3625 = vst.msk [vmem:[%s6077_s21 + $0x34] sm:$0xf] %vm3620_vm6, %v3560_v31  ;;  %4785 = vpow2.f32 %v3169_v2  ;;  %v3026_v17 = vsub.f32 0.0, %v2915_v45  ;;  %v2868_v54 = vadd.f32 %v2867_v16, %v6331_v61 }
 0x643   : > { %v3027_v23 = vsub.f32 0.0, %v2964_v37  ;;  %4787 = vrcp.f32 %v3354_v21 }
 0x644   : > { %v4778_v15 = vpop.eup %4777  ;;  %v3171_v58 = vmul.f32 1.442695, %v3026_v17  ;;  %v3032_v32 = vsub.f32 0.0, %v2868_v54 }
 0x645   : > { %v4780_v18 = vpop.eup %4779  ;;  %v3355_v28 = vadd.f32 1.0, %v4778_v15  ;;  %v3173_v33 = vmul.f32 1.442695, %v3027_v23 }
 0x646   : > { %v4782_v9 = vpop.eup %4781  ;;  %v3563_v53 = vpack.c.bf16 %v4780_v18, %v4776_v20  ;;  %4789 = vpow2.f32 %v3171_v58  ;;  %v3183_v4 = vmul.f32 1.442695, %v3032_v32 }
 0x647   : > { %v4784_v48 = vpop.eup %4783  ;;  %4791 = vrcp.f32 %v3355_v28  ;;  %v3356_v12 = vadd.f32 1.0, %v4782_v9  ;;  %v2916_v26 = vpop.f32.mrf.mxu2 }
 0x648   : > { %v4786_v57 = vpop.eup %4785  ;;  %3628 = vst [vmem:[%s6077_s21 + $0x48] sm:$0xff] %v3563_v53  ;;  %v3564_v10 = vpack.c.bf16 %v4784_v48, %v4784_v48  ;;  %4793 = vpow2.f32 %v3173_v33  ;;  %v2917_v25 = vadd.f32 %v2916_v26, %v6336_v1  ;;  %v2965_v56 = vpop.f32.mrf.mxu3 }
 0x649   : > { %4795 = vrcp.f32 %v3356_v12  ;;  %v3361_v27 = vadd.f32 1.0, %v4786_v57  ;;  %v2966_v60 = vadd.f32 %v2965_v56, %v6338_v36  ;;  %v2870_v42 = vpop.f32.mrf.mxu1  ;;  %v4788_v40 = vpop.eup %4787 }
 0x64a   : > { %3629 = vst.msk [vmem:[%s6077_s21 + $0x50] sm:$0xf] %vm3620_vm6, %v3564_v10  ;;  %4797 = vpow2.f32 %v3183_v4  ;;  %v3033_v3 = vsub.f32 0.0, %v2917_v25  ;;  %v2871_v38 = vadd.f32 %v2870_v42, %v6331_v61 }
 0x64b   : > { %v3034_v41 = vsub.f32 0.0, %v2966_v60  ;;  %4799 = vrcp.f32 %v3361_v27 }
 0x64c   : > { %v4790_v46 = vpop.eup %4789  ;;  %v3185_v34 = vmul.f32 1.442695, %v3033_v3  ;;  %v3039_v47 = vsub.f32 0.0, %v2871_v38 }
 0x64d   : > { %v4792_v52 = vpop.eup %4791  ;;  %v3362_v51 = vadd.f32 1.0, %v4790_v46  ;;  %v3187_v49 = vmul.f32 1.442695, %v3034_v41 }
 0x64e   : > { %v4794_v11 = vpop.eup %4793  ;;  %v3567_v19 = vpack.c.bf16 %v4792_v52, %v4788_v40  ;;  %4801 = vpow2.f32 %v3185_v34  ;;  %v3197_v13 = vmul.f32 1.442695, %v3039_v47 }
 0x64f   : > { %v4796_v6 = vpop.eup %4795  ;;  %4803 = vrcp.f32 %v3362_v51  ;;  %v3363_v29 = vadd.f32 1.0, %v4794_v11  ;;  %v2919_v59 = vpop.f32.mrf.mxu2 }
 0x650   : > { %v4798_v55 = vpop.eup %4797  ;;  %3632 = vst [vmem:[%s6077_s21 + $0x64] sm:$0xff] %v3567_v19  ;;  %v3568_v62 = vpack.c.bf16 %v4796_v6, %v4796_v6  ;;  %4805 = vpow2.f32 %v3187_v49  ;;  %v2920_v8 = vadd.f32 %v2919_v59, %v6336_v1  ;;  %v2968_v63 = vpop.f32.mrf.mxu3 }
 0x651   : > { %4807 = vrcp.f32 %v3363_v29  ;;  %v3368_v0 = vadd.f32 1.0, %v4798_v55  ;;  %v2969_v35 = vadd.f32 %v2968_v63, %v6338_v36  ;;  %v2872_v14 = vpop.f32.mrf.mxu1  ;;  %v4800_v44 = vpop.eup %4799 }
 0x652   : > { %3633 = vst.msk [vmem:[%s6077_s21 + $0x6c] sm:$0xf] %vm3620_vm6, %v3568_v62  ;;  %4809 = vpow2.f32 %v3197_v13  ;;  %v3040_v43 = vsub.f32 0.0, %v2920_v8  ;;  %v2873_v5 = vadd.f32 %v2872_v14, %v6331_v61 }
 0x653   : > { %v3041_v50 = vsub.f32 0.0, %v2969_v35  ;;  %4811 = vrcp.f32 %v3368_v0 }
 0x654   : > { %v4802_v2 = vpop.eup %4801  ;;  %v3199_v30 = vmul.f32 1.442695, %v3040_v43  ;;  %v3046_v39 = vsub.f32 0.0, %v2873_v5 }
 0x655   : > { %v4804_v24 = vpop.eup %4803  ;;  %v3369_v22 = vadd.f32 1.0, %v4802_v2  ;;  %v3201_v31 = vmul.f32 1.442695, %v3041_v50 }
 0x656   : > { %v4806_v45 = vpop.eup %4805  ;;  %v3571_v7 = vpack.c.bf16 %v4804_v24, %v4800_v44  ;;  %4813 = vpow2.f32 %v3199_v30  ;;  %v3211_v21 = vmul.f32 1.442695, %v3046_v39 }
 0x657   : > { %v4808_v37 = vpop.eup %4807  ;;  %4815 = vrcp.f32 %v3369_v22  ;;  %v3370_v16 = vadd.f32 1.0, %v4806_v45  ;;  %v2921_v17 = vpop.f32.mrf.mxu2 }
 0x658   : > { %v4810_v54 = vpop.eup %4809  ;;  %3636 = vst [vmem:[%s6077_s21 + $0x80] sm:$0xff] %v3571_v7  ;;  %v3572_v20 = vpack.c.bf16 %v4808_v37, %v4808_v37  ;;  %4817 = vpow2.f32 %v3201_v31  ;;  %v2922_v23 = vadd.f32 %v2921_v17, %v6336_v1  ;;  %v2970_v15 = vpop.f32.mrf.mxu3 }
 0x659   : > { %4819 = vrcp.f32 %v3370_v16  ;;  %v3375_v58 = vadd.f32 1.0, %v4810_v54  ;;  %v2971_v32 = vadd.f32 %v2970_v15, %v6338_v36  ;;  %v2875_v18 = vpop.f32.mrf.mxu1  ;;  %v4812_v9 = vpop.eup %4811 }
 0x65a   : > { %3637 = vst.msk [vmem:[%s6077_s21 + $0x88] sm:$0xf] %vm3620_vm6, %v3572_v20  ;;  %4821 = vpow2.f32 %v3211_v21  ;;  %v3047_v28 = vsub.f32 0.0, %v2922_v23  ;;  %v2876_v33 = vadd.f32 %v2875_v18, %v6331_v61 }
 0x65b   : > { %v3048_v53 = vsub.f32 0.0, %v2971_v32  ;;  %4823 = vrcp.f32 %v3375_v58 }
 0x65c   : > { %v4814_v4 = vpop.eup %4813  ;;  %v3213_v48 = vmul.f32 1.442695, %v3047_v28  ;;  %v3053_v12 = vsub.f32 0.0, %v2876_v33 }
 0x65d   : > { %v4816_v26 = vpop.eup %4815  ;;  %v3376_v57 = vadd.f32 1.0, %v4814_v4  ;;  %v3215_v10 = vmul.f32 1.442695, %v3048_v53 }
 0x65e   : > { %v4818_v25 = vpop.eup %4817  ;;  %v3575_v56 = vpack.c.bf16 %v4816_v26, %v4812_v9  ;;  %4825 = vpow2.f32 %v3213_v48  ;;  %v3225_v27 = vmul.f32 1.442695, %v3053_v12 }
 0x65f   : > { %v4820_v60 = vpop.eup %4819  ;;  %4827 = vrcp.f32 %v3376_v57  ;;  %v3377_v42 = vadd.f32 1.0, %v4818_v25  ;;  %v2924_v3 = vpop.f32.mrf.mxu2 }
 0x660   : > { %v4822_v38 = vpop.eup %4821  ;;  %3640 = vst [vmem:[%s6077_s21 + $0x9c] sm:$0xff] %v3575_v56  ;;  %v3576_v40 = vpack.c.bf16 %v4820_v60, %v4820_v60  ;;  %4829 = vpow2.f32 %v3215_v10  ;;  %v2925_v41 = vadd.f32 %v2924_v3, %v6336_v1  ;;  %v2973_v46 = vpop.f32.mrf.mxu3 }
 0x661   : > { %4831 = vrcp.f32 %v3377_v42  ;;  %v3382_v34 = vadd.f32 1.0, %v4822_v38  ;;  %v2974_v47 = vadd.f32 %v2973_v46, %v6338_v36  ;;  %v2877_v52 = vpop.f32.mrf.mxu1  ;;  %v4824_v11 = vpop.eup %4823 }
 0x662   : > { %3641 = vst.msk [vmem:[%s6077_s21 + $0xa4] sm:$0xf] %vm3620_vm6, %v3576_v40  ;;  %4833 = vpow2.f32 %v3225_v27  ;;  %v3054_v51 = vsub.f32 0.0, %v2925_v41  ;;  %v2878_v49 = vadd.f32 %v2877_v52, %v6331_v61 }
 0x663   : > { %v3055_v19 = vsub.f32 0.0, %v2974_v47  ;;  %4835 = vrcp.f32 %v3382_v34 }
 0x664   : > { %v4826_v13 = vpop.eup %4825  ;;  %v3227_v6 = vmul.f32 1.442695, %v3054_v51  ;;  %v3060_v29 = vsub.f32 0.0, %v2878_v49 }
 0x665   : > { %v4828_v59 = vpop.eup %4827  ;;  %v3383_v55 = vadd.f32 1.0, %v4826_v13  ;;  %v3229_v62 = vmul.f32 1.442695, %v3055_v19 }
 0x666   : > { %v4830_v8 = vpop.eup %4829  ;;  %v3579_v63 = vpack.c.bf16 %v4828_v59, %v4824_v11  ;;  %4837 = vpow2.f32 %v3227_v6  ;;  %v3239_v0 = vmul.f32 1.442695, %v3060_v29 }
 0x667   : > { %v4832_v35 = vpop.eup %4831  ;;  %4839 = vrcp.f32 %v3383_v55  ;;  %v3384_v14 = vadd.f32 1.0, %v4830_v8  ;;  %v2926_v43 = vpop.f32.mrf.mxu2 }
 0x668   : > { %v4834_v5 = vpop.eup %4833  ;;  %3644 = vst [vmem:[%s6077_s21 + $0xb8] sm:$0xff] %v3579_v63  ;;  %v3580_v44 = vpack.c.bf16 %v4832_v35, %v4832_v35  ;;  %4841 = vpow2.f32 %v3229_v62  ;;  %v2927_v50 = vadd.f32 %v2926_v43, %v6336_v1  ;;  %v2975_v2 = vpop.f32.mrf.mxu3 }
 0x669   : > { %4843 = vrcp.f32 %v3384_v14  ;;  %v3389_v30 = vadd.f32 1.0, %v4834_v5  ;;  %v2976_v39 = vadd.f32 %v2975_v2, %v6338_v36  ;;  %v2880_v24 = vpop.f32.mrf.mxu1  ;;  %v4836_v45 = vpop.eup %4835 }
 0x66a   : > { %3645 = vst.msk [vmem:[%s6077_s21 + $0xc0] sm:$0xf] %vm3620_vm6, %v3580_v44  ;;  %4845 = vpow2.f32 %v3239_v0  ;;  %v3061_v22 = vsub.f32 0.0, %v2927_v50  ;;  %v2881_v31 = vadd.f32 %v2880_v24, %v6331_v61 }
 0x66b   : > { %v3062_v7 = vsub.f32 0.0, %v2976_v39  ;;  %4847 = vrcp.f32 %v3389_v30 }
 0x66c   : > { %v4838_v21 = vpop.eup %4837  ;;  %v3241_v37 = vmul.f32 1.442695, %v3061_v22  ;;  %v3067_v16 = vsub.f32 0.0, %v2881_v31 }
 0x66d   : > { %v4840_v17 = vpop.eup %4839  ;;  %v3390_v54 = vadd.f32 1.0, %v4838_v21  ;;  %v3243_v20 = vmul.f32 1.442695, %v3062_v7 }
 0x66e   : > { %v4842_v23 = vpop.eup %4841  ;;  %v3583_v15 = vpack.c.bf16 %v4840_v17, %v4836_v45  ;;  %4849 = vpow2.f32 %v3241_v37  ;;  %v3253_v58 = vmul.f32 1.442695, %v3067_v16 }
 0x66f   : > { %v4844_v32 = vpop.eup %4843  ;;  %4851 = vrcp.f32 %v3390_v54  ;;  %v3391_v18 = vadd.f32 1.0, %v4842_v23  ;;  %v2929_v28 = vpop.f32.mrf.mxu2 }
 0x670   : > { %v4846_v33 = vpop.eup %4845  ;;  %3648 = vst [vmem:[%s6077_s21 + $0xd4] sm:$0xff] %v3583_v15  ;;  %v3584_v9 = vpack.c.bf16 %v4844_v32, %v4844_v32  ;;  %4853 = vpow2.f32 %v3243_v20  ;;  %v2930_v53 = vadd.f32 %v2929_v28, %v6336_v1  ;;  %v2978_v4 = vpop.f32.mrf.mxu3 }
 0x671   : > { %4855 = vrcp.f32 %v3391_v18  ;;  %v3396_v48 = vadd.f32 1.0, %v4846_v33  ;;  %v2979_v12 = vadd.f32 %v2978_v4, %v6338_v36  ;;  %v2882_v26 = vpop.f32.mrf.mxu1  ;;  %v4848_v25 = vpop.eup %4847 }
 0x672   : > { %3649 = vst.msk [vmem:[%s6077_s21 + $0xdc] sm:$0xf] %vm3620_vm6, %v3584_v9  ;;  %4857 = vpow2.f32 %v3253_v58  ;;  %v3068_v57 = vsub.f32 0.0, %v2930_v53  ;;  %v2883_v10 = vadd.f32 %v2882_v26, %v6331_v61 }
 0x673   : > { %v3069_v56 = vsub.f32 0.0, %v2979_v12  ;;  %4859 = vrcp.f32 %v3396_v48 }
 0x674   : > { %v4850_v27 = vpop.eup %4849  ;;  %v3255_v60 = vmul.f32 1.442695, %v3068_v57  ;;  %v3074_v42 = vsub.f32 0.0, %v2883_v10 }
 0x675   : > { %v4852_v3 = vpop.eup %4851  ;;  %v3397_v38 = vadd.f32 1.0, %v4850_v27  ;;  %v3257_v40 = vmul.f32 1.442695, %v3069_v56 }
 0x676   : > { %v4854_v41 = vpop.eup %4853  ;;  %v3587_v46 = vpack.c.bf16 %v4852_v3, %v4848_v25  ;;  %4861 = vpow2.f32 %v3255_v60  ;;  %v3267_v34 = vmul.f32 1.442695, %v3074_v42 }
 0x677   : > { %v4856_v47 = vpop.eup %4855  ;;  %4863 = vrcp.f32 %v3397_v38  ;;  %v3398_v52 = vadd.f32 1.0, %v4854_v41  ;;  %v2931_v51 = vpop.f32.mrf.mxu2 }
 0x678   : > { %v4858_v49 = vpop.eup %4857  ;;  %3652 = vst [vmem:[%s6077_s21 + $0xf0] sm:$0xff] %v3587_v46  ;;  %v3588_v11 = vpack.c.bf16 %v4856_v47, %v4856_v47  ;;  %4865 = vpow2.f32 %v3257_v40  ;;  %v2932_v19 = vadd.f32 %v2931_v51, %v6336_v1  ;;  %v2980_v13 = vpop.f32.mrf.mxu3 }
 0x679   : > { %4867 = vrcp.f32 %v3398_v52  ;;  %v3403_v6 = vadd.f32 1.0, %v4858_v49  ;;  %v2981_v29 = vadd.f32 %v2980_v13, %v6338_v36  ;;  %v2885_v59 = vpop.f32.mrf.mxu1  ;;  %v4860_v8 = vpop.eup %4859 }
 0x67a   : > { %3653 = vst.msk [vmem:[%s6077_s21 + $0xf8] sm:$0xf] %vm3620_vm6, %v3588_v11  ;;  %4869 = vpow2.f32 %v3267_v34  ;;  %v3075_v55 = vsub.f32 0.0, %v2932_v19  ;;  %v2886_v62 = vadd.f32 %v2885_v59, %v6331_v61 }
 0x67b   : > { %v3076_v63 = vsub.f32 0.0, %v2981_v29  ;;  %4871 = vrcp.f32 %v3403_v6 }
 0x67c   : > { %v4862_v0 = vpop.eup %4861  ;;  %v3269_v35 = vmul.f32 1.442695, %v3075_v55  ;;  %v3081_v14 = vsub.f32 0.0, %v2886_v62 }
 0x67d   : > { %v4864_v43 = vpop.eup %4863  ;;  %v3404_v5 = vadd.f32 1.0, %v4862_v0  ;;  %v3271_v44 = vmul.f32 1.442695, %v3076_v63 }
 0x67e   : > { %v4866_v50 = vpop.eup %4865  ;;  %v3591_v2 = vpack.c.bf16 %v4864_v43, %v4860_v8  ;;  %4873 = vpow2.f32 %v3269_v35  ;;  %v3281_v30 = vmul.f32 1.442695, %v3081_v14 }
 0x67f   : > { %v4868_v39 = vpop.eup %4867  ;;  %4875 = vrcp.f32 %v3404_v5  ;;  %v3405_v24 = vadd.f32 1.0, %v4866_v50  ;;  %v2934_v22 = vpop.f32.mrf.mxu2 }
 0x680   : > { %v4870_v31 = vpop.eup %4869  ;;  %3656 = vst [vmem:[%s6077_s21 + $0x10c] sm:$0xff] %v3591_v2  ;;  %v3592_v45 = vpack.c.bf16 %v4868_v39, %v4868_v39  ;;  %4877 = vpow2.f32 %v3271_v44  ;;  %v2935_v7 = vadd.f32 %v2934_v22, %v6336_v1  ;;  %v2983_v21 = vpop.f32.mrf.mxu3 }
 0x681   : > { %4879 = vrcp.f32 %v3405_v24  ;;  %v3410_v37 = vadd.f32 1.0, %v4870_v31  ;;  %v2984_v16 = vadd.f32 %v2983_v21, %v6338_v36  ;;  %v2887_v17 = vpop.f32.mrf.mxu1  ;;  %v4872_v23 = vpop.eup %4871 }
 0x682   : > { %3657 = vst.msk [vmem:[%s6077_s21 + $0x114] sm:$0xf] %vm3620_vm6, %v3592_v45  ;;  %4881 = vpow2.f32 %v3281_v30  ;;  %v3082_v54 = vsub.f32 0.0, %v2935_v7  ;;  %v2888_v20 = vadd.f32 %v2887_v17, %v6331_v61 }
 0x683   : > { %v3083_v15 = vsub.f32 0.0, %v2984_v16  ;;  %4883 = vrcp.f32 %v3410_v37 }
 0x684   : > { %v4874_v58 = vpop.eup %4873  ;;  %v3283_v32 = vmul.f32 1.442695, %v3082_v54  ;;  %v3088_v18 = vsub.f32 0.0, %v2888_v20 }
 0x685   : > { %v4876_v28 = vpop.eup %4875  ;;  %v3411_v33 = vadd.f32 1.0, %v4874_v58  ;;  %v3285_v9 = vmul.f32 1.442695, %v3083_v15 }
 0x686   : > { %v4878_v53 = vpop.eup %4877  ;;  %v3595_v4 = vpack.c.bf16 %v4876_v28, %v4872_v23  ;;  %4885 = vpow2.f32 %v3283_v32  ;;  %v3295_v48 = vmul.f32 1.442695, %v3088_v18 }
 0x687   : > { %v4880_v12 = vpop.eup %4879  ;;  %4887 = vrcp.f32 %v3411_v33  ;;  %v3412_v26 = vadd.f32 1.0, %v4878_v53  ;;  %v2936_v57 = vpop.f32.mrf.mxu2 }
 0x688   : > { %v4882_v10 = vpop.eup %4881  ;;  %3660 = vst [vmem:[%s6077_s21 + $0x128] sm:$0xff] %v3595_v4  ;;  %v3596_v25 = vpack.c.bf16 %v4880_v12, %v4880_v12  ;;  %4889 = vpow2.f32 %v3285_v9  ;;  %v2937_v56 = vadd.f32 %v2936_v57, %v6336_v1  ;;  %v2985_v27 = vpop.f32.mrf.mxu3 }
 0x689   : > { %4891 = vrcp.f32 %v3412_v26  ;;  %v3417_v60 = vadd.f32 1.0, %v4882_v10  ;;  %v2986_v42 = vadd.f32 %v2985_v27, %v6338_v36  ;;  %v2890_v3 = vpop.f32.mrf.mxu1  ;;  %v4884_v41 = vpop.eup %4883 }
 0x68a   : > { %3661 = vst.msk [vmem:[%s6077_s21 + $0x130] sm:$0xf] %vm3620_vm6, %v3596_v25  ;;  %4893 = vpow2.f32 %v3295_v48  ;;  %v3089_v38 = vsub.f32 0.0, %v2937_v56  ;;  %v2891_v40 = vadd.f32 %v2890_v3, %v6331_v61 }
 0x68b   : > { %v3090_v46 = vsub.f32 0.0, %v2986_v42  ;;  %4895 = vrcp.f32 %v3417_v60 }
 0x68c   : > { %v4886_v34 = vpop.eup %4885  ;;  %v3297_v47 = vmul.f32 1.442695, %v3089_v38  ;;  %v3095_v52 = vsub.f32 0.0, %v2891_v40 }
 0x68d   : > { %v4888_v51 = vpop.eup %4887  ;;  %v3418_v49 = vadd.f32 1.0, %v4886_v34  ;;  %v3299_v11 = vmul.f32 1.442695, %v3090_v46 }
 0x68e   : > { %v4890_v19 = vpop.eup %4889  ;;  %v3599_v13 = vpack.c.bf16 %v4888_v51, %v4884_v41  ;;  %4897 = vpow2.f32 %v3297_v47  ;;  %v3309_v6 = vmul.f32 1.442695, %v3095_v52 }
 0x68f   : > { %v4892_v29 = vpop.eup %4891  ;;  %4899 = vrcp.f32 %v3418_v49  ;;  %v3419_v59 = vadd.f32 1.0, %v4890_v19  ;;  %v2939_v55 = vpop.f32.mrf.mxu2 }
 0x690   : > { %v4894_v62 = vpop.eup %4893  ;;  %3664 = vst [vmem:[%s6077_s21 + $0x144] sm:$0xff] %v3599_v13  ;;  %v3600_v8 = vpack.c.bf16 %v4892_v29, %v4892_v29  ;;  %4901 = vpow2.f32 %v3299_v11  ;;  %v2940_v63 = vadd.f32 %v2939_v55, %v6336_v1  ;;  %v2988_v0 = vpop.f32.mrf.mxu3 }
 0x691   : > { %4903 = vrcp.f32 %v3419_v59  ;;  %v3424_v35 = vadd.f32 1.0, %v4894_v62  ;;  %v2989_v14 = vadd.f32 %v2988_v0, %v6338_v36  ;;  %v2892_v43 = vpop.f32.mrf.mxu1  ;;  %v4896_v50 = vpop.eup %4895 }
 0x692   : > { %3665 = vst.msk [vmem:[%s6077_s21 + $0x14c] sm:$0xf] %vm3620_vm6, %v3600_v8  ;;  %4905 = vpow2.f32 %v3309_v6  ;;  %v3096_v5 = vsub.f32 0.0, %v2940_v63  ;;  %v2893_v44 = vadd.f32 %v2892_v43, %v6331_v61 }
 0x693   : > { %v3097_v2 = vsub.f32 0.0, %v2989_v14  ;;  %4907 = vrcp.f32 %v3424_v35 }
 0x694   : > { %v4898_v30 = vpop.eup %4897  ;;  %v3311_v39 = vmul.f32 1.442695, %v3096_v5  ;;  %v3102_v24 = vsub.f32 0.0, %v2893_v44 }
 0x695   : > { %v4900_v22 = vpop.eup %4899  ;;  %v3425_v31 = vadd.f32 1.0, %v4898_v30  ;;  %v3313_v45 = vmul.f32 1.442695, %v3097_v2 }
 0x696   : > { %v4902_v7 = vpop.eup %4901  ;;  %v3603_v21 = vpack.c.bf16 %v4900_v22, %v4896_v50  ;;  %4909 = vpow2.f32 %v3311_v39  ;;  %v3323_v37 = vmul.f32 1.442695, %v3102_v24 }
 0x697   : > { %v4904_v16 = vpop.eup %4903  ;;  %4911 = vrcp.f32 %v3425_v31  ;;  %v3426_v17 = vadd.f32 1.0, %v4902_v7  ;;  %v2941_v54 = vpop.f32.mrf.mxu2 }
 0x698   : > { %v4906_v61 = vpop.eup %4905  ;;  %3668 = vst [vmem:[%s6077_s21 + $0x160] sm:$0xff] %v3603_v21  ;;  %v3604_v20 = vpack.c.bf16 %v4904_v16, %v4904_v16  ;;  %4913 = vpow2.f32 %v3313_v45  ;;  %v2942_v23 = vadd.f32 %v2941_v54, %v6336_v1  ;;  %v2990_v15 = vpop.f32.mrf.mxu3 }
 0x699   : > { %4915 = vrcp.f32 %v3426_v17  ;;  %v3431_v58 = vadd.f32 1.0, %v4906_v61  ;;  %v2991_v32 = vadd.f32 %v2990_v15, %v6338_v36  ;;  %v4908_v28 = vpop.eup %4907 }
 0x69a   : > { %3669 = vst.msk [vmem:[%s6077_s21 + $0x168] sm:$0xf] %vm3620_vm6, %v3604_v20  ;;  %4917 = vpow2.f32 %v3323_v37  ;;  %v3103_v18 = vsub.f32 0.0, %v2942_v23 }
 0x69b   : > { %v3104_v33 = vsub.f32 0.0, %v2991_v32  ;;  %4919 = vrcp.f32 %v3431_v58 }
 0x69c   : > { %v4910_v9 = vpop.eup %4909  ;;  %v3325_v53 = vmul.f32 1.442695, %v3103_v18 }
 0x69d   : > { %v4912_v4 = vpop.eup %4911  ;;  %v3432_v48 = vadd.f32 1.0, %v4910_v9  ;;  %v3327_v12 = vmul.f32 1.442695, %v3104_v33 }
 0x69e   : > { %v4914_v1 = vpop.eup %4913  ;;  %v3607_v26 = vpack.c.bf16 %v4912_v4, %v4908_v28  ;;  %4921 = vpow2.f32 %v3325_v53 }
 0x69f   : > { %v4916_v57 = vpop.eup %4915  ;;  %4923 = vrcp.f32 %v3432_v48  ;;  %v3433_v36 = vadd.f32 1.0, %v4914_v1 }
 0x6a0   : > { %v4918_v10 = vpop.eup %4917  ;;  %3672 = vst [vmem:[%s6077_s21 + $0x17c] sm:$0xff] %v3607_v26  ;;  %v3608_v25 = vpack.c.bf16 %v4916_v57, %v4916_v57  ;;  %4925 = vpow2.f32 %v3327_v12 }
 0x6a1   : > { %4927 = vrcp.f32 %v3433_v36  ;;  %v3438_v56 = vadd.f32 1.0, %v4918_v10  ;;  %v4920_v27 = vpop.eup %4919 }
 0x6a2   : > { %3673 = vst.msk [vmem:[%s6077_s21 + $0x184] sm:$0xf] %vm3620_vm6, %v3608_v25 }
 0x6a3   : > { %4929 = vrcp.f32 %v3438_v56 }
 0x6a4   : > { %v4922_v60 = vpop.eup %4921 }
 0x6a5   : > { %v4924_v42 = vpop.eup %4923  ;;  %v3439_v3 = vadd.f32 1.0, %v4922_v60 }
 0x6a6   : > { %v4926_v38 = vpop.eup %4925  ;;  %v3611_v40 = vpack.c.bf16 %v4924_v42, %v4920_v27 }
 0x6a7   : > { %v4928_v41 = vpop.eup %4927  ;;  %4931 = vrcp.f32 %v3439_v3  ;;  %v3440_v46 = vadd.f32 1.0, %v4926_v38 }
 0x6a8   : > { %3676 = vst [vmem:[%s6077_s21 + $0x198] sm:$0xff] %v3611_v40  ;;  %v3612_v34 = vpack.c.bf16 %v4928_v41, %v4928_v41 }
 0x6a9   : > { %4933 = vrcp.f32 %v3440_v46  ;;  %v4930_v47 = vpop.eup %4929 }
 0x6aa   : > { %3677 = vst.msk [vmem:[%s6077_s21 + $0x1a0] sm:$0xf] %vm3620_vm6, %v3612_v34 }
 0x6ad   : > { %v4932_v52 = vpop.eup %4931 }
 0x6ae   : > { %v3615_v51 = vpack.c.bf16 %v4932_v52, %v4930_v47 }
 0x6af   : > { %v4934_v49 = vpop.eup %4933 }
 0x6b0   : > { %3680 = vst [vmem:[%s6077_s21 + $0x1b4] sm:$0xff] %v3615_v51  ;;  %v3616_v11 = vpack.c.bf16 %v4934_v49, %v4934_v49 }
 0x6b2   : > { %3681 = vst.msk [vmem:[%s6077_s21 + $0x1bc] sm:$0xf] %vm3620_vm6, %v3616_v11 }
 0x6b3 PF: > { %s6516_s1 = sld [smem:[#allocation7_spill]] }
 0x6b4   : > { %s6517_s22 = sld [smem:[#allocation5_spill]] }
 0x6b9   : > { %p4413_p4 = scmp.ge.s32.totalorder %s6516_s1, 2 }
 0x6ba   : > { %s3764_s28 = sand.u32 1, %s6517_s22  }
 0x6bb   : > { %p4410_p5 = pnand %p4413_p4, %p5152_p6  ;;  %s3765_s27 = scalar_lea.sflag [#allocation3], %s3764_s28 }
 0x6bd   : > { %p4411_p7 = pneg %p4410_p5 }
 0x6bf   : > { %4997 = dma.done.wait (%p4411_p7), %s3765_s27, 2048  }
 0x6c0   : > { %4999 = vsyncadd (%p4411_p7), %s3765_s27, 4294965248  ;;  %s6519_s27 = sld [smem:[#allocation8_spill]]  ;;  %s6522_s24 = smov %s5006_s25 }
 0x6c1   : > { %s6520_s30 = sld [smem:[#allocation6_spill]] }
 0x6c2   : > { %s6521_s26 = sld [smem:[#allocation9_spill]] }
 0x6c6   : > { %p28_p8 = scmp.ge.s32.totalorder %s6519_s27, 4  }
 0x6c7   : > { %s6523_s25 = smov %s6520_s30 }
 0x6c8   :  { %30 = sbr.rel (!%p28_p8) target bundleno = 7 (0x7), region = 134 }
 0x6cd   :  { %3771 = vsyncpa [#allocation3], 1 }
 0x6ce   :  { %3773 = vsyncpa [#allocation3 + $0x1], 1 }

</bundles_post_ra>
